<compile_context>
chip_gen: v7x
topology: tpu7x:2x2x1
jax: 0.10.0
libtpu: 0.0.40
codegen_flags: <defaults>
</compile_context>

<pallas_src>
import functools

import numpy as np
import jax
import jax.numpy as jnp
from jax.experimental import pallas as pl
from jax.experimental.pallas import tpu as pltpu


_INV_SQRT2 = 0.7071067811865475


def _vmem_limit_bytes():
    # v5e/v6e have 128 MiB VMEM (use ~100 MiB scoped), v7x only 64 MiB (stay <=48).
    try:
        cap = pltpu.get_tpu_info().vmem_capacity_bytes
        return int(min(cap - 16 * 2**20, 100 * 2**20))
    except Exception:  # conservative default, safe on every generation
        return 48 * 2**20


_VMEM_LIMIT = _vmem_limit_bytes()
_PIX_CAP = 8192          # max pixels (lane extent) per block; keeps worst-case
                         # conv tiles ~12 MiB incl. temporaries + double buffering


def _pick_rows(hc, wc, pix_cap=_PIX_CAP):
    """Largest row-band th | hc with th*wc <= cap and a 128-aligned lane block."""
    for th in range(hc, 0, -1):
        if hc % th == 0 and th * wc <= pix_cap and ((th * wc) % 128 == 0 or th == hc):
            return th
    for th in range(hc, 0, -1):
        if hc % th == 0 and th * wc <= pix_cap:
            return th
    return hc


def _pick_pix(npix, pix_cap=_PIX_CAP):
    """Largest pixel tile tp | npix with tp <= cap and lane-aligned (or full)."""
    for tp in range(min(npix, pix_cap), 0, -1):
        if npix % tp == 0 and (tp % 128 == 0 or tp == npix):
            return tp
    return npix


def _erf_approx(x):
    # Abramowitz & Stegun 7.1.26 polynomial erf, |abs err| < 1.5e-7 (~f32 eps).
    a1, a2, a3, a4, a5 = 0.254829592, -0.284496736, 1.421413741, -1.453152027, 1.061405429
    p = 0.3275911
    s = jnp.where(x >= 0.0, 1.0, -1.0)
    z = jnp.abs(x)
    t = 1.0 / (1.0 + p * z)
    poly = ((((a5 * t + a4) * t + a3) * t + a2) * t + a1) * t
    return s * (1.0 - poly * jnp.exp(-z * z))


def _gelu(x):
    return 0.5 * x * (1.0 + _erf_approx(x * _INV_SQRT2))


# ----------------------------------------------------------------------------
# 3x3 "same" conv, channels-major flat layout.  Used for the two stem convs and
# for the refolded ConvTranspose2d.  Optionally emits per-tile BN partial sums.
# ----------------------------------------------------------------------------

def _conv_kernel(xm_ref, xh_ref, w_ref, b_ref, o_ref, s_ref=None, *, wc):
    cin = xm_ref.shape[1]
    cout = o_ref.shape[1]
    m = xm_ref.shape[2]                 # th * wc pixels in this band
    lall = m + 2 * wc                   # band + one halo row above and below

    # rows: [halo-above | band | halo-below], flattened row-major on the lane dim
    top = xh_ref[0, 0, :, :wc]
    bot = xh_ref[0, 0, :, wc:]
    xc = jnp.concatenate([top, xm_ref[0], bot], axis=1)          # (cin, lall)

    # horizontal +/-1 pixel shifts; column mask implements the zero border
    zcol = jnp.zeros((cin, 1), jnp.float32)
    col = jax.lax.broadcasted_iota(jnp.int32, (cin, lall), 1) % wc
    xl = jnp.where(col == 0, 0.0,
                   jnp.concatenate([zcol, xc[:, :lall - 1]], axis=1))   # src col-1
    xr = jnp.where(col == wc - 1, 0.0,
                   jnp.concatenate([xc[:, 1:], zcol], axis=1))          # src col+1

    acc = jnp.zeros((cout, m), jnp.float32)
    for dy in range(3):                 # one K = 3*cin matmul per row tap
        s0 = dy * wc
        patch = jnp.concatenate(
            [xl[:, s0:s0 + m], xc[:, s0:s0 + m], xr[:, s0:s0 + m]], axis=0)
        acc = acc + jnp.dot(w_ref[dy], patch, preferred_element_type=jnp.float32)

    y = acc + b_ref[...]
    o_ref[0] = y                         # lane-dense full-block store

    if s_ref is not None:                # fused BatchNorm partial sums (per tile)
        s_ref[0, 0] = jnp.concatenate(
            [jnp.sum(y, axis=1, keepdims=True),
             jnp.sum(y * y, axis=1, keepdims=True)], axis=1)


def _build_halo(x_flat, hc, wc, th):
    """(B, nt, cin, 2*wc): row above / below each band, zeroed at image borders."""
    b, c, _ = x_flat.shape
    nt = hc // th
    x4 = x_flat.reshape(b, c, hc, wc)
    it = np.arange(nt) * th - 1
    ib = np.arange(nt) * th + th
    tmask = jnp.asarray((it >= 0).astype(np.float32)).reshape(1, 1, nt, 1)
    bmask = jnp.asarray((ib < hc).astype(np.float32)).reshape(1, 1, nt, 1)
    top = x4[:, :, jnp.asarray(np.clip(it, 0, hc - 1)), :] * tmask
    bot = x4[:, :, jnp.asarray(np.clip(ib, 0, hc - 1)), :] * bmask
    halo = jnp.stack([top, bot], axis=3)                       # (B, c, nt, 2, wc)
    return jnp.transpose(halo, (0, 2, 1, 3, 4)).reshape(b, nt, c, 2 * wc)


def conv3x3(x_flat, hc, wc, w_stk, b_col, *, with_stats=False):
    """x_flat: (B, cin, hc*wc); w_stk: (3, cout, 3*cin); b_col: (cout, 1)."""
    B, cin, npix = x_flat.shape
    cout = w_stk.shape[1]
    th = _pick_rows(hc, wc)
    nt = hc // th
    halo = _build_halo(x_flat, hc, wc, th)

    in_specs = [
        pl.BlockSpec((1, cin, th * wc), lambda b, t: (b, 0, t)),
        pl.BlockSpec((1, 1, cin, 2 * wc), lambda b, t: (b, t, 0, 0)),
        pl.BlockSpec((3, cout, 3 * cin), lambda b, t: (0, 0, 0)),
        pl.BlockSpec((cout, 1), lambda b, t: (0, 0)),
    ]
    y_shape = jax.ShapeDtypeStruct((B, cout, npix), jnp.float32)
    y_spec = pl.BlockSpec((1, cout, th * wc), lambda b, t: (b, 0, t))
    if with_stats:
        out_shape = (y_shape, jax.ShapeDtypeStruct((B, nt, cout, 2), jnp.float32))
        out_specs = (y_spec, pl.BlockSpec((1, 1, cout, 2), lambda b, t: (b, t, 0, 0)))
    else:
        out_shape, out_specs = y_shape, y_spec

    res = pl.pallas_call(
        functools.partial(_conv_kernel, wc=wc),
        out_shape=out_shape,
        grid=(B, nt),
        in_specs=in_specs,
        out_specs=out_specs,
        compiler_params=pltpu.CompilerParams(
            dimension_semantics=("parallel", "parallel"),
            vmem_limit_bytes=_VMEM_LIMIT),
    )(x_flat, halo, w_stk, b_col)
    return res


# ----------------------------------------------------------------------------
# Fused Waveblock interior: reduction -> Haar -> interleave -> ff1 -> GELU -> ff2
# (everything up to the GELU is folded into one (fd*mult, 4*fd) matrix).
# ----------------------------------------------------------------------------

def _interior_kernel(x_ref, w1_ref, b1_ref, w2_ref, b2_ref, o_ref):
    y = jnp.dot(w1_ref[...], x_ref[0], preferred_element_type=jnp.float32) + b1_ref[...]
    y = _gelu(y)
    o_ref[0] = jnp.dot(w2_ref[...], y, preferred_element_type=jnp.float32) + b2_ref[...]


def interior(x_trunk, w1, b1, w2, b2):
    B, c4, npix = x_trunk.shape
    ff = w2.shape[0]
    tp = _pick_pix(npix)
    return pl.pallas_call(
        _interior_kernel,
        out_shape=jax.ShapeDtypeStruct((B, ff, npix), jnp.float32),
        grid=(B, npix // tp),
        in_specs=[
            pl.BlockSpec((1, c4, tp), lambda b, t: (b, 0, t)),
            pl.BlockSpec(w1.shape, lambda b, t: (0, 0)),
            pl.BlockSpec(b1.shape, lambda b, t: (0, 0)),
            pl.BlockSpec(w2.shape, lambda b, t: (0, 0)),
            pl.BlockSpec(b2.shape, lambda b, t: (0, 0)),
        ],
        out_specs=pl.BlockSpec((1, ff, tp), lambda b, t: (b, 0, t)),
        compiler_params=pltpu.CompilerParams(
            dimension_semantics=("parallel", "parallel"),
            vmem_limit_bytes=_VMEM_LIMIT),
    )(x_trunk, w1, b1, w2, b2)


# ----------------------------------------------------------------------------
# BatchNorm(training-mode batch stats) + residual; last layer also fuses expand.
# ----------------------------------------------------------------------------

def _bn_res_kernel(y_ref, x_ref, sc_ref, sh_ref, o_ref):
    o_ref[0] = y_ref[0] * sc_ref[...] + sh_ref[...] + x_ref[0]


def bn_residual(y, x, sc, sh):
    B, c4, npix = y.shape
    tp = _pick_pix(npix)
    blk = lambda b, t: (b, 0, t)
    return pl.pallas_call(
        _bn_res_kernel,
        out_shape=jax.ShapeDtypeStruct((B, c4, npix), jnp.float32),
        grid=(B, npix // tp),
        in_specs=[pl.BlockSpec((1, c4, tp), blk),
                  pl.BlockSpec((1, c4, tp), blk),
                  pl.BlockSpec((c4, 1), lambda b, t: (0, 0)),
                  pl.BlockSpec((c4, 1), lambda b, t: (0, 0))],
        out_specs=pl.BlockSpec((1, c4, tp), blk),
        input_output_aliases={0: 0},       # normalize the conv output in place
        compiler_params=pltpu.CompilerParams(
            dimension_semantics=("parallel", "parallel"),
            vmem_limit_bytes=_VMEM_LIMIT),
    )(y, x, sc, sh)


def _bn_res_exp_kernel(y_ref, x_ref, sc_ref, sh_ref, we_ref, be_ref, o_ref):
    t = y_ref[0] * sc_ref[...] + sh_ref[...] + x_ref[0]
    o_ref[0] = jnp.dot(we_ref[...], t, preferred_element_type=jnp.float32) + be_ref[...]


def bn_residual_expand(y, x, sc, sh, we, be):
    B, c4, npix = y.shape
    co = we.shape[0]
    tp = _pick_pix(npix)
    blk = lambda b, t: (b, 0, t)
    return pl.pallas_call(
        _bn_res_exp_kernel,
        out_shape=jax.ShapeDtypeStruct((B, co, npix), jnp.float32),
        grid=(B, npix // tp),
        in_specs=[pl.BlockSpec((1, c4, tp), blk),
                  pl.BlockSpec((1, c4, tp), blk),
                  pl.BlockSpec((c4, 1), lambda b, t: (0, 0)),
                  pl.BlockSpec((c4, 1), lambda b, t: (0, 0)),
                  pl.BlockSpec(we.shape, lambda b, t: (0, 0)),
                  pl.BlockSpec(be.shape, lambda b, t: (0, 0))],
        out_specs=pl.BlockSpec((1, co, tp), blk),
        compiler_params=pltpu.CompilerParams(
            dimension_semantics=("parallel", "parallel"),
            vmem_limit_bytes=_VMEM_LIMIT),
    )(y, x, sc, sh, we, be)


# ----------------------------------------------------------------------------
# Weight folding / reorientation (run ONCE, outside jit)
# ----------------------------------------------------------------------------

def _stack_taps(w_hwio):
    """(3,3,cin,cout) HWIO -> (3, cout, 3*cin); dx-major K blocks [dx=0|1|2]."""
    return jnp.stack(
        [jnp.concatenate([w_hwio[dy, dx].T for dx in range(3)], axis=1)
         for dy in range(3)], axis=0)


def _fold_ct(wt):
    """Refold torch ConvTranspose2d(ff, fd, 4, stride=2, padding=1) into an
    equivalent 3x3 conv on the half-res grid whose output channel
    (2*py+px)*fd + co is the full-res phase-(py,px) plane of channel co."""
    ffin, fd = wt.shape[0], wt.shape[1]
    w3 = jnp.zeros((3, 3, ffin, 4 * fd), jnp.float32)
    for py in range(2):
        for px in range(2):
            c0 = (2 * py + px) * fd
            for dy in (py, py + 1):
                for dx in (px, px + 1):
                    arow = 3 + py - 2 * dy
                    acol = 3 + px - 2 * dx
                    w3 = w3.at[dy, dx, :, c0:c0 + fd].set(wt[:, :, arow, acol])
    return w3


def _fold_layer(lp, fd):
    """Fold reduction(1x1) -> Haar(db1, J=1, 'zero') -> subband interleave ->
    ff1(1x1) into a single (fd*mult, 4*fd) matrix acting on the 4-phase column
    vector of each 2x2 block (all linear, exact up to f32 rounding)."""
    wr = lp["red_w"]                     # (fd, fd/4)
    br = lp["red_b"].reshape(-1)
    w1 = lp["ff1_w"]                     # (fd, fd*mult)
    b1 = lp["ff1_b"].reshape(-1)
    fd4 = wr.shape[1]
    c = w1.shape[0]

    # Haar mixing, positions a=(0,0), b=(0,1), c=(1,0), d=(1,1) of each 2x2 block
    sign = 0.5 * np.array([[1, 1, 1, 1],        # LL
                           [1, 1, -1, -1],
                           [1, -1, 1, -1],
                           [1, -1, -1, 1]], np.float32)
    amat = np.zeros((4, fd4, c), np.float32)
    for k in range(c):
        if k < fd4:
            ch, sub = k, 0
        else:
            ch, sub = (k - fd4) // 3, 1 + (k - fd4) % 3
        amat[:, ch, k] = sign[sub, :]
    amat = jnp.asarray(amat)

    wpos = jnp.einsum("ik,pkc,cn->pin", wr, amat, w1)            # (4, fd, fd*mult)
    w1full = jnp.concatenate([wpos[p].T for p in range(4)], axis=1)  # (fd*mult, 4fd)
    b1full = (br @ amat.sum(0) @ w1 + b1).reshape(-1, 1)

    ct_w = _stack_taps(_fold_ct(lp["ct_wt"]))                    # (3, 4fd, 3*ff)
    ct_b = jnp.tile(lp["ct_b"].reshape(-1), 4).reshape(-1, 1)

    return dict(w1=w1full, b1=b1full,
                w2=lp["ff2_w"].T, b2=lp["ff2_b"].reshape(-1, 1),
                ct_w=ct_w, ct_b=ct_b,
                bn_g=lp["bn_g"].reshape(-1), bn_b=lp["bn_b"].reshape(-1))


def prepare_params(params):
    """Fold / reorient all weights into kernel-ready tensors (once, outside jit)."""
    fd = params["conv2_w"].shape[-1]

    c1 = params["conv1_w"]                                        # (3,3,3,fd/2)
    c1p = jnp.zeros((3, 3, 8, c1.shape[-1]), jnp.float32).at[:, :, :3, :].set(c1)
    prep = {
        "c1_w": _stack_taps(c1p), "c1_b": params["conv1_b"].reshape(-1, 1),
        "c2_w": _stack_taps(params["conv2_w"]), "c2_b": params["conv2_b"].reshape(-1, 1),
        "layers": [_fold_layer(lp, fd) for lp in params["layers"]],
    }

    # expand (fd -> 3 per pixel), block-diagonal over the 4 phase planes
    ew = params["exp_w"]                                          # (fd, 3)
    we = jnp.zeros((12, 4 * fd), jnp.float32)
    for p in range(4):
        we = we.at[p * 3:(p + 1) * 3, p * fd:(p + 1) * fd].set(ew.T)
    prep["exp_w"] = we
    prep["exp_b"] = jnp.tile(params["exp_b"].reshape(-1), 4).reshape(12, 1)
    return prep


# ----------------------------------------------------------------------------
# Model wiring
# ----------------------------------------------------------------------------

def wavemix_forward(img_nchw, prep):
    B, cimg, H, W = img_nchw.shape
    assert H % 2 == 0 and W % 2 == 0
    h2, w2 = H // 2, W // 2
    npix = h2 * w2
    fd = prep["c2_w"].shape[1]

    # stem: two 3x3 convs in channels-major flat layout (free view of NCHW);
    # input channels zero-padded 3 -> 8 for sublane-aligned K blocks.
    x = img_nchw.astype(jnp.float32).reshape(B, cimg, H * W)
    x = jnp.concatenate([x, jnp.zeros((B, 8 - cimg, H * W), jnp.float32)], axis=1)
    x = conv3x3(x, H, W, prep["c1_w"], prep["c1_b"])
    x = conv3x3(x, H, W, prep["c2_w"], prep["c2_b"])

    # to the phase-separated trunk layout (B, 4*fd, h2*w2) -- one small XLA
    # transpose, done once (not per Waveblock)
    x = x.reshape(B, fd, h2, 2, w2, 2)
    x = jnp.transpose(x, (0, 3, 5, 1, 2, 4)).reshape(B, 4 * fd, npix)

    layers = prep["layers"]
    assert len(layers) >= 1
    out = None
    cnt = float(B * H * W)
    for li, lp in enumerate(layers):
        # fused reduction -> Haar -> interleave -> ff1 -> GELU -> ff2
        h = interior(x, lp["w1"], lp["b1"], lp["w2"], lp["b2"])
        # ConvTranspose2d(ff, fd, 4, 2, 1) refolded as a 3x3 conv emitting the 4
        # output phases as 4*fd channels; BN partial sums fused in its epilogue.
        y, stats = conv3x3(h, h2, w2, lp["ct_w"], lp["ct_b"], with_stats=True)

        tot = stats.sum(axis=(0, 1)).reshape(4, fd, 2).sum(axis=0)    # per channel
        mean = tot[:, 0] / cnt
        var = jnp.maximum(tot[:, 1] / cnt - mean * mean, 0.0)
        # TODO(synk): single-pass E[x^2]-E[x]^2 in f32 can cancel for very large
        # B*H*W; switch to a centered second pass if bit-tight torch matching is needed.
        scale = lp["bn_g"] * jax.lax.rsqrt(var + 1e-5)
        shift = lp["bn_b"] - mean * scale
        sc = jnp.tile(scale, 4).reshape(4 * fd, 1)
        sh = jnp.tile(shift, 4).reshape(4 * fd, 1)

        if li == len(layers) - 1:
            # last Waveblock: fuse the final expand(fd->3) into BN + residual
            out = bn_residual_expand(y, x, sc, sh, prep["exp_w"], prep["exp_b"])
        else:
            x = bn_residual(y, x, sc, sh)

    # phase-separated (B, 4*3, h2*w2) -> NCHW (B, 3, H, W)  (small 3-channel transpose)
    out = out.reshape(B, 2, 2, 3, h2, w2)
    out = jnp.transpose(out, (0, 3, 4, 1, 5, 2)).reshape(B, 3, H, W)
    return out


# ----------------------------------------------------------------------------
# Deterministic synthetic parameter initialization (torch-equivalent layouts)
# ----------------------------------------------------------------------------

def init_params(key, *, depth=2, mult=2, ff_channel=16, final_dim=16):
    keys = iter(jax.random.split(key, 16 + depth * 16))

    def rnd(shape, scale=0.1):
        return scale * jax.random.normal(next(keys), shape, jnp.float32)

    fd = final_dim
    params = {
        "conv1_w": rnd((3, 3, 3, fd // 2)),          # HWIO
        "conv1_b": rnd((1, fd // 2)),
        "conv2_w": rnd((3, 3, fd // 2, fd)),
        "conv2_b": rnd((1, fd)),
        "exp_w": rnd((fd, 3)),
        "exp_b": rnd((1, 3)),
        "layers": [],
    }
    for _ in range(depth):
        params["layers"].append({
            "red_w": rnd((fd, fd // 4)), "red_b": rnd((1, fd // 4)),
            "ff1_w": rnd((fd, fd * mult)), "ff1_b": rnd((1, fd * mult)),
            "ff2_w": rnd((fd * mult, ff_channel)), "ff2_b": rnd((1, ff_channel)),
            # torch ConvTranspose2d weight layout: (Cin=ff_channel, Cout=fd, 4, 4)
            "ct_wt": rnd((ff_channel, fd, 4, 4)),
            "ct_b": rnd((1, fd)),
            "bn_g": 1.0 + rnd((1, fd)), "bn_b": rnd((1, fd)),
        })
    return params


if __name__ == "__main__":
    key = jax.random.PRNGKey(0)
    pkey, xkey = jax.random.split(key)

    params = init_params(pkey, depth=2, mult=2, ff_channel=16, final_dim=16)
    prep = prepare_params(params)                   # weight folding: once, outside jit
    img = jax.random.normal(xkey, (2, 3, 16, 16), jnp.float32)   # NCHW like PyTorch

    fwd = jax.jit(wavemix_forward)
    out = fwd(img, prep)
    jax.block_until_ready(out)

    assert out.shape == (2, 3, 16, 16) and out.dtype == jnp.float32
    assert bool(jnp.all(jnp.isfinite(out)))
    print("KERNEL_OK")
</pallas_src>

<mosaic_0001>
module attributes {stable_mosaic.version = 11 : i64} {
  func.func @_conv_kernel(%arg0: i32, %arg1: i32, %arg2: memref<1x8x256xf32, #tpu.memory_space<vmem>>, %arg3: memref<1x1x8x32xf32, #tpu.memory_space<vmem>>, %arg4: memref<3x16x24xf32, #tpu.memory_space<vmem>>, %arg5: memref<16x1xf32, #tpu.memory_space<vmem>>, %arg6: memref<1x16x256xf32, #tpu.memory_space<vmem>>) attributes {dimension_semantics = [#tpu.dimension_semantics<parallel>, #tpu.dimension_semantics<parallel>], iteration_bounds = array<i64: 2, 1>, scalar_prefetch = 0 : i64, scratch_operands = 0 : i64, tpu.core_type = #tpu.core_type<tc>, window_params = [{transform_indices = @transform_0, window_bounds = array<i64: 1, 8, 256>}, {transform_indices = @transform_1, window_bounds = array<i64: 1, 1, 8, 32>}, {pipeline_mode = #tpu.pipeline_mode<synchronous>, transform_indices = @transform_2, window_bounds = array<i64: 3, 16, 24>}, {pipeline_mode = #tpu.pipeline_mode<synchronous>, transform_indices = @transform_3, window_bounds = array<i64: 16, 1>}, {transform_indices = @transform_4, window_bounds = array<i64: 1, 16, 256>}]} {
    %c0 = arith.constant 0 : index
    %c0_0 = arith.constant 0 : index
    %c0_1 = arith.constant 0 : index
    %c0_2 = arith.constant 0 : index
    %0 = vector.load %arg3[%c0, %c0_0, %c0_1, %c0_2] : memref<1x1x8x32xf32, #tpu.memory_space<vmem>>, vector<1x1x8x16xf32>
    %1 = vector.shape_cast %0 : vector<1x1x8x16xf32> to vector<8x16xf32>
    %c0_3 = arith.constant 0 : index
    %c0_4 = arith.constant 0 : index
    %c0_5 = arith.constant 0 : index
    %c16 = arith.constant 16 : index
    %2 = vector.load %arg3[%c0_3, %c0_4, %c0_5, %c16] : memref<1x1x8x32xf32, #tpu.memory_space<vmem>>, vector<1x1x8x16xf32>
    %3 = vector.shape_cast %2 : vector<1x1x8x16xf32> to vector<8x16xf32>
    %c0_6 = arith.constant 0 : index
    %c0_7 = arith.constant 0 : index
    %c0_8 = arith.constant 0 : index
    %4 = vector.load %arg2[%c0_6, %c0_7, %c0_8] : memref<1x8x256xf32, #tpu.memory_space<vmem>>, vector<1x8x256xf32>
    %5 = vector.shape_cast %4 : vector<1x8x256xf32> to vector<8x256xf32>
    %6 = tpu.concatenate %1, %5, %3 in 1 : vector<8x16xf32>, vector<8x256xf32>, vector<8x16xf32> -> vector<8x288xf32>
    %cst = arith.constant 0.000000e+00 : f32
    %7 = vector.broadcast %cst : f32 to vector<8x1xf32>
    %8 = tpu.iota {dimensions = array<i32: 1>} : vector<8x288xi32>
    %c16_i32 = arith.constant 16 : i32
    %c0_i32 = arith.constant 0 : i32
    %9 = arith.cmpi eq, %c16_i32, %c0_i32 : i32
    %c1_i32 = arith.constant 1 : i32
    %10 = arith.select %9, %c1_i32, %c16_i32 : i32
    %11 = vector.broadcast %10 : i32 to vector<8x288xi32>
    %12 = arith.remsi %8, %11 : vector<8x288xi32>
    %c0_i32_9 = arith.constant 0 : i32
    %13 = vector.broadcast %c0_i32_9 : i32 to vector<8x288xi32>
    %14 = arith.cmpi ne, %12, %13 : vector<8x288xi32>
    %c0_i32_10 = arith.constant 0 : i32
    %15 = vector.broadcast %c0_i32_10 : i32 to vector<8x288xi32>
    %16 = arith.cmpi slt, %12, %15 : vector<8x288xi32>
    %c0_i32_11 = arith.constant 0 : i32
    %17 = arith.cmpi slt, %10, %c0_i32_11 : i32
    %18 = vector.broadcast %17 : i1 to vector<8x288xi1>
    %19 = vector.broadcast %18 : vector<8x288xi1> to vector<8x288xi1>
    %20 = arith.xori %16, %19 : vector<8x288xi1>
    %21 = arith.andi %20, %14 : vector<8x288xi1>
    %22 = vector.broadcast %10 : i32 to vector<8x288xi32>
    %23 = arith.addi %12, %22 : vector<8x288xi32>
    %24 = arith.select %21, %23, %12 : vector<8x288xi1>, vector<8x288xi32>
    %c0_i32_12 = arith.constant 0 : i32
    %25 = vector.broadcast %c0_i32_12 : i32 to vector<8x288xi32>
    %26 = arith.cmpi eq, %24, %25 : vector<8x288xi32>
    %27 = vector.extract_strided_slice %6 {offsets = [0, 0], sizes = [8, 287], strides = [1, 1]} : vector<8x288xf32> to vector<8x287xf32>
    %28 = tpu.concatenate %7, %27 in 1 : vector<8x1xf32>, vector<8x287xf32> -> vector<8x288xf32>
    %cst_13 = arith.constant 0.000000e+00 : f32
    %29 = vector.broadcast %cst_13 : f32 to vector<8x288xf32>
    %30 = arith.select %26, %29, %28 : vector<8x288xi1>, vector<8x288xf32>
    %c15_i32 = arith.constant 15 : i32
    %31 = vector.broadcast %c15_i32 : i32 to vector<8x288xi32>
    %32 = arith.cmpi eq, %24, %31 : vector<8x288xi32>
    %33 = vector.extract_strided_slice %6 {offsets = [0, 1], sizes = [8, 287], strides = [1, 1]} : vector<8x288xf32> to vector<8x287xf32>
    %34 = tpu.concatenate %33, %7 in 1 : vector<8x287xf32>, vector<8x1xf32> -> vector<8x288xf32>
    %cst_14 = arith.constant 0.000000e+00 : f32
    %35 = vector.broadcast %cst_14 : f32 to vector<8x288xf32>
    %36 = arith.select %32, %35, %34 : vector<8x288xi1>, vector<8x288xf32>
    %cst_15 = arith.constant 0.000000e+00 : f32
    %37 = vector.broadcast %cst_15 : f32 to vector<16x256xf32>
    %38 = vector.extract_strided_slice %30 {offsets = [0, 0], sizes = [8, 256], strides = [1, 1]} : vector<8x288xf32> to vector<8x256xf32>
    %39 = vector.extract_strided_slice %6 {offsets = [0, 0], sizes = [8, 256], strides = [1, 1]} : vector<8x288xf32> to vector<8x256xf32>
    %40 = vector.extract_strided_slice %36 {offsets = [0, 0], sizes = [8, 256], strides = [1, 1]} : vector<8x288xf32> to vector<8x256xf32>
    %41 = tpu.concatenate %38, %39, %40 in 0 : vector<8x256xf32>, vector<8x256xf32>, vector<8x256xf32> -> vector<24x256xf32>
    %c0_16 = arith.constant 0 : index
    %c0_17 = arith.constant 0 : index
    %c0_18 = arith.constant 0 : index
    %42 = vector.load %arg4[%c0_16, %c0_17, %c0_18] : memref<3x16x24xf32, #tpu.memory_space<vmem>>, vector<1x16x24xf32>
    %43 = vector.shape_cast %42 : vector<1x16x24xf32> to vector<16x24xf32>
    %cst_19 = arith.constant dense<0.000000e+00> : vector<16x256xf32>
    %44 = tpu.matmul %43, %41, %cst_19 {dimension_numbers = #tpu.dot_dimension_numbers<[1], [0], [0], [1], [0, 0, 1, 1], [], []>} : vector<16x24xf32>, vector<24x256xf32>, vector<16x256xf32> -> vector<16x256xf32>
    %45 = arith.addf %37, %44 : vector<16x256xf32>
    %46 = vector.extract_strided_slice %30 {offsets = [0, 16], sizes = [8, 256], strides = [1, 1]} : vector<8x288xf32> to vector<8x256xf32>
    %47 = vector.extract_strided_slice %6 {offsets = [0, 16], sizes = [8, 256], strides = [1, 1]} : vector<8x288xf32> to vector<8x256xf32>
    %48 = vector.extract_strided_slice %36 {offsets = [0, 16], sizes = [8, 256], strides = [1, 1]} : vector<8x288xf32> to vector<8x256xf32>
    %49 = tpu.concatenate %46, %47, %48 in 0 : vector<8x256xf32>, vector<8x256xf32>, vector<8x256xf32> -> vector<24x256xf32>
    %c1 = arith.constant 1 : index
    %c0_20 = arith.constant 0 : index
    %c0_21 = arith.constant 0 : index
    %50 = vector.load %arg4[%c1, %c0_20, %c0_21] : memref<3x16x24xf32, #tpu.memory_space<vmem>>, vector<1x16x24xf32>
    %51 = vector.shape_cast %50 : vector<1x16x24xf32> to vector<16x24xf32>
    %cst_22 = arith.constant dense<0.000000e+00> : vector<16x256xf32>
    %52 = tpu.matmul %51, %49, %cst_22 {dimension_numbers = #tpu.dot_dimension_numbers<[1], [0], [0], [1], [0, 0, 1, 1], [], []>} : vector<16x24xf32>, vector<24x256xf32>, vector<16x256xf32> -> vector<16x256xf32>
    %53 = arith.addf %45, %52 : vector<16x256xf32>
    %54 = vector.extract_strided_slice %30 {offsets = [0, 32], sizes = [8, 256], strides = [1, 1]} : vector<8x288xf32> to vector<8x256xf32>
    %55 = vector.extract_strided_slice %6 {offsets = [0, 32], sizes = [8, 256], strides = [1, 1]} : vector<8x288xf32> to vector<8x256xf32>
    %56 = vector.extract_strided_slice %36 {offsets = [0, 32], sizes = [8, 256], strides = [1, 1]} : vector<8x288xf32> to vector<8x256xf32>
    %57 = tpu.concatenate %54, %55, %56 in 0 : vector<8x256xf32>, vector<8x256xf32>, vector<8x256xf32> -> vector<24x256xf32>
    %c2 = arith.constant 2 : index
    %c0_23 = arith.constant 0 : index
    %c0_24 = arith.constant 0 : index
    %58 = vector.load %arg4[%c2, %c0_23, %c0_24] : memref<3x16x24xf32, #tpu.memory_space<vmem>>, vector<1x16x24xf32>
    %59 = vector.shape_cast %58 : vector<1x16x24xf32> to vector<16x24xf32>
    %cst_25 = arith.constant dense<0.000000e+00> : vector<16x256xf32>
    %60 = tpu.matmul %59, %57, %cst_25 {dimension_numbers = #tpu.dot_dimension_numbers<[1], [0], [0], [1], [0, 0, 1, 1], [], []>} : vector<16x24xf32>, vector<24x256xf32>, vector<16x256xf32> -> vector<16x256xf32>
    %61 = arith.addf %53, %60 : vector<16x256xf32>
    %c0_26 = arith.constant 0 : index
    %c0_27 = arith.constant 0 : index
    %62 = vector.load %arg5[%c0_26, %c0_27] : memref<16x1xf32, #tpu.memory_space<vmem>>, vector<16x1xf32>
    %63 = vector.broadcast %62 : vector<16x1xf32> to vector<16x256xf32>
    %64 = arith.addf %61, %63 : vector<16x256xf32>
    %c0_28 = arith.constant 0 : index
    %c0_29 = arith.constant 0 : index
    %c0_30 = arith.constant 0 : index
    %65 = vector.load %arg6[%c0_28, %c0_29, %c0_30] : memref<1x16x256xf32, #tpu.memory_space<vmem>>, vector<1x16x256xf32>
    %66 = vector.shape_cast %65 : vector<1x16x256xf32> to vector<16x256xf32>
    %67 = vector.shape_cast %64 : vector<16x256xf32> to vector<1x16x256xf32>
    tpu.vector_store %arg6[%c0_28, %c0_29, %c0_30], %67 {strides = array<i32>} : memref<1x16x256xf32, #tpu.memory_space<vmem>>, vector<1x16x256xf32>,
    return
  }
  func.func @transform_0(%arg0: i32, %arg1: i32) -> (i32, i32, i32) {
    %c0_i32 = arith.constant 0 : i32
    %c0_i32_0 = arith.constant 0 : i32
    return %arg0, %c0_i32, %arg1 : i32, i32, i32
  }
  func.func @transform_1(%arg0: i32, %arg1: i32) -> (i32, i32, i32, i32) {
    %c0_i32 = arith.constant 0 : i32
    %c0_i32_0 = arith.constant 0 : i32
    %c0_i32_1 = arith.constant 0 : i32
    return %arg0, %arg1, %c0_i32, %c0_i32_0 : i32, i32, i32, i32
  }
  func.func @transform_2(%arg0: i32, %arg1: i32) -> (i32, i32, i32) {
    %c0_i32 = arith.constant 0 : i32
    %c0_i32_0 = arith.constant 0 : i32
    %c0_i32_1 = arith.constant 0 : i32
    %c0_i32_2 = arith.constant 0 : i32
    return %c0_i32, %c0_i32_0, %c0_i32_1 : i32, i32, i32
  }
  func.func @transform_3(%arg0: i32, %arg1: i32) -> (i32, i32) {
    %c0_i32 = arith.constant 0 : i32
    %c0_i32_0 = arith.constant 0 : i32
    %c0_i32_1 = arith.constant 0 : i32
    return %c0_i32, %c0_i32_0 : i32, i32
  }
  func.func @transform_4(%arg0: i32, %arg1: i32) -> (i32, i32, i32) {
    %c0_i32 = arith.constant 0 : i32
    %c0_i32_0 = arith.constant 0 : i32
    return %arg0, %c0_i32, %arg1 : i32, i32, i32
  }
}

module attributes {stable_mosaic.version = 11 : i64} {
  func.func @_conv_kernel(%arg0: i32, %arg1: i32, %arg2: memref<1x8x256xf32, #tpu.memory_space<vmem>>, %arg3: memref<1x1x8x32xf32, #tpu.memory_space<vmem>>, %arg4: memref<3x8x24xf32, #tpu.memory_space<vmem>>, %arg5: memref<8x1xf32, #tpu.memory_space<vmem>>, %arg6: memref<1x8x256xf32, #tpu.memory_space<vmem>>) attributes {dimension_semantics = [#tpu.dimension_semantics<parallel>, #tpu.dimension_semantics<parallel>], iteration_bounds = array<i64: 2, 1>, scalar_prefetch = 0 : i64, scratch_operands = 0 : i64, tpu.core_type = #tpu.core_type<tc>, window_params = [{transform_indices = @transform_0, window_bounds = array<i64: 1, 8, 256>}, {transform_indices = @transform_1, window_bounds = array<i64: 1, 1, 8, 32>}, {pipeline_mode = #tpu.pipeline_mode<synchronous>, transform_indices = @transform_2, window_bounds = array<i64: 3, 8, 24>}, {pipeline_mode = #tpu.pipeline_mode<synchronous>, transform_indices = @transform_3, window_bounds = array<i64: 8, 1>}, {transform_indices = @transform_4, window_bounds = array<i64: 1, 8, 256>}]} {
    %c0 = arith.constant 0 : index
    %c0_0 = arith.constant 0 : index
    %c0_1 = arith.constant 0 : index
    %c0_2 = arith.constant 0 : index
    %0 = vector.load %arg3[%c0, %c0_0, %c0_1, %c0_2] : memref<1x1x8x32xf32, #tpu.memory_space<vmem>>, vector<1x1x8x16xf32>
    %1 = vector.shape_cast %0 : vector<1x1x8x16xf32> to vector<8x16xf32>
    %c0_3 = arith.constant 0 : index
    %c0_4 = arith.constant 0 : index
    %c0_5 = arith.constant 0 : index
    %c16 = arith.constant 16 : index
    %2 = vector.load %arg3[%c0_3, %c0_4, %c0_5, %c16] : memref<1x1x8x32xf32, #tpu.memory_space<vmem>>, vector<1x1x8x16xf32>
    %3 = vector.shape_cast %2 : vector<1x1x8x16xf32> to vector<8x16xf32>
    %c0_6 = arith.constant 0 : index
    %c0_7 = arith.constant 0 : index
    %c0_8 = arith.constant 0 : index
    %4 = vector.load %arg2[%c0_6, %c0_7, %c0_8] : memref<1x8x256xf32, #tpu.memory_space<vmem>>, vector<1x8x256xf32>
    %5 = vector.shape_cast %4 : vector<1x8x256xf32> to vector<8x256xf32>
    %6 = tpu.concatenate %1, %5, %3 in 1 : vector<8x16xf32>, vector<8x256xf32>, vector<8x16xf32> -> vector<8x288xf32>
    %cst = arith.constant 0.000000e+00 : f32
    %7 = vector.broadcast %cst : f32 to vector<8x1xf32>
    %8 = tpu.iota {dimensions = array<i32: 1>} : vector<8x288xi32>
    %c16_i32 = arith.constant 16 : i32
    %c0_i32 = arith.constant 0 : i32
    %9 = arith.cmpi eq, %c16_i32, %c0_i32 : i32
    %c1_i32 = arith.constant 1 : i32
    %10 = arith.select %9, %c1_i32, %c16_i32 : i32
    %11 = vector.broadcast %10 : i32 to vector<8x288xi32>
    %12 = arith.remsi %8, %11 : vector<8x288xi32>
    %c0_i32_9 = arith.constant 0 : i32
    %13 = vector.broadcast %c0_i32_9 : i32 to vector<8x288xi32>
    %14 = arith.cmpi ne, %12, %13 : vector<8x288xi32>
    %c0_i32_10 = arith.constant 0 : i32
    %15 = vector.broadcast %c0_i32_10 : i32 to vector<8x288xi32>
    %16 = arith.cmpi slt, %12, %15 : vector<8x288xi32>
    %c0_i32_11 = arith.constant 0 : i32
    %17 = arith.cmpi slt, %10, %c0_i32_11 : i32
    %18 = vector.broadcast %17 : i1 to vector<8x288xi1>
    %19 = vector.broadcast %18 : vector<8x288xi1> to vector<8x288xi1>
    %20 = arith.xori %16, %19 : vector<8x288xi1>
    %21 = arith.andi %20, %14 : vector<8x288xi1>
    %22 = vector.broadcast %10 : i32 to vector<8x288xi32>
    %23 = arith.addi %12, %22 : vector<8x288xi32>
    %24 = arith.select %21, %23, %12 : vector<8x288xi1>, vector<8x288xi32>
    %c0_i32_12 = arith.constant 0 : i32
    %25 = vector.broadcast %c0_i32_12 : i32 to vector<8x288xi32>
    %26 = arith.cmpi eq, %24, %25 : vector<8x288xi32>
    %27 = vector.extract_strided_slice %6 {offsets = [0, 0], sizes = [8, 287], strides = [1, 1]} : vector<8x288xf32> to vector<8x287xf32>
    %28 = tpu.concatenate %7, %27 in 1 : vector<8x1xf32>, vector<8x287xf32> -> vector<8x288xf32>
    %cst_13 = arith.constant 0.000000e+00 : f32
    %29 = vector.broadcast %cst_13 : f32 to vector<8x288xf32>
    %30 = arith.select %26, %29, %28 : vector<8x288xi1>, vector<8x288xf32>
    %c15_i32 = arith.constant 15 : i32
    %31 = vector.broadcast %c15_i32 : i32 to vector<8x288xi32>
    %32 = arith.cmpi eq, %24, %31 : vector<8x288xi32>
    %33 = vector.extract_strided_slice %6 {offsets = [0, 1], sizes = [8, 287], strides = [1, 1]} : vector<8x288xf32> to vector<8x287xf32>
    %34 = tpu.concatenate %33, %7 in 1 : vector<8x287xf32>, vector<8x1xf32> -> vector<8x288xf32>
    %cst_14 = arith.constant 0.000000e+00 : f32
    %35 = vector.broadcast %cst_14 : f32 to vector<8x288xf32>
    %36 = arith.select %32, %35, %34 : vector<8x288xi1>, vector<8x288xf32>
    %cst_15 = arith.constant 0.000000e+00 : f32
    %37 = vector.broadcast %cst_15 : f32 to vector<8x256xf32>
    %38 = vector.extract_strided_slice %30 {offsets = [0, 0], sizes = [8, 256], strides = [1, 1]} : vector<8x288xf32> to vector<8x256xf32>
    %39 = vector.extract_strided_slice %6 {offsets = [0, 0], sizes = [8, 256], strides = [1, 1]} : vector<8x288xf32> to vector<8x256xf32>
    %40 = vector.extract_strided_slice %36 {offsets = [0, 0], sizes = [8, 256], strides = [1, 1]} : vector<8x288xf32> to vector<8x256xf32>
    %41 = tpu.concatenate %38, %39, %40 in 0 : vector<8x256xf32>, vector<8x256xf32>, vector<8x256xf32> -> vector<24x256xf32>
    %c0_16 = arith.constant 0 : index
    %c0_17 = arith.constant 0 : index
    %c0_18 = arith.constant 0 : index
    %42 = vector.load %arg4[%c0_16, %c0_17, %c0_18] : memref<3x8x24xf32, #tpu.memory_space<vmem>>, vector<1x8x24xf32>
    %43 = vector.shape_cast %42 : vector<1x8x24xf32> to vector<8x24xf32>
    %cst_19 = arith.constant dense<0.000000e+00> : vector<8x256xf32>
    %44 = tpu.matmul %43, %41, %cst_19 {dimension_numbers = #tpu.dot_dimension_numbers<[1], [0], [0], [1], [0, 0, 1, 1], [], []>} : vector<8x24xf32>, vector<24x256xf32>, vector<8x256xf32> -> vector<8x256xf32>
    %45 = arith.addf %37, %44 : vector<8x256xf32>
    %46 = vector.extract_strided_slice %30 {offsets = [0, 16], sizes = [8, 256], strides = [1, 1]} : vector<8x288xf32> to vector<8x256xf32>
    %47 = vector.extract_strided_slice %6 {offsets = [0, 16], sizes = [8, 256], strides = [1, 1]} : vector<8x288xf32> to vector<8x256xf32>
    %48 = vector.extract_strided_slice %36 {offsets = [0, 16], sizes = [8, 256], strides = [1, 1]} : vector<8x288xf32> to vector<8x256xf32>
    %49 = tpu.concatenate %46, %47, %48 in 0 : vector<8x256xf32>, vector<8x256xf32>, vector<8x256xf32> -> vector<24x256xf32>
    %c1 = arith.constant 1 : index
    %c0_20 = arith.constant 0 : index
    %c0_21 = arith.constant 0 : index
    %50 = vector.load %arg4[%c1, %c0_20, %c0_21] : memref<3x8x24xf32, #tpu.memory_space<vmem>>, vector<1x8x24xf32>
    %51 = vector.shape_cast %50 : vector<1x8x24xf32> to vector<8x24xf32>
    %cst_22 = arith.constant dense<0.000000e+00> : vector<8x256xf32>
    %52 = tpu.matmul %51, %49, %cst_22 {dimension_numbers = #tpu.dot_dimension_numbers<[1], [0], [0], [1], [0, 0, 1, 1], [], []>} : vector<8x24xf32>, vector<24x256xf32>, vector<8x256xf32> -> vector<8x256xf32>
    %53 = arith.addf %45, %52 : vector<8x256xf32>
    %54 = vector.extract_strided_slice %30 {offsets = [0, 32], sizes = [8, 256], strides = [1, 1]} : vector<8x288xf32> to vector<8x256xf32>
    %55 = vector.extract_strided_slice %6 {offsets = [0, 32], sizes = [8, 256], strides = [1, 1]} : vector<8x288xf32> to vector<8x256xf32>
    %56 = vector.extract_strided_slice %36 {offsets = [0, 32], sizes = [8, 256], strides = [1, 1]} : vector<8x288xf32> to vector<8x256xf32>
    %57 = tpu.concatenate %54, %55, %56 in 0 : vector<8x256xf32>, vector<8x256xf32>, vector<8x256xf32> -> vector<24x256xf32>
    %c2 = arith.constant 2 : index
    %c0_23 = arith.constant 0 : index
    %c0_24 = arith.constant 0 : index
    %58 = vector.load %arg4[%c2, %c0_23, %c0_24] : memref<3x8x24xf32, #tpu.memory_space<vmem>>, vector<1x8x24xf32>
    %59 = vector.shape_cast %58 : vector<1x8x24xf32> to vector<8x24xf32>
    %cst_25 = arith.constant dense<0.000000e+00> : vector<8x256xf32>
    %60 = tpu.matmul %59, %57, %cst_25 {dimension_numbers = #tpu.dot_dimension_numbers<[1], [0], [0], [1], [0, 0, 1, 1], [], []>} : vector<8x24xf32>, vector<24x256xf32>, vector<8x256xf32> -> vector<8x256xf32>
    %61 = arith.addf %53, %60 : vector<8x256xf32>
    %c0_26 = arith.constant 0 : index
    %c0_27 = arith.constant 0 : index
    %62 = vector.load %arg5[%c0_26, %c0_27] : memref<8x1xf32, #tpu.memory_space<vmem>>, vector<8x1xf32>
    %63 = vector.broadcast %62 : vector<8x1xf32> to vector<8x256xf32>
    %64 = arith.addf %61, %63 : vector<8x256xf32>
    %c0_28 = arith.constant 0 : index
    %c0_29 = arith.constant 0 : index
    %c0_30 = arith.constant 0 : index
    %65 = vector.load %arg6[%c0_28, %c0_29, %c0_30] : memref<1x8x256xf32, #tpu.memory_space<vmem>>, vector<1x8x256xf32>
    %66 = vector.shape_cast %65 : vector<1x8x256xf32> to vector<8x256xf32>
    %67 = vector.shape_cast %64 : vector<8x256xf32> to vector<1x8x256xf32>
    tpu.vector_store %arg6[%c0_28, %c0_29, %c0_30], %67 {strides = array<i32>} : memref<1x8x256xf32, #tpu.memory_space<vmem>>, vector<1x8x256xf32>,
    return
  }
  func.func @transform_0(%arg0: i32, %arg1: i32) -> (i32, i32, i32) {
    %c0_i32 = arith.constant 0 : i32
    %c0_i32_0 = arith.constant 0 : i32
    return %arg0, %c0_i32, %arg1 : i32, i32, i32
  }
  func.func @transform_1(%arg0: i32, %arg1: i32) -> (i32, i32, i32, i32) {
    %c0_i32 = arith.constant 0 : i32
    %c0_i32_0 = arith.constant 0 : i32
    %c0_i32_1 = arith.constant 0 : i32
    return %arg0, %arg1, %c0_i32, %c0_i32_0 : i32, i32, i32, i32
  }
  func.func @transform_2(%arg0: i32, %arg1: i32) -> (i32, i32, i32) {
    %c0_i32 = arith.constant 0 : i32
    %c0_i32_0 = arith.constant 0 : i32
    %c0_i32_1 = arith.constant 0 : i32
    %c0_i32_2 = arith.constant 0 : i32
    return %c0_i32, %c0_i32_0, %c0_i32_1 : i32, i32, i32
  }
  func.func @transform_3(%arg0: i32, %arg1: i32) -> (i32, i32) {
    %c0_i32 = arith.constant 0 : i32
    %c0_i32_0 = arith.constant 0 : i32
    %c0_i32_1 = arith.constant 0 : i32
    return %c0_i32, %c0_i32_0 : i32, i32
  }
  func.func @transform_4(%arg0: i32, %arg1: i32) -> (i32, i32, i32) {
    %c0_i32 = arith.constant 0 : i32
    %c0_i32_0 = arith.constant 0 : i32
    return %arg0, %c0_i32, %arg1 : i32, i32, i32
  }
}

module attributes {stable_mosaic.version = 11 : i64} {
  func.func @_interior_kernel(%arg0: i32, %arg1: i32, %arg2: memref<1x64x64xf32, #tpu.memory_space<vmem>>, %arg3: memref<32x64xf32, #tpu.memory_space<vmem>>, %arg4: memref<32x1xf32, #tpu.memory_space<vmem>>, %arg5: memref<16x32xf32, #tpu.memory_space<vmem>>, %arg6: memref<16x1xf32, #tpu.memory_space<vmem>>, %arg7: memref<1x16x64xf32, #tpu.memory_space<vmem>>) attributes {dimension_semantics = [#tpu.dimension_semantics<parallel>, #tpu.dimension_semantics<parallel>], iteration_bounds = array<i64: 2, 1>, scalar_prefetch = 0 : i64, scratch_operands = 0 : i64, tpu.core_type = #tpu.core_type<tc>, window_params = [{transform_indices = @transform_0, window_bounds = array<i64: 1, 64, 64>}, {pipeline_mode = #tpu.pipeline_mode<synchronous>, transform_indices = @transform_1, window_bounds = array<i64: 32, 64>}, {pipeline_mode = #tpu.pipeline_mode<synchronous>, transform_indices = @transform_2, window_bounds = array<i64: 32, 1>}, {pipeline_mode = #tpu.pipeline_mode<synchronous>, transform_indices = @transform_3, window_bounds = array<i64: 16, 32>}, {pipeline_mode = #tpu.pipeline_mode<synchronous>, transform_indices = @transform_4, window_bounds = array<i64: 16, 1>}, {transform_indices = @transform_5, window_bounds = array<i64: 1, 16, 64>}]} {
    %c0 = arith.constant 0 : index
    %c0_0 = arith.constant 0 : index
    %0 = vector.load %arg3[%c0, %c0_0] : memref<32x64xf32, #tpu.memory_space<vmem>>, vector<32x64xf32>
    %c0_1 = arith.constant 0 : index
    %c0_2 = arith.constant 0 : index
    %c0_3 = arith.constant 0 : index
    %1 = vector.load %arg2[%c0_1, %c0_2, %c0_3] : memref<1x64x64xf32, #tpu.memory_space<vmem>>, vector<1x64x64xf32>
    %2 = vector.shape_cast %1 : vector<1x64x64xf32> to vector<64x64xf32>
    %cst = arith.constant dense<0.000000e+00> : vector<32x64xf32>
    %3 = tpu.matmul %0, %2, %cst {dimension_numbers = #tpu.dot_dimension_numbers<[1], [0], [0], [1], [0, 0, 1, 1], [], []>} : vector<32x64xf32>, vector<64x64xf32>, vector<32x64xf32> -> vector<32x64xf32>
    %c0_4 = arith.constant 0 : index
    %c0_5 = arith.constant 0 : index
    %4 = vector.load %arg4[%c0_4, %c0_5] : memref<32x1xf32, #tpu.memory_space<vmem>>, vector<32x1xf32>
    %5 = vector.broadcast %4 : vector<32x1xf32> to vector<32x64xf32>
    %6 = arith.addf %3, %5 : vector<32x64xf32>
    %cst_6 = arith.constant 5.000000e-01 : f32
    %7 = vector.broadcast %cst_6 : f32 to vector<32x64xf32>
    %8 = arith.mulf %7, %6 : vector<32x64xf32>
    %cst_7 = arith.constant 0.707106769 : f32
    %9 = vector.broadcast %cst_7 : f32 to vector<32x64xf32>
    %10 = arith.mulf %6, %9 : vector<32x64xf32>
    %cst_8 = arith.constant 0.000000e+00 : f32
    %11 = vector.broadcast %cst_8 : f32 to vector<32x64xf32>
    %12 = arith.cmpf oge, %10, %11 : vector<32x64xf32>
    %cst_9 = arith.constant 1.000000e+00 : f32
    %cst_10 = arith.constant -1.000000e+00 : f32
    %13 = vector.broadcast %cst_9 : f32 to vector<32x64xf32>
    %14 = vector.broadcast %cst_10 : f32 to vector<32x64xf32>
    %15 = arith.select %12, %13, %14 : vector<32x64xi1>, vector<32x64xf32>
    %16 = math.absf %10 : vector<32x64xf32>
    %cst_11 = arith.constant 0.327591091 : f32
    %17 = vector.broadcast %cst_11 : f32 to vector<32x64xf32>
    %18 = arith.mulf %17, %16 : vector<32x64xf32>
    %cst_12 = arith.constant 1.000000e+00 : f32
    %19 = vector.broadcast %cst_12 : f32 to vector<32x64xf32>
    %20 = arith.addf %19, %18 : vector<32x64xf32>
    %cst_13 = arith.constant 1.000000e+00 : f32
    %21 = vector.broadcast %cst_13 : f32 to vector<32x64xf32>
    %22 = arith.divf %21, %20 : vector<32x64xf32>
    %cst_14 = arith.constant 1.06140542 : f32
    %23 = vector.broadcast %cst_14 : f32 to vector<32x64xf32>
    %24 = arith.mulf %23, %22 : vector<32x64xf32>
    %cst_15 = arith.constant -1.45315206 : f32
    %25 = vector.broadcast %cst_15 : f32 to vector<32x64xf32>
    %26 = arith.addf %24, %25 : vector<32x64xf32>
    %27 = arith.mulf %26, %22 : vector<32x64xf32>
    %cst_16 = arith.constant 1.42141378 : f32
    %28 = vector.broadcast %cst_16 : f32 to vector<32x64xf32>
    %29 = arith.addf %27, %28 : vector<32x64xf32>
    %30 = arith.mulf %29, %22 : vector<32x64xf32>
    %cst_17 = arith.constant -0.284496725 : f32
    %31 = vector.broadcast %cst_17 : f32 to vector<32x64xf32>
    %32 = arith.addf %30, %31 : vector<32x64xf32>
    %33 = arith.mulf %32, %22 : vector<32x64xf32>
    %cst_18 = arith.constant 0.254829586 : f32
    %34 = vector.broadcast %cst_18 : f32 to vector<32x64xf32>
    %35 = arith.addf %33, %34 : vector<32x64xf32>
    %36 = arith.mulf %35, %22 : vector<32x64xf32>
    %cst_19 = arith.constant 0.000000e+00 : f32
    %37 = vector.broadcast %cst_19 : f32 to vector<32x64xf32>
    %38 = arith.subf %37, %16 : vector<32x64xf32>
    %39 = arith.mulf %38, %16 : vector<32x64xf32>
    %40 = math.exp %39 : vector<32x64xf32>
    %41 = arith.mulf %36, %40 : vector<32x64xf32>
    %cst_20 = arith.constant 1.000000e+00 : f32
    %42 = vector.broadcast %cst_20 : f32 to vector<32x64xf32>
    %43 = arith.subf %42, %41 : vector<32x64xf32>
    %44 = arith.mulf %15, %43 : vector<32x64xf32>
    %cst_21 = arith.constant 1.000000e+00 : f32
    %45 = vector.broadcast %cst_21 : f32 to vector<32x64xf32>
    %46 = arith.addf %45, %44 : vector<32x64xf32>
    %47 = arith.mulf %8, %46 : vector<32x64xf32>
    %c0_22 = arith.constant 0 : index
    %c0_23 = arith.constant 0 : index
    %48 = vector.load %arg5[%c0_22, %c0_23] : memref<16x32xf32, #tpu.memory_space<vmem>>, vector<16x32xf32>
    %cst_24 = arith.constant dense<0.000000e+00> : vector<16x64xf32>
    %49 = tpu.matmul %48, %47, %cst_24 {dimension_numbers = #tpu.dot_dimension_numbers<[1], [0], [0], [1], [0, 0, 1, 1], [], []>} : vector<16x32xf32>, vector<32x64xf32>, vector<16x64xf32> -> vector<16x64xf32>
    %c0_25 = arith.constant 0 : index
    %c0_26 = arith.constant 0 : index
    %50 = vector.load %arg6[%c0_25, %c0_26] : memref<16x1xf32, #tpu.memory_space<vmem>>, vector<16x1xf32>
    %51 = vector.broadcast %50 : vector<16x1xf32> to vector<16x64xf32>
    %52 = arith.addf %49, %51 : vector<16x64xf32>
    %c0_27 = arith.constant 0 : index
    %c0_28 = arith.constant 0 : index
    %c0_29 = arith.constant 0 : index
    %53 = vector.load %arg7[%c0_27, %c0_28, %c0_29] : memref<1x16x64xf32, #tpu.memory_space<vmem>>, vector<1x16x64xf32>
    %54 = vector.shape_cast %53 : vector<1x16x64xf32> to vector<16x64xf32>
    %55 = vector.shape_cast %52 : vector<16x64xf32> to vector<1x16x64xf32>
    tpu.vector_store %arg7[%c0_27, %c0_28, %c0_29], %55 {strides = array<i32>} : memref<1x16x64xf32, #tpu.memory_space<vmem>>, vector<1x16x64xf32>,
    return
  }
  func.func @transform_0(%arg0: i32, %arg1: i32) -> (i32, i32, i32) {
    %c0_i32 = arith.constant 0 : i32
    %c0_i32_0 = arith.constant 0 : i32
    return %arg0, %c0_i32, %arg1 : i32, i32, i32
  }
  func.func @transform_1(%arg0: i32, %arg1: i32) -> (i32, i32) {
    %c0_i32 = arith.constant 0 : i32
    %c0_i32_0 = arith.constant 0 : i32
    %c0_i32_1 = arith.constant 0 : i32
    return %c0_i32, %c0_i32_0 : i32, i32
  }
  func.func @transform_2(%arg0: i32, %arg1: i32) -> (i32, i32) {
    %c0_i32 = arith.constant 0 : i32
    %c0_i32_0 = arith.constant 0 : i32
    %c0_i32_1 = arith.constant 0 : i32
    return %c0_i32, %c0_i32_0 : i32, i32
  }
  func.func @transform_3(%arg0: i32, %arg1: i32) -> (i32, i32) {
    %c0_i32 = arith.constant 0 : i32
    %c0_i32_0 = arith.constant 0 : i32
    %c0_i32_1 = arith.constant 0 : i32
    return %c0_i32, %c0_i32_0 : i32, i32
  }
  func.func @transform_4(%arg0: i32, %arg1: i32) -> (i32, i32) {
    %c0_i32 = arith.constant 0 : i32
    %c0_i32_0 = arith.constant 0 : i32
    %c0_i32_1 = arith.constant 0 : i32
    return %c0_i32, %c0_i32_0 : i32, i32
  }
  func.func @transform_5(%arg0: i32, %arg1: i32) -> (i32, i32, i32) {
    %c0_i32 = arith.constant 0 : i32
    %c0_i32_0 = arith.constant 0 : i32
    return %arg0, %c0_i32, %arg1 : i32, i32, i32
  }
}

module attributes {stable_mosaic.version = 11 : i64} {
  func.func @_conv_kernel(%arg0: i32, %arg1: i32, %arg2: memref<1x16x64xf32, #tpu.memory_space<vmem>>, %arg3: memref<1x1x16x16xf32, #tpu.memory_space<vmem>>, %arg4: memref<3x64x48xf32, #tpu.memory_space<vmem>>, %arg5: memref<64x1xf32, #tpu.memory_space<vmem>>, %arg6: memref<1x64x64xf32, #tpu.memory_space<vmem>>, %arg7: memref<1x1x64x2xf32, #tpu.memory_space<vmem>>) attributes {dimension_semantics = [#tpu.dimension_semantics<parallel>, #tpu.dimension_semantics<parallel>], iteration_bounds = array<i64: 2, 1>, scalar_prefetch = 0 : i64, scratch_operands = 0 : i64, tpu.core_type = #tpu.core_type<tc>, window_params = [{transform_indices = @transform_0, window_bounds = array<i64: 1, 16, 64>}, {transform_indices = @transform_1, window_bounds = array<i64: 1, 1, 16, 16>}, {pipeline_mode = #tpu.pipeline_mode<synchronous>, transform_indices = @transform_2, window_bounds = array<i64: 3, 64, 48>}, {pipeline_mode = #tpu.pipeline_mode<synchronous>, transform_indices = @transform_3, window_bounds = array<i64: 64, 1>}, {transform_indices = @transform_4, window_bounds = array<i64: 1, 64, 64>}, {transform_indices = @transform_5, window_bounds = array<i64: 1, 1, 64, 2>}]} {
    %c0 = arith.constant 0 : index
    %c0_0 = arith.constant 0 : index
    %c0_1 = arith.constant 0 : index
    %c0_2 = arith.constant 0 : index
    %0 = vector.load %arg3[%c0, %c0_0, %c0_1, %c0_2] : memref<1x1x16x16xf32, #tpu.memory_space<vmem>>, vector<1x1x16x8xf32>
    %1 = vector.shape_cast %0 : vector<1x1x16x8xf32> to vector<16x8xf32>
    %c0_3 = arith.constant 0 : index
    %c0_4 = arith.constant 0 : index
    %c0_5 = arith.constant 0 : index
    %c8 = arith.constant 8 : index
    %2 = vector.load %arg3[%c0_3, %c0_4, %c0_5, %c8] : memref<1x1x16x16xf32, #tpu.memory_space<vmem>>, vector<1x1x16x8xf32>
    %3 = vector.shape_cast %2 : vector<1x1x16x8xf32> to vector<16x8xf32>
    %c0_6 = arith.constant 0 : index
    %c0_7 = arith.constant 0 : index
    %c0_8 = arith.constant 0 : index
    %4 = vector.load %arg2[%c0_6, %c0_7, %c0_8] : memref<1x16x64xf32, #tpu.memory_space<vmem>>, vector<1x16x64xf32>
    %5 = vector.shape_cast %4 : vector<1x16x64xf32> to vector<16x64xf32>
    %6 = tpu.concatenate %1, %5, %3 in 1 : vector<16x8xf32>, vector<16x64xf32>, vector<16x8xf32> -> vector<16x80xf32>
    %cst = arith.constant 0.000000e+00 : f32
    %7 = vector.broadcast %cst : f32 to vector<16x1xf32>
    %8 = tpu.iota {dimensions = array<i32: 1>} : vector<16x80xi32>
    %c8_i32 = arith.constant 8 : i32
    %c0_i32 = arith.constant 0 : i32
    %9 = arith.cmpi eq, %c8_i32, %c0_i32 : i32
    %c1_i32 = arith.constant 1 : i32
    %10 = arith.select %9, %c1_i32, %c8_i32 : i32
    %11 = vector.broadcast %10 : i32 to vector<16x80xi32>
    %12 = arith.remsi %8, %11 : vector<16x80xi32>
    %c0_i32_9 = arith.constant 0 : i32
    %13 = vector.broadcast %c0_i32_9 : i32 to vector<16x80xi32>
    %14 = arith.cmpi ne, %12, %13 : vector<16x80xi32>
    %c0_i32_10 = arith.constant 0 : i32
    %15 = vector.broadcast %c0_i32_10 : i32 to vector<16x80xi32>
    %16 = arith.cmpi slt, %12, %15 : vector<16x80xi32>
    %c0_i32_11 = arith.constant 0 : i32
    %17 = arith.cmpi slt, %10, %c0_i32_11 : i32
    %18 = vector.broadcast %17 : i1 to vector<16x80xi1>
    %19 = vector.broadcast %18 : vector<16x80xi1> to vector<16x80xi1>
    %20 = arith.xori %16, %19 : vector<16x80xi1>
    %21 = arith.andi %20, %14 : vector<16x80xi1>
    %22 = vector.broadcast %10 : i32 to vector<16x80xi32>
    %23 = arith.addi %12, %22 : vector<16x80xi32>
    %24 = arith.select %21, %23, %12 : vector<16x80xi1>, vector<16x80xi32>
    %c0_i32_12 = arith.constant 0 : i32
    %25 = vector.broadcast %c0_i32_12 : i32 to vector<16x80xi32>
    %26 = arith.cmpi eq, %24, %25 : vector<16x80xi32>
    %27 = vector.extract_strided_slice %6 {offsets = [0, 0], sizes = [16, 79], strides = [1, 1]} : vector<16x80xf32> to vector<16x79xf32>
    %28 = tpu.concatenate %7, %27 in 1 : vector<16x1xf32>, vector<16x79xf32> -> vector<16x80xf32>
    %cst_13 = arith.constant 0.000000e+00 : f32
    %29 = vector.broadcast %cst_13 : f32 to vector<16x80xf32>
    %30 = arith.select %26, %29, %28 : vector<16x80xi1>, vector<16x80xf32>
    %c7_i32 = arith.constant 7 : i32
    %31 = vector.broadcast %c7_i32 : i32 to vector<16x80xi32>
    %32 = arith.cmpi eq, %24, %31 : vector<16x80xi32>
    %33 = vector.extract_strided_slice %6 {offsets = [0, 1], sizes = [16, 79], strides = [1, 1]} : vector<16x80xf32> to vector<16x79xf32>
    %34 = tpu.concatenate %33, %7 in 1 : vector<16x79xf32>, vector<16x1xf32> -> vector<16x80xf32>
    %cst_14 = arith.constant 0.000000e+00 : f32
    %35 = vector.broadcast %cst_14 : f32 to vector<16x80xf32>
    %36 = arith.select %32, %35, %34 : vector<16x80xi1>, vector<16x80xf32>
    %cst_15 = arith.constant 0.000000e+00 : f32
    %37 = vector.broadcast %cst_15 : f32 to vector<64x64xf32>
    %38 = vector.extract_strided_slice %30 {offsets = [0, 0], sizes = [16, 64], strides = [1, 1]} : vector<16x80xf32> to vector<16x64xf32>
    %39 = vector.extract_strided_slice %6 {offsets = [0, 0], sizes = [16, 64], strides = [1, 1]} : vector<16x80xf32> to vector<16x64xf32>
    %40 = vector.extract_strided_slice %36 {offsets = [0, 0], sizes = [16, 64], strides = [1, 1]} : vector<16x80xf32> to vector<16x64xf32>
    %41 = tpu.concatenate %38, %39, %40 in 0 : vector<16x64xf32>, vector<16x64xf32>, vector<16x64xf32> -> vector<48x64xf32>
    %c0_16 = arith.constant 0 : index
    %c0_17 = arith.constant 0 : index
    %c0_18 = arith.constant 0 : index
    %42 = vector.load %arg4[%c0_16, %c0_17, %c0_18] : memref<3x64x48xf32, #tpu.memory_space<vmem>>, vector<1x64x48xf32>
    %43 = vector.shape_cast %42 : vector<1x64x48xf32> to vector<64x48xf32>
    %cst_19 = arith.constant dense<0.000000e+00> : vector<64x64xf32>
    %44 = tpu.matmul %43, %41, %cst_19 {dimension_numbers = #tpu.dot_dimension_numbers<[1], [0], [0], [1], [0, 0, 1, 1], [], []>} : vector<64x48xf32>, vector<48x64xf32>, vector<64x64xf32> -> vector<64x64xf32>
    %45 = arith.addf %37, %44 : vector<64x64xf32>
    %46 = vector.extract_strided_slice %30 {offsets = [0, 8], sizes = [16, 64], strides = [1, 1]} : vector<16x80xf32> to vector<16x64xf32>
    %47 = vector.extract_strided_slice %6 {offsets = [0, 8], sizes = [16, 64], strides = [1, 1]} : vector<16x80xf32> to vector<16x64xf32>
    %48 = vector.extract_strided_slice %36 {offsets = [0, 8], sizes = [16, 64], strides = [1, 1]} : vector<16x80xf32> to vector<16x64xf32>
    %49 = tpu.concatenate %46, %47, %48 in 0 : vector<16x64xf32>, vector<16x64xf32>, vector<16x64xf32> -> vector<48x64xf32>
    %c1 = arith.constant 1 : index
    %c0_20 = arith.constant 0 : index
    %c0_21 = arith.constant 0 : index
    %50 = vector.load %arg4[%c1, %c0_20, %c0_21] : memref<3x64x48xf32, #tpu.memory_space<vmem>>, vector<1x64x48xf32>
    %51 = vector.shape_cast %50 : vector<1x64x48xf32> to vector<64x48xf32>
    %cst_22 = arith.constant dense<0.000000e+00> : vector<64x64xf32>
    %52 = tpu.matmul %51, %49, %cst_22 {dimension_numbers = #tpu.dot_dimension_numbers<[1], [0], [0], [1], [0, 0, 1, 1], [], []>} : vector<64x48xf32>, vector<48x64xf32>, vector<64x64xf32> -> vector<64x64xf32>
    %53 = arith.addf %45, %52 : vector<64x64xf32>
    %54 = vector.extract_strided_slice %30 {offsets = [0, 16], sizes = [16, 64], strides = [1, 1]} : vector<16x80xf32> to vector<16x64xf32>
    %55 = vector.extract_strided_slice %6 {offsets = [0, 16], sizes = [16, 64], strides = [1, 1]} : vector<16x80xf32> to vector<16x64xf32>
    %56 = vector.extract_strided_slice %36 {offsets = [0, 16], sizes = [16, 64], strides = [1, 1]} : vector<16x80xf32> to vector<16x64xf32>
    %57 = tpu.concatenate %54, %55, %56 in 0 : vector<16x64xf32>, vector<16x64xf32>, vector<16x64xf32> -> vector<48x64xf32>
    %c2 = arith.constant 2 : index
    %c0_23 = arith.constant 0 : index
    %c0_24 = arith.constant 0 : index
    %58 = vector.load %arg4[%c2, %c0_23, %c0_24] : memref<3x64x48xf32, #tpu.memory_space<vmem>>, vector<1x64x48xf32>
    %59 = vector.shape_cast %58 : vector<1x64x48xf32> to vector<64x48xf32>
    %cst_25 = arith.constant dense<0.000000e+00> : vector<64x64xf32>
    %60 = tpu.matmul %59, %57, %cst_25 {dimension_numbers = #tpu.dot_dimension_numbers<[1], [0], [0], [1], [0, 0, 1, 1], [], []>} : vector<64x48xf32>, vector<48x64xf32>, vector<64x64xf32> -> vector<64x64xf32>
    %61 = arith.addf %53, %60 : vector<64x64xf32>
    %c0_26 = arith.constant 0 : index
    %c0_27 = arith.constant 0 : index
    %62 = vector.load %arg5[%c0_26, %c0_27] : memref<64x1xf32, #tpu.memory_space<vmem>>, vector<64x1xf32>
    %63 = vector.broadcast %62 : vector<64x1xf32> to vector<64x64xf32>
    %64 = arith.addf %61, %63 : vector<64x64xf32>
    %c0_28 = arith.constant 0 : index
    %c0_29 = arith.constant 0 : index
    %c0_30 = arith.constant 0 : index
    %65 = vector.load %arg6[%c0_28, %c0_29, %c0_30] : memref<1x64x64xf32, #tpu.memory_space<vmem>>, vector<1x64x64xf32>
    %66 = vector.shape_cast %65 : vector<1x64x64xf32> to vector<64x64xf32>
    %67 = vector.shape_cast %64 : vector<64x64xf32> to vector<1x64x64xf32>
    tpu.vector_store %arg6[%c0_28, %c0_29, %c0_30], %67 {strides = array<i32>} : memref<1x64x64xf32, #tpu.memory_space<vmem>>, vector<1x64x64xf32>,
    %cst_31 = arith.constant dense<0.000000e+00> : vector<64xf32>
    %68 = vector.multi_reduction <add>, %64, %cst_31 [1] : vector<64x64xf32> to vector<64xf32>
    %69 = vector.shape_cast %68 : vector<64xf32> to vector<64x1xf32>
    %70 = arith.mulf %64, %64 : vector<64x64xf32>
    %cst_32 = arith.constant dense<0.000000e+00> : vector<64xf32>
    %71 = vector.multi_reduction <add>, %70, %cst_32 [1] : vector<64x64xf32> to vector<64xf32>
    %72 = vector.shape_cast %71 : vector<64xf32> to vector<64x1xf32>
    %73 = tpu.concatenate %69, %72 in 1 : vector<64x1xf32>, vector<64x1xf32> -> vector<64x2xf32>
    %c0_33 = arith.constant 0 : index
    %c0_34 = arith.constant 0 : index
    %c0_35 = arith.constant 0 : index
    %c0_36 = arith.constant 0 : index
    %74 = vector.load %arg7[%c0_33, %c0_34, %c0_35, %c0_36] : memref<1x1x64x2xf32, #tpu.memory_space<vmem>>, vector<1x1x64x2xf32>
    %75 = vector.shape_cast %74 : vector<1x1x64x2xf32> to vector<64x2xf32>
    %76 = vector.shape_cast %73 : vector<64x2xf32> to vector<1x1x64x2xf32>
    tpu.vector_store %arg7[%c0_33, %c0_34, %c0_35, %c0_36], %76 {strides = array<i32>} : memref<1x1x64x2xf32, #tpu.memory_space<vmem>>, vector<1x1x64x2xf32>,
    return
  }
  func.func @transform_0(%arg0: i32, %arg1: i32) -> (i32, i32, i32) {
    %c0_i32 = arith.constant 0 : i32
    %c0_i32_0 = arith.constant 0 : i32
    return %arg0, %c0_i32, %arg1 : i32, i32, i32
  }
  func.func @transform_1(%arg0: i32, %arg1: i32) -> (i32, i32, i32, i32) {
    %c0_i32 = arith.constant 0 : i32
    %c0_i32_0 = arith.constant 0 : i32
    %c0_i32_1 = arith.constant 0 : i32
    return %arg0, %arg1, %c0_i32, %c0_i32_0 : i32, i32, i32, i32
  }
  func.func @transform_2(%arg0: i32, %arg1: i32) -> (i32, i32, i32) {
    %c0_i32 = arith.constant 0 : i32
    %c0_i32_0 = arith.constant 0 : i32
    %c0_i32_1 = arith.constant 0 : i32
    %c0_i32_2 = arith.constant 0 : i32
    return %c0_i32, %c0_i32_0, %c0_i32_1 : i32, i32, i32
  }
  func.func @transform_3(%arg0: i32, %arg1: i32) -> (i32, i32) {
    %c0_i32 = arith.constant 0 : i32
    %c0_i32_0 = arith.constant 0 : i32
    %c0_i32_1 = arith.constant 0 : i32
    return %c0_i32, %c0_i32_0 : i32, i32
  }
  func.func @transform_4(%arg0: i32, %arg1: i32) -> (i32, i32, i32) {
    %c0_i32 = arith.constant 0 : i32
    %c0_i32_0 = arith.constant 0 : i32
    return %arg0, %c0_i32, %arg1 : i32, i32, i32
  }
  func.func @transform_5(%arg0: i32, %arg1: i32) -> (i32, i32, i32, i32) {
    %c0_i32 = arith.constant 0 : i32
    %c0_i32_0 = arith.constant 0 : i32
    %c0_i32_1 = arith.constant 0 : i32
    return %arg0, %arg1, %c0_i32, %c0_i32_0 : i32, i32, i32, i32
  }
}

module attributes {stable_mosaic.version = 11 : i64} {
  func.func @_bn_res_kernel(%arg0: i32, %arg1: i32, %arg2: memref<1x64x64xf32, #tpu.memory_space<vmem>>, %arg3: memref<1x64x64xf32, #tpu.memory_space<vmem>>, %arg4: memref<64x1xf32, #tpu.memory_space<vmem>>, %arg5: memref<64x1xf32, #tpu.memory_space<vmem>>, %arg6: memref<1x64x64xf32, #tpu.memory_space<vmem>>) attributes {dimension_semantics = [#tpu.dimension_semantics<parallel>, #tpu.dimension_semantics<parallel>], iteration_bounds = array<i64: 2, 1>, scalar_prefetch = 0 : i64, scratch_operands = 0 : i64, tpu.core_type = #tpu.core_type<tc>, window_params = [{transform_indices = @transform_0, window_bounds = array<i64: 1, 64, 64>}, {transform_indices = @transform_1, window_bounds = array<i64: 1, 64, 64>}, {pipeline_mode = #tpu.pipeline_mode<synchronous>, transform_indices = @transform_2, window_bounds = array<i64: 64, 1>}, {pipeline_mode = #tpu.pipeline_mode<synchronous>, transform_indices = @transform_3, window_bounds = array<i64: 64, 1>}, {transform_indices = @transform_4, window_bounds = array<i64: 1, 64, 64>}]} {
    %c0 = arith.constant 0 : index
    %c0_0 = arith.constant 0 : index
    %c0_1 = arith.constant 0 : index
    %0 = vector.load %arg2[%c0, %c0_0, %c0_1] : memref<1x64x64xf32, #tpu.memory_space<vmem>>, vector<1x64x64xf32>
    %1 = vector.shape_cast %0 : vector<1x64x64xf32> to vector<64x64xf32>
    %c0_2 = arith.constant 0 : index
    %c0_3 = arith.constant 0 : index
    %2 = vector.load %arg4[%c0_2, %c0_3] : memref<64x1xf32, #tpu.memory_space<vmem>>, vector<64x1xf32>
    %3 = vector.broadcast %2 : vector<64x1xf32> to vector<64x64xf32>
    %4 = arith.mulf %1, %3 : vector<64x64xf32>
    %c0_4 = arith.constant 0 : index
    %c0_5 = arith.constant 0 : index
    %5 = vector.load %arg5[%c0_4, %c0_5] : memref<64x1xf32, #tpu.memory_space<vmem>>, vector<64x1xf32>
    %6 = vector.broadcast %5 : vector<64x1xf32> to vector<64x64xf32>
    %7 = arith.addf %4, %6 : vector<64x64xf32>
    %c0_6 = arith.constant 0 : index
    %c0_7 = arith.constant 0 : index
    %c0_8 = arith.constant 0 : index
    %8 = vector.load %arg3[%c0_6, %c0_7, %c0_8] : memref<1x64x64xf32, #tpu.memory_space<vmem>>, vector<1x64x64xf32>
    %9 = vector.shape_cast %8 : vector<1x64x64xf32> to vector<64x64xf32>
    %10 = arith.addf %7, %9 : vector<64x64xf32>
    %c0_9 = arith.constant 0 : index
    %c0_10 = arith.constant 0 : index
    %c0_11 = arith.constant 0 : index
    %11 = vector.load %arg6[%c0_9, %c0_10, %c0_11] : memref<1x64x64xf32, #tpu.memory_space<vmem>>, vector<1x64x64xf32>
    %12 = vector.shape_cast %11 : vector<1x64x64xf32> to vector<64x64xf32>
    %13 = vector.shape_cast %10 : vector<64x64xf32> to vector<1x64x64xf32>
    tpu.vector_store %arg6[%c0_9, %c0_10, %c0_11], %13 {strides = array<i32>} : memref<1x64x64xf32, #tpu.memory_space<vmem>>, vector<1x64x64xf32>,
    return
  }
  func.func @transform_0(%arg0: i32, %arg1: i32) -> (i32, i32, i32) {
    %c0_i32 = arith.constant 0 : i32
    %c0_i32_0 = arith.constant 0 : i32
    return %arg0, %c0_i32, %arg1 : i32, i32, i32
  }
  func.func @transform_1(%arg0: i32, %arg1: i32) -> (i32, i32, i32) {
    %c0_i32 = arith.constant 0 : i32
    %c0_i32_0 = arith.constant 0 : i32
    return %arg0, %c0_i32, %arg1 : i32, i32, i32
  }
  func.func @transform_2(%arg0: i32, %arg1: i32) -> (i32, i32) {
    %c0_i32 = arith.constant 0 : i32
    %c0_i32_0 = arith.constant 0 : i32
    %c0_i32_1 = arith.constant 0 : i32
    return %c0_i32, %c0_i32_0 : i32, i32
  }
  func.func @transform_3(%arg0: i32, %arg1: i32) -> (i32, i32) {
    %c0_i32 = arith.constant 0 : i32
    %c0_i32_0 = arith.constant 0 : i32
    %c0_i32_1 = arith.constant 0 : i32
    return %c0_i32, %c0_i32_0 : i32, i32
  }
  func.func @transform_4(%arg0: i32, %arg1: i32) -> (i32, i32, i32) {
    %c0_i32 = arith.constant 0 : i32
    %c0_i32_0 = arith.constant 0 : i32
    return %arg0, %c0_i32, %arg1 : i32, i32, i32
  }
}

module attributes {stable_mosaic.version = 11 : i64} {
  func.func @_bn_res_exp_kernel(%arg0: i32, %arg1: i32, %arg2: memref<1x64x64xf32, #tpu.memory_space<vmem>>, %arg3: memref<1x64x64xf32, #tpu.memory_space<vmem>>, %arg4: memref<64x1xf32, #tpu.memory_space<vmem>>, %arg5: memref<64x1xf32, #tpu.memory_space<vmem>>, %arg6: memref<12x64xf32, #tpu.memory_space<vmem>>, %arg7: memref<12x1xf32, #tpu.memory_space<vmem>>, %arg8: memref<1x12x64xf32, #tpu.memory_space<vmem>>) attributes {dimension_semantics = [#tpu.dimension_semantics<parallel>, #tpu.dimension_semantics<parallel>], iteration_bounds = array<i64: 2, 1>, scalar_prefetch = 0 : i64, scratch_operands = 0 : i64, tpu.core_type = #tpu.core_type<tc>, window_params = [{transform_indices = @transform_0, window_bounds = array<i64: 1, 64, 64>}, {transform_indices = @transform_1, window_bounds = array<i64: 1, 64, 64>}, {pipeline_mode = #tpu.pipeline_mode<synchronous>, transform_indices = @transform_2, window_bounds = array<i64: 64, 1>}, {pipeline_mode = #tpu.pipeline_mode<synchronous>, transform_indices = @transform_3, window_bounds = array<i64: 64, 1>}, {pipeline_mode = #tpu.pipeline_mode<synchronous>, transform_indices = @transform_4, window_bounds = array<i64: 12, 64>}, {pipeline_mode = #tpu.pipeline_mode<synchronous>, transform_indices = @transform_5, window_bounds = array<i64: 12, 1>}, {transform_indices = @transform_6, window_bounds = array<i64: 1, 12, 64>}]} {
    %c0 = arith.constant 0 : index
    %c0_0 = arith.constant 0 : index
    %c0_1 = arith.constant 0 : index
    %0 = vector.load %arg2[%c0, %c0_0, %c0_1] : memref<1x64x64xf32, #tpu.memory_space<vmem>>, vector<1x64x64xf32>
    %1 = vector.shape_cast %0 : vector<1x64x64xf32> to vector<64x64xf32>
    %c0_2 = arith.constant 0 : index
    %c0_3 = arith.constant 0 : index
    %2 = vector.load %arg4[%c0_2, %c0_3] : memref<64x1xf32, #tpu.memory_space<vmem>>, vector<64x1xf32>
    %3 = vector.broadcast %2 : vector<64x1xf32> to vector<64x64xf32>
    %4 = arith.mulf %1, %3 : vector<64x64xf32>
    %c0_4 = arith.constant 0 : index
    %c0_5 = arith.constant 0 : index
    %5 = vector.load %arg5[%c0_4, %c0_5] : memref<64x1xf32, #tpu.memory_space<vmem>>, vector<64x1xf32>
    %6 = vector.broadcast %5 : vector<64x1xf32> to vector<64x64xf32>
    %7 = arith.addf %4, %6 : vector<64x64xf32>
    %c0_6 = arith.constant 0 : index
    %c0_7 = arith.constant 0 : index
    %c0_8 = arith.constant 0 : index
    %8 = vector.load %arg3[%c0_6, %c0_7, %c0_8] : memref<1x64x64xf32, #tpu.memory_space<vmem>>, vector<1x64x64xf32>
    %9 = vector.shape_cast %8 : vector<1x64x64xf32> to vector<64x64xf32>
    %10 = arith.addf %7, %9 : vector<64x64xf32>
    %c0_9 = arith.constant 0 : index
    %c0_10 = arith.constant 0 : index
    %11 = vector.load %arg6[%c0_9, %c0_10] : memref<12x64xf32, #tpu.memory_space<vmem>>, vector<12x64xf32>
    %cst = arith.constant dense<0.000000e+00> : vector<12x64xf32>
    %12 = tpu.matmul %11, %10, %cst {dimension_numbers = #tpu.dot_dimension_numbers<[1], [0], [0], [1], [0, 0, 1, 1], [], []>} : vector<12x64xf32>, vector<64x64xf32>, vector<12x64xf32> -> vector<12x64xf32>
    %c0_11 = arith.constant 0 : index
    %c0_12 = arith.constant 0 : index
    %13 = vector.load %arg7[%c0_11, %c0_12] : memref<12x1xf32, #tpu.memory_space<vmem>>, vector<12x1xf32>
    %14 = vector.broadcast %13 : vector<12x1xf32> to vector<12x64xf32>
    %15 = arith.addf %12, %14 : vector<12x64xf32>
    %c0_13 = arith.constant 0 : index
    %c0_14 = arith.constant 0 : index
    %c0_15 = arith.constant 0 : index
    %16 = vector.load %arg8[%c0_13, %c0_14, %c0_15] : memref<1x12x64xf32, #tpu.memory_space<vmem>>, vector<1x12x64xf32>
    %17 = vector.shape_cast %16 : vector<1x12x64xf32> to vector<12x64xf32>
    %18 = vector.shape_cast %15 : vector<12x64xf32> to vector<1x12x64xf32>
    tpu.vector_store %arg8[%c0_13, %c0_14, %c0_15], %18 {strides = array<i32>} : memref<1x12x64xf32, #tpu.memory_space<vmem>>, vector<1x12x64xf32>,
    return
  }
  func.func @transform_0(%arg0: i32, %arg1: i32) -> (i32, i32, i32) {
    %c0_i32 = arith.constant 0 : i32
    %c0_i32_0 = arith.constant 0 : i32
    return %arg0, %c0_i32, %arg1 : i32, i32, i32
  }
  func.func @transform_1(%arg0: i32, %arg1: i32) -> (i32, i32, i32) {
    %c0_i32 = arith.constant 0 : i32
    %c0_i32_0 = arith.constant 0 : i32
    return %arg0, %c0_i32, %arg1 : i32, i32, i32
  }
  func.func @transform_2(%arg0: i32, %arg1: i32) -> (i32, i32) {
    %c0_i32 = arith.constant 0 : i32
    %c0_i32_0 = arith.constant 0 : i32
    %c0_i32_1 = arith.constant 0 : i32
    return %c0_i32, %c0_i32_0 : i32, i32
  }
  func.func @transform_3(%arg0: i32, %arg1: i32) -> (i32, i32) {
    %c0_i32 = arith.constant 0 : i32
    %c0_i32_0 = arith.constant 0 : i32
    %c0_i32_1 = arith.constant 0 : i32
    return %c0_i32, %c0_i32_0 : i32, i32
  }
  func.func @transform_4(%arg0: i32, %arg1: i32) -> (i32, i32) {
    %c0_i32 = arith.constant 0 : i32
    %c0_i32_0 = arith.constant 0 : i32
    %c0_i32_1 = arith.constant 0 : i32
    return %c0_i32, %c0_i32_0 : i32, i32
  }
  func.func @transform_5(%arg0: i32, %arg1: i32) -> (i32, i32) {
    %c0_i32 = arith.constant 0 : i32
    %c0_i32_0 = arith.constant 0 : i32
    %c0_i32_1 = arith.constant 0 : i32
    return %c0_i32, %c0_i32_0 : i32, i32
  }
  func.func @transform_6(%arg0: i32, %arg1: i32) -> (i32, i32, i32) {
    %c0_i32 = arith.constant 0 : i32
    %c0_i32_0 = arith.constant 0 : i32
    return %arg0, %c0_i32, %arg1 : i32, i32, i32
  }
}

</mosaic_0001>

<bundles_post_ra>
// kernel: wavemix_forward.9
= control target key start
LH: loop header
LB: loop body
LE: loop exit
PB: predicated region body
PF: predicated region fallthrough
CT: control target
= control target key end

     0   :  { %s998_s15 = smov 0   ;;  %s1000_s16 = smov 0   ;;  %s1146_s0 = inlined_call_operand.vmem [shape: f32[2,8,256], index: 0, kind: input, shape index: {}]   ;;  %s1147_s1 = inlined_call_operand.vmem [shape: f32[2,1,8,32], index: 1, kind: input, shape index: {}]   ;;  %s1148_s2 = inlined_call_operand.vmem [shape: f32[3,16,24], index: 2, kind: input, shape index: {}]   ;;  %s1149_s3 = inlined_call_operand.vmem [shape: f32[16,1], index: 3, kind: input, shape index: {}]   ;;  %s1150_s4 = inlined_call_operand.vmem [shape: f32[2,16,256], index: 4, kind: output, shape index: {}]  }
   0x1   :  { %s1002_s17 = smov 0  }
   0x2 LB: > { %s26_s18 = sadd.s32 1, %s959_s16  ;;  %p818_p0 = scmp.ge.s32.totalorder %s963_s17, 1  ;;  %s963_s17 = sphi %s1002_s17, %s14_s17   ;;  %s959_s16 = sphi %s1000_s16, %s1162_s16   ;;  %s955_s15 = sphi %s998_s15, %s1161_s15  }
   0x3   : > { %p28_p1 = scmp.ge.s32.totalorder %s26_s18, 2  ;;  %p197_p2 = scmp.lt.s32.totalorder %s963_s17, 3 }
   0x5   : > { %s1164_s18 = smov (%p28_p1, %s26_s18), 0  ;;  %p198_p3 = pnand %p818_p0, %p197_p2 }
   0x6   : > { %p239_p4 = scmp.lt.s32.totalorder (!%p198_p3), %s955_s15, 1  ;;  %s965_s23 = smov (!%p198_p3), 16   ;;  %vm274_vm0 = vcmask (!%p198_p3), 130048   ;;  %v281_v10 = vlaneseq (!%p198_p3)  ;;  %vm332_vm3 = vcmask (!%p198_p3), 7168   ;;  %vm970_vm7 = vmmov (!%p198_p3), 1   ;;  %v362_v44 = vld [vmem:[%s1148_s2] sm:$0xff] (!%p198_p3) }
   0x7   : > { %201 = sbr.rel (%p198_p3) target bundleno = 622 (0x26e), region = 36  ;;  %s966_s28 = smov (!%p198_p3), 127   ;;  %vm351_vm11 = vcmask (!%p198_p3), 1039360   ;;  %vm357_vm15 = vcmask (!%p198_p3), 252928   ;;  %v971_v43 = vmov (!%p198_p3), 0.0   ;;  %v363_v47 = vld [vmem:[%s1148_s2 + $0x8] sm:$0xff] (!%p198_p3) }
   0x8   : > { %s967_s29 = smov (!%p198_p3), 1   ;;  %s968_s30 = smov (!%p198_p3), 112   ;;  %v282_v11 = vand.u32 (!%p198_p3), 127, %v281_v10  ;;  %475 = vmatprep.mubr.f32.mxu1 (!%p198_p3), %v971_v43  ;;  %558 = vmatprep.mubr.f32.mxu0 (!%p198_p3), %v971_v43  ;;  %v972_v48 = vmov (!%p198_p3), 0   ;;  %v693_v49 = vld [vmem:[%s1149_s3 + $0x8] sm:$0xff] (!%p198_p3)  ;;  %v692_v50 = vld [vmem:[%s1149_s3] sm:$0xff] (!%p198_p3) }
   0x9   : > { %s969_s5 = smov (!%p198_p3), 96   ;;  %939 = vset.pattern.permute.xlu1 (!%p198_p3), %v972_v48  ;;  %940 = vset.pattern.permute.xlu0 (!%p198_p3), %v972_v48  ;;  %v824_v10 = vld [vmem:[%s1148_s2 + $0x10] sm:$0xff] (!%p198_p3)  ;;  %v839_v29 = vld [vmem:[%s1148_s2 + $0x28] sm:$0xff] (!%p198_p3) }
   0xa   : > { %v283_v12 = vadd.s32 (!%p198_p3), 128, %v282_v11  ;;  %v289_v14 = vand.u32 (!%p198_p3), 15, %v282_v11  ;;  %v284_v15 = vadd.s32 (!%p198_p3), 256, %v282_v11 }
   0xc   : > { %v296_v13 = vand.u32 (!%p198_p3), 15, %v283_v12  ;;  %vm1036_vm2 = vcmp.eq.s32.totalorder (!%p198_p3), %v289_v14, 0  ;;  %v303_v18 = vand.u32 (!%p198_p3), 15, %v284_v15  ;;  %vm1062_vm13 = vcmp.eq.s32.totalorder (!%p198_p3), %v289_v14, 15 }
   0xd   : > { %vm830_vm5 = vmneg (!%p198_p3), %vm1036_vm2 }
   0xe   : > { %s1166_s15 = smov (!%p239_p4, %s955_s15), 1  ;;  %vm1032_vm1 = vcmp.eq.s32.totalorder %v296_v13, 0  ;;  %vm1045_vm6 = vcmp.eq.s32.totalorder %v303_v18, 0  ;;  %vm854_vm9 = vmpackc.low %vm970_vm7, %vm830_vm5  ;;  %vm1051_vm10 = vcmp.eq.s32.totalorder %v296_v13, 15 }
   0xf   : > { %s844_s19 = sshll.u32 %s1166_s15, 4  ;;  %s821_s24 = sshll.u32 %s1166_s15, 3  ;;  %vm828_vm4 = vmneg %vm1032_vm1 }
  0x10   : > { %s246_s22 = scalar_lea.vmem %s1146_s0, %s844_s19  ;;  %s254_s27 = scalar_lea.vmem %s1147_s1, %s821_s24  ;;  %vm851_vm8 = vmpackc.low %vm970_vm7, %vm828_vm4 }
  0x11   : > { %v266_v0 = vld [vmem:[%s246_s22] sm:$0xff]  ;;  %v267_v1 = vld [vmem:[%s246_s22 + $0x8] sm:$0xff]  ;;  %vm832_vm12 = vmneg %vm1051_vm10  ;;  %s845_s26 = sshll.u32 %s1166_s15, 5 }
  0x12   : > { %270 = vrot.lane.b32.xlu0 %v266_v0, %s965_s23  ;;  %v265_v3 = vld [vmem:[%s254_s27] sm:$0xff]  ;;  %vm834_vm14 = vmneg %vm1062_vm13 }
  0x16   : > { %272 = vrot.lane.b32.xlu0 %v267_v1, %s965_s23 }
  0x84   : > { %v271_v2 = vpop.permute.xlu0 %270 }
  0x85   : > { %v1026_v5 = vsel %vm274_vm0, %v265_v3, %v271_v2 }
  0x88   : > { %v273_v4 = vpop.permute.xlu0 %272 }
  0x89   : > { %v275_v6 = vsel %vm274_vm0, %v271_v2, %v273_v4  ;;  %v280_v8 = vsel %vm274_vm0, %v273_v4, %v265_v3  ;;  %vm344_vm0 = vcmp.eq.s32.totalorder %v303_v18, 15 }
  0x8a   : > { %347 = vrot.lane.b32.xlu0 %v275_v6, %s966_s28  ;;  %v904_v7 = vpack.i.bf16 %v275_v6, %v1026_v5  ;;  %v909_v9 = vpack.i.bf16 %v280_v8, %v275_v6 }
  0x8c   : > { %905 = vrot.lane.b32.xlu1 %v904_v7, %s967_s29 }
  0x8e   : > { %345 = vrot.lane.b32.xlu0 %v1026_v5, %s966_s28 }
  0x90   : > { %330 = vrot.lane.b32.xlu1 %v280_v8, %s967_s29  ;;  %s263_s29 = scalar_lea.vmem %s1150_s4, %s845_s26 }
  0x92   : > { %910 = vrot.lane.b32.xlu0 %v909_v9, %s968_s30 }
  0x94   : > { %349 = vrot.lane.b32.xlu1 %v280_v8, %s966_s28 }
  0x96   : > { %915 = vrot.lane.b32.xlu0 %v909_v9, %s969_s5 }
  0xfc   : > { %v348_v20 = vpop.permute.xlu0 %347 }
  0xfe   : > { %v906_v19 = vpop.permute.xlu1 %905 }
  0xff   : > { %v908_v21 = vunpack.i.h.bf16 %v906_v19  ;;  %v907_v22 = vunpack.i.l.bf16 %v906_v19  ;;  %v825_v19 = vld [vmem:[%s1148_s2 + $0x18] sm:$0xff] }
 0x100   : > { %v346_v33 = vpop.permute.xlu0 %345 }
 0x101   : > { %v338_v23 = vsel %vm332_vm3, 0.0, %v907_v22  ;;  %v333_v25 = vsel %vm332_vm3, %v907_v22, %v908_v21  ;;  %v352_v39 = vsel %vm351_vm11, %v346_v33, %v348_v20 }
 0x102   : > { %v331_v26 = vpop.permute.xlu1 %330  ;;  %v850_v27 = vpack.c.bf16 %v275_v6, %v333_v25  ;;  %v853_v28 = vpack.c.bf16 %v1026_v5, %v338_v23  ;;  %v340_v32 = vsel %vm1032_vm1, 0.0, %v333_v25  ;;  %v339_v36 = vsel %vm1036_vm2, 0.0, %v338_v23 }
 0x103   : > { %v334_v30 = vsel %vm332_vm3, %v908_v21, %v331_v26  ;;  %v924_v41 = vpack.i.bf16 %v1026_v5, %v339_v36  ;;  %vm404_vm1 = vcmask 195584   ;;  %v359_v45 = vsel %vm1062_vm13, 0.0, %v352_v39 }
 0x104   : > { %v341_v31 = vsel %vm1045_vm6, 0.0, %v334_v30  ;;  %852 = vmatprep.subr.msk.bf16.mxu0 %vm851_vm8, %v850_v27  ;;  %v911_v51 = vpop.permute.xlu0 %910  ;;  %vm391_vm2 = vcmask 916480   ;;  %vm592_vm3 = vcmask 785408  }
 0x105   : > { %855 = vmatpush1.bf16.msk.msra.mxu0 %vm854_vm9, %v853_v28  ;;  %v919_v34 = vpack.i.bf16 %v341_v31, %v340_v32  ;;  %v913_v52 = vunpack.i.h.bf16 %v911_v51  ;;  %v912_v53 = vunpack.i.l.bf16 %v911_v51  ;;  %v838_v28 = vld [vmem:[%s1148_s2 + $0x20] sm:$0xff] }
 0x106   : > { %v350_v37 = vpop.permute.xlu1 %349 }
 0x107   : > { %v353_v38 = vsel %vm351_vm11, %v348_v20, %v350_v37  ;;  %920 = vrot.lane.b32.xlu1 %v919_v34, %s968_s30  ;;  %v358_v42 = vsel %vm357_vm15, %v350_v37, 0.0  ;;  %v395_v59 = vsel %vm391_vm2, %v912_v53, %v913_v52 }
 0x108   : > { %833 = vmatprep.subr.msk.mxu0 %vm832_vm12, %v353_v38  ;;  %v360_v40 = vsel %vm1051_vm10, 0.0, %v353_v38  ;;  %v361_v46 = vsel %vm344_vm0, 0.0, %v358_v42  ;;  %v916_v54 = vpop.permute.xlu0 %915 }
 0x109   : > { %387 = vrot.lane.b32.xlu0 %v360_v40, %s968_s30  ;;  %835 = vmatpush1.msk.msra.mxu0 %vm834_vm14, %v352_v39  ;;  %v918_v7 = vunpack.i.h.bf16 %v916_v54  ;;  %v917_v8 = vunpack.i.l.bf16 %v916_v54 }
 0x10a   : > { %836 = vmatmul.mubr.msk.f32.vlgmr.msra.gmra.mrb[0].mxu0 %vm404_vm1, %v362_v44 }
 0x10b   : > { %925 = vrot.lane.b32.xlu1 %v924_v41, %s968_s30  ;;  %564 = vmatprep.mubr.f32.mxu0 %v971_v43  ;;  %v596_v15 = vsel %vm592_vm3, %v917_v8, %v918_v7 }
 0x10d   : > { %385 = vrot.lane.b32.xlu0 %v359_v45, %s968_s30 }
 0x10e   : > { %837 = vmatmul.mubr.msk.f32.gmra.mrb[2].mxu0 %vm404_vm1, %v363_v47 }
 0x10f   : > { %389 = vrot.lane.b32.xlu1 %v361_v46, %s968_s30  ;;  %675 = vmatprep.mubr.f32.mxu0 %v971_v43 }
 0x111   : > { %588 = vrot.lane.b32.xlu0 %v360_v40, %s969_s5 }
 0x113   : > { %930 = vrot.lane.b32.xlu1 %v919_v34, %s969_s5 }
 0x115   : > { %586 = vrot.lane.b32.xlu0 %v359_v45, %s969_s5 }
 0x117   : > { %935 = vrot.lane.b32.xlu1 %v924_v41, %s969_s5 }
 0x119   : > { %701 = vperm.xlu0 %940, %v693_v49  }
 0x11b   : > { %590 = vrot.lane.b32.xlu1 %v361_v46, %s969_s5 }
 0x11f   : > { %696 = vperm.xlu1 %939, %v692_v50  }
 0x179   : > { %v921_v55 = vpop.permute.xlu1 %920 }
 0x17a   : > { %v923_v56 = vunpack.i.h.bf16 %v921_v55  ;;  %v922_v57 = vunpack.i.l.bf16 %v921_v55 }
 0x17b   : > { %v388_v60 = vpop.permute.xlu0 %387 }
 0x17c   : > { %v393_v58 = vsel %vm391_vm2, %v922_v57, %v923_v56 }
 0x17d   : > { %v926_v61 = vpop.permute.xlu1 %925  ;;  %v846_v62 = vpack.c.bf16 %v395_v59, %v393_v58 }
 0x17e   : > { %v928_v63 = vunpack.i.h.bf16 %v926_v61  ;;  %v927_v0 = vunpack.i.l.bf16 %v926_v61 }
 0x17f   : > { %847 = vmatprep.subr.bf16.mxu1 %v846_v62  ;;  %v386_v6 = vpop.permute.xlu0 %385 }
 0x180   : > { %v392_v1 = vsel %vm391_vm2, %v927_v0, %v922_v57  ;;  %v394_v2 = vsel %vm391_vm2, %v928_v63, %v912_v53  ;;  %v396_v13 = vsel %vm391_vm2, %v386_v6, %v388_v60 }
 0x181   : > { %v390_v3 = vpop.permute.xlu1 %389  ;;  %v848_v4 = vpack.c.bf16 %v394_v2, %v392_v1 }
 0x182   : > { %v397_v5 = vsel %vm391_vm2, %v388_v60, %v390_v3 }
 0x183   : > { %849 = vmatpush1.bf16.msra.mxu1 %v848_v4  ;;  %v589_v16 = vpop.permute.xlu0 %588 }
 0x184   : > { %415 = vmatprep.subr.mxu1 %v397_v5 }
 0x185   : > { %v931_v9 = vpop.permute.xlu1 %930 }
 0x186   : > { %v933_v11 = vunpack.i.h.bf16 %v931_v9  ;;  %v932_v12 = vunpack.i.l.bf16 %v931_v9 }
 0x187   : > { %416 = vmatpush1.msra.mxu1 %v396_v13  ;;  %v587_v27 = vpop.permute.xlu0 %586 }
 0x188   : > { %v594_v14 = vsel %vm592_vm3, %v932_v12, %v933_v11  ;;  %826 = vmatmul.mubr.msk.f32.vlgmr.msra.gmra.mrb[0].mxu1 %vm404_vm1, %v824_v10  ;;  %v597_v30 = vsel %vm592_vm3, %v587_v27, %v589_v16 }
 0x189   : > { %v936_v17 = vpop.permute.xlu1 %935  ;;  %v856_v18 = vpack.c.bf16 %v596_v15, %v594_v14  ;;  %481 = vmatprep.mubr.f32.mxu1 %v971_v43 }
 0x18a   : > { %v938_v20 = vunpack.i.h.bf16 %v936_v17  ;;  %v937_v21 = vunpack.i.l.bf16 %v936_v17 }
 0x18b   : > { %857 = vmatprep.subr.bf16.mxu0 %v856_v18  ;;  %860 = vmatprep.subr.bf16.mxu1 %v856_v18 }
 0x18c   : > { %v595_v22 = vsel %vm592_vm3, %v938_v20, %v917_v8  ;;  %v593_v23 = vsel %vm592_vm3, %v937_v21, %v932_v12  ;;  %827 = vmatmul.mubr.msk.f32.gmra.mrb[2].mxu1 %vm404_vm1, %v825_v19 }
 0x18d   : > { %v858_v24 = vpack.c.bf16 %v595_v22, %v593_v23  ;;  %v591_v25 = vpop.permute.xlu1 %590  ;;  %681 = vmatprep.mubr.f32.mxu1 %v971_v43 }
 0x18e   : > { %v598_v26 = vsel %vm592_vm3, %v589_v16, %v591_v25 }
 0x18f   : > { %859 = vmatpush1.bf16.msra.mxu0 %v858_v24  ;;  %862 = vmatpush1.bf16.msra.mxu1 %v858_v24 }
 0x190   : > { %615 = vmatprep.subr.mxu0 %v598_v26  ;;  %861 = vmatprep.subr.mxu1 %v598_v26 }
 0x193   : > { %616 = vmatpush1.msra.mxu0 %v597_v30  ;;  %863 = vmatpush1.msra.mxu1 %v597_v30 }
 0x194   : > { %840 = vmatmul.mubr.msk.f32.vlgmr.msra.gmra.mrb[0].mxu0 %vm404_vm1, %v838_v28  ;;  %841 = vmatmul.mubr.msk.f32.vlgmr.msra.gmra.mrb[4].mxu1 %vm404_vm1, %v839_v29 }
 0x198   : > { %v702_v40 = vpop.permute.xlu0 %701 }
 0x19e   : > { %v697_v39 = vpop.permute.xlu1 %696 }
 0x1e1   : > { %v566_v31 = vpop.f32.mrb[2].mxu0 }
 0x1e2   : > { %v568_v32 = vpop.f32.mrb[3].mxu0 }
 0x25b   : > { %v477_v33 = vpop.f32.mrb[0].mxu1 }
 0x25c   : > { %v479_v34 = vpop.f32.mrb[1].mxu1 }
 0x25f   : > { %v483_v35 = vpop.f32.mrb[2].mxu1 }
 0x260   : > { %v567_v36 = vadd.f32 %v566_v31, %v483_v35  ;;  %v485_v37 = vpop.f32.mrb[3].mxu1 }
 0x261   : > { %v569_v38 = vadd.f32 %v568_v32, %v485_v37 }
 0x267   : > { %v677_v41 = vpop.f32.mrb[0].mxu0  ;;  %v683_v42 = vpop.f32.mrb[4].mxu1 }
 0x268   : > { %v864_v43 = vadd.f32 %v677_v41, %v477_v33  ;;  %v690_v44 = vadd.f32 %v683_v42, %v567_v36  ;;  %v679_v45 = vpop.f32.mrb[1].mxu0  ;;  %v685_v46 = vpop.f32.mrb[5].mxu1 }
 0x269   : > { %v865_v47 = vadd.f32 %v679_v45, %v479_v34  ;;  %v691_v48 = vadd.f32 %v685_v46, %v569_v38 }
 0x26a   : > { %v704_v49 = vadd.f32 %v864_v43, %v697_v39  ;;  %v706_v50 = vadd.f32 %v702_v40, %v690_v44 }
 0x26b   : > { %v705_v51 = vadd.f32 %v865_v47, %v697_v39  ;;  %v707_v52 = vadd.f32 %v702_v40, %v691_v48 }
 0x26c   : > { %708 = vst [vmem:[%s263_s29] sm:$0xff] %v704_v49  ;;  %710 = vst [vmem:[%s263_s29 + $0x10] sm:$0xff] %v706_v50 }
 0x26d   : > { %709 = vst [vmem:[%s263_s29 + $0x8] sm:$0xff] %v705_v51  ;;  %711 = vst [vmem:[%s263_s29 + $0x18] sm:$0xff] %v707_v52 }
 0x26e PF: > { %s14_s17 = sadd.s32 1, %s963_s17   ;;  %s1161_s15 = smov %s959_s16 }
 0x26f   : > { %p11_p5 = scmp.ge.s32.totalorder %s14_s17, 4   ;;  %s1162_s16 = smov %s1164_s18 }
 0x271   :  { %13 = sbr.rel (!%p11_p5) target bundleno = 2 (0x2), region = 71 }

// kernel: wavemix_forward.8
= control target key start
LH: loop header
LB: loop body
LE: loop exit
PB: predicated region body
PF: predicated region fallthrough
CT: control target
= control target key end

     0   :  { %s943_s15 = smov 0   ;;  %s945_s16 = smov 0   ;;  %s1069_s0 = inlined_call_operand.vmem [shape: f32[2,8,256], index: 0, kind: input, shape index: {}]   ;;  %s1070_s1 = inlined_call_operand.vmem [shape: f32[2,1,8,32], index: 1, kind: input, shape index: {}]   ;;  %s1071_s2 = inlined_call_operand.vmem [shape: f32[3,8,24], index: 2, kind: input, shape index: {}]   ;;  %s1072_s3 = inlined_call_operand.vmem [shape: f32[8,1], index: 3, kind: input, shape index: {}]   ;;  %s1073_s4 = inlined_call_operand.vmem [shape: f32[2,8,256], index: 4, kind: output, shape index: {}]  }
   0x1   :  { %s947_s17 = smov 0  }
   0x2 LB: > { %s26_s18 = sadd.s32 1, %s904_s16  ;;  %p776_p0 = scmp.ge.s32.totalorder %s908_s17, 1  ;;  %s908_s17 = sphi %s947_s17, %s14_s17   ;;  %s904_s16 = sphi %s945_s16, %s1085_s16   ;;  %s900_s15 = sphi %s943_s15, %s1084_s15  }
   0x3   : > { %p28_p1 = scmp.ge.s32.totalorder %s26_s18, 2  ;;  %p197_p2 = scmp.lt.s32.totalorder %s908_s17, 3 }
   0x5   : > { %s1087_s18 = smov (%p28_p1, %s26_s18), 0  ;;  %p198_p3 = pnand %p776_p0, %p197_p2 }
   0x6   : > { %p239_p4 = scmp.lt.s32.totalorder (!%p198_p3), %s900_s15, 1  ;;  %s910_s23 = smov (!%p198_p3), 16   ;;  %vm274_vm0 = vcmask (!%p198_p3), 130048   ;;  %v281_v10 = vlaneseq (!%p198_p3)  ;;  %vm332_vm3 = vcmask (!%p198_p3), 7168   ;;  %vm915_vm7 = vmmov (!%p198_p3), 1   ;;  %v362_v42 = vld [vmem:[%s1071_s2] sm:$0xff] (!%p198_p3) }
   0x7   : > { %201 = sbr.rel (%p198_p3) target bundleno = 618 (0x26a), region = 36  ;;  %s911_s28 = smov (!%p198_p3), 127   ;;  %vm357_vm11 = vcmask (!%p198_p3), 252928   ;;  %vm351_vm12 = vcmask (!%p198_p3), 1039360   ;;  %v916_v39 = vmov (!%p198_p3), 0.0   ;;  %v917_v46 = vmov (!%p198_p3), 0  }
   0x8   : > { %s912_s29 = smov (!%p198_p3), 1   ;;  %s913_s30 = smov (!%p198_p3), 112   ;;  %v282_v11 = vand.u32 (!%p198_p3), 127, %v281_v10  ;;  %544 = vmatprep.mubr.f32.mxu0 (!%p198_p3), %v916_v39  ;;  %470 = vmatprep.mubr.f32.mxu1 (!%p198_p3), %v916_v39  ;;  %v660_v48 = vld [vmem:[%s1072_s3] sm:$0xff] (!%p198_p3) }
   0x9   : > { %s914_s5 = smov (!%p198_p3), 96   ;;  %884 = vset.pattern.permute.xlu1 (!%p198_p3), %v917_v46  ;;  %885 = vset.pattern.permute.xlu0 (!%p198_p3), %v917_v46 }
   0xa   : > { %v283_v12 = vadd.s32 (!%p198_p3), 128, %v282_v11  ;;  %v289_v14 = vand.u32 (!%p198_p3), 15, %v282_v11  ;;  %v284_v15 = vadd.s32 (!%p198_p3), 256, %v282_v11 }
   0xc   : > { %v296_v13 = vand.u32 (!%p198_p3), 15, %v283_v12  ;;  %vm979_vm2 = vcmp.eq.s32.totalorder (!%p198_p3), %v289_v14, 0  ;;  %v303_v18 = vand.u32 (!%p198_p3), 15, %v284_v15  ;;  %vm1007_vm15 = vcmp.eq.s32.totalorder (!%p198_p3), %v289_v14, 15 }
   0xd   : > { %vm786_vm5 = vmneg (!%p198_p3), %vm979_vm2 }
   0xe   : > { %s1089_s15 = smov (!%p239_p4, %s900_s15), 1  ;;  %vm975_vm1 = vcmp.eq.s32.totalorder %v296_v13, 0  ;;  %vm988_vm6 = vcmp.eq.s32.totalorder %v303_v18, 0  ;;  %vm807_vm9 = vmpackc.low %vm915_vm7, %vm786_vm5  ;;  %vm995_vm10 = vcmp.eq.s32.totalorder %v296_v13, 15  ;;  %vm344_vm14 = vcmp.eq.s32.totalorder %v303_v18, 15 }
   0xf   : > { %s797_s19 = sshll.u32 %s1089_s15, 4  ;;  %s779_s24 = sshll.u32 %s1089_s15, 3  ;;  %vm784_vm4 = vmneg %vm975_vm1 }
  0x10   : > { %s246_s22 = scalar_lea.vmem %s1069_s0, %s797_s19  ;;  %s254_s27 = scalar_lea.vmem %s1070_s1, %s779_s24  ;;  %vm804_vm8 = vmpackc.low %vm915_vm7, %vm784_vm4 }
  0x11   : > { %v266_v0 = vld [vmem:[%s246_s22] sm:$0xff]  ;;  %v267_v1 = vld [vmem:[%s246_s22 + $0x8] sm:$0xff]  ;;  %vm788_vm13 = vmneg %vm995_vm10  ;;  %s263_s21 = scalar_lea.vmem %s1073_s4, %s797_s19 }
  0x12   : > { %270 = vrot.lane.b32.xlu0 %v266_v0, %s910_s23  ;;  %v265_v3 = vld [vmem:[%s254_s27] sm:$0xff] }
  0x16   : > { %272 = vrot.lane.b32.xlu0 %v267_v1, %s910_s23 }
  0x84   : > { %v271_v2 = vpop.permute.xlu0 %270 }
  0x85   : > { %v279_v5 = vsel %vm274_vm0, %v265_v3, %v271_v2 }
  0x88   : > { %v273_v4 = vpop.permute.xlu0 %272 }
  0x89   : > { %v275_v6 = vsel %vm274_vm0, %v271_v2, %v273_v4  ;;  %v280_v8 = vsel %vm274_vm0, %v273_v4, %v265_v3  ;;  %vm790_vm0 = vmneg %vm1007_vm15 }
  0x8a   : > { %347 = vrot.lane.b32.xlu0 %v275_v6, %s911_s28  ;;  %v849_v7 = vpack.i.bf16 %v275_v6, %v279_v5  ;;  %v854_v9 = vpack.i.bf16 %v280_v8, %v275_v6 }
  0x8c   : > { %850 = vrot.lane.b32.xlu1 %v849_v7, %s912_s29 }
  0x8e   : > { %345 = vrot.lane.b32.xlu0 %v279_v5, %s911_s28 }
  0x90   : > { %330 = vrot.lane.b32.xlu1 %v280_v8, %s912_s29 }
  0x92   : > { %855 = vrot.lane.b32.xlu0 %v854_v9, %s913_s30 }
  0x94   : > { %349 = vrot.lane.b32.xlu1 %v280_v8, %s911_s28 }
  0x96   : > { %860 = vrot.lane.b32.xlu0 %v854_v9, %s914_s5 }
  0xfc   : > { %v348_v20 = vpop.permute.xlu0 %347 }
  0xfe   : > { %v851_v19 = vpop.permute.xlu1 %850 }
  0xff   : > { %v853_v21 = vunpack.i.h.bf16 %v851_v19  ;;  %v852_v22 = vunpack.i.l.bf16 %v851_v19 }
 0x100   : > { %v346_v35 = vpop.permute.xlu0 %345 }
 0x101   : > { %v338_v23 = vsel %vm332_vm3, 0.0, %v852_v22  ;;  %v333_v25 = vsel %vm332_vm3, %v852_v22, %v853_v21  ;;  %v352_v43 = vsel %vm351_vm12, %v346_v35, %v348_v20 }
 0x102   : > { %v339_v26 = vsel %vm979_vm2, 0.0, %v338_v23  ;;  %v331_v27 = vpop.permute.xlu1 %330  ;;  %v803_v28 = vpack.c.bf16 %v275_v6, %v333_v25  ;;  %v806_v29 = vpack.c.bf16 %v279_v5, %v338_v23  ;;  %v340_v34 = vsel %vm975_vm1, 0.0, %v333_v25  ;;  %v793_v23 = vld [vmem:[%s1071_s2 + $0x10] sm:$0xff]  ;;  %v782_v25 = vld [vmem:[%s1071_s2 + $0x8] sm:$0xff] }
 0x103   : > { %v334_v31 = vsel %vm332_vm3, %v853_v21, %v331_v27  ;;  %v879_v32 = vpack.i.bf16 %v279_v5, %v339_v26  ;;  %vm402_vm1 = vcmask 195584   ;;  %v359_v45 = vsel %vm1007_vm15, 0.0, %v352_v43 }
 0x104   : > { %v341_v33 = vsel %vm988_vm6, 0.0, %v334_v31  ;;  %805 = vmatprep.subr.msk.bf16.mxu0 %vm804_vm8, %v803_v28  ;;  %v856_v49 = vpop.permute.xlu0 %855  ;;  %vm389_vm2 = vcmask 916480   ;;  %vm571_vm3 = vcmask 785408  }
 0x105   : > { %880 = vrot.lane.b32.xlu0 %v879_v32, %s914_s5  ;;  %808 = vmatpush1.bf16.msk.msra.mxu0 %vm807_vm9, %v806_v29  ;;  %v864_v36 = vpack.i.bf16 %v341_v33, %v340_v34  ;;  %v858_v51 = vunpack.i.h.bf16 %v856_v49  ;;  %v857_v52 = vunpack.i.l.bf16 %v856_v49 }
 0x106   : > { %v350_v38 = vpop.permute.xlu1 %349 }
 0x107   : > { %v353_v40 = vsel %vm351_vm12, %v348_v20, %v350_v38  ;;  %v358_v41 = vsel %vm357_vm11, %v350_v38, 0.0  ;;  %865 = vrot.lane.b32.xlu1 %v864_v36, %s913_s30  ;;  %v393_v57 = vsel %vm389_vm2, %v857_v52, %v858_v51 }
 0x108   : > { %789 = vmatprep.subr.msk.mxu0 %vm788_vm13, %v353_v40  ;;  %v361_v44 = vsel %vm344_vm14, 0.0, %v358_v41  ;;  %v360_v47 = vsel %vm995_vm10, 0.0, %v353_v40  ;;  %v861_v50 = vpop.permute.xlu0 %860 }
 0x109   : > { %387 = vrot.lane.b32.xlu0 %v361_v44, %s913_s30  ;;  %791 = vmatpush1.msk.msra.mxu0 %vm790_vm0, %v352_v43  ;;  %v863_v58 = vunpack.i.h.bf16 %v861_v50  ;;  %v862_v59 = vunpack.i.l.bf16 %v861_v50 }
 0x10a   : > { %792 = vmatmul.mubr.msk.f32.vlgmr.msra.gmra.mrb[0].mxu0 %vm402_vm1, %v362_v42 }
 0x10b   : > { %870 = vrot.lane.b32.xlu1 %v864_v36, %s914_s5  ;;  %651 = vmatprep.mubr.f32.mxu0 %v916_v39  ;;  %v575_v7 = vsel %vm571_vm3, %v862_v59, %v863_v58 }
 0x10d   : > { %569 = vrot.lane.b32.xlu0 %v361_v44, %s914_s5 }
 0x10f   : > { %875 = vrot.lane.b32.xlu1 %v879_v32, %s913_s30 }
 0x111   : > { %565 = vrot.lane.b32.xlu0 %v359_v45, %s914_s5 }
 0x113   : > { %385 = vrot.lane.b32.xlu1 %v360_v47, %s913_s30 }
 0x117   : > { %567 = vrot.lane.b32.xlu1 %v360_v47, %s914_s5 }
 0x11b   : > { %383 = vrot.lane.b32.xlu1 %v359_v45, %s913_s30 }
 0x11f   : > { %663 = vperm.xlu1 %884, %v660_v48  }
 0x177   : > { %v881_v53 = vpop.permute.xlu0 %880 }
 0x178   : > { %v883_v60 = vunpack.i.h.bf16 %v881_v53  ;;  %v882_v1 = vunpack.i.l.bf16 %v881_v53 }
 0x179   : > { %v866_v54 = vpop.permute.xlu1 %865 }
 0x17a   : > { %v868_v55 = vunpack.i.h.bf16 %v866_v54  ;;  %v867_v56 = vunpack.i.l.bf16 %v866_v54  ;;  %v574_v4 = vsel %vm571_vm3, %v883_v60, %v862_v59 }
 0x17b   : > { %v388_v62 = vpop.permute.xlu0 %387 }
 0x17c   : > { %v391_v61 = vsel %vm389_vm2, %v867_v56, %v868_v55 }
 0x17d   : > { %v871_v63 = vpop.permute.xlu1 %870  ;;  %v799_v0 = vpack.c.bf16 %v393_v57, %v391_v61 }
 0x17e   : > { %v873_v2 = vunpack.i.h.bf16 %v871_v63  ;;  %v872_v3 = vunpack.i.l.bf16 %v871_v63 }
 0x17f   : > { %800 = vmatprep.subr.bf16.mxu1 %v799_v0  ;;  %v570_v13 = vpop.permute.xlu0 %569 }
 0x180   : > { %v572_v5 = vsel %vm571_vm3, %v882_v1, %v872_v3  ;;  %v573_v6 = vsel %vm571_vm3, %v872_v3, %v873_v2 }
 0x181   : > { %v811_v8 = vpack.c.bf16 %v574_v4, %v572_v5  ;;  %v876_v9 = vpop.permute.xlu1 %875  ;;  %v809_v10 = vpack.c.bf16 %v575_v7, %v573_v6 }
 0x182   : > { %v878_v11 = vunpack.i.h.bf16 %v876_v9  ;;  %v877_v12 = vunpack.i.l.bf16 %v876_v9 }
 0x183   : > { %810 = vmatprep.subr.bf16.mxu0 %v809_v10  ;;  %v566_v19 = vpop.permute.xlu0 %565 }
 0x184   : > { %812 = vmatpush1.bf16.msra.mxu0 %v811_v8  ;;  %v390_v14 = vsel %vm389_vm2, %v877_v12, %v867_v56  ;;  %v392_v15 = vsel %vm389_vm2, %v878_v11, %v857_v52 }
 0x185   : > { %v386_v16 = vpop.permute.xlu1 %385  ;;  %v801_v17 = vpack.c.bf16 %v392_v15, %v390_v14 }
 0x186   : > { %v395_v18 = vsel %vm389_vm2, %v386_v16, %v388_v62 }
 0x187   : > { %802 = vmatpush1.bf16.msra.mxu1 %v801_v17 }
 0x188   : > { %410 = vmatprep.subr.mxu1 %v395_v18 }
 0x189   : > { %v568_v20 = vpop.permute.xlu1 %567 }
 0x18a   : > { %v576_v21 = vsel %vm571_vm3, %v566_v19, %v568_v20  ;;  %v577_v22 = vsel %vm571_vm3, %v568_v20, %v570_v13 }
 0x18b   : > { %591 = vmatprep.subr.mxu0 %v577_v22 }
 0x18c   : > { %592 = vmatpush1.msra.mxu0 %v576_v21 }
 0x18d   : > { %v384_v24 = vpop.permute.xlu1 %383  ;;  %794 = vmatmul.mubr.msk.f32.vlgmr.msra.gmra.mrb[0].mxu0 %vm402_vm1, %v793_v23 }
 0x18e   : > { %v394_v26 = vsel %vm389_vm2, %v384_v24, %v386_v16 }
 0x18f   : > { %411 = vmatpush1.msra.mxu1 %v394_v26 }
 0x190   : > { %783 = vmatmul.mubr.msk.f32.vlgmr.msra.gmra.mrb[0].mxu1 %vm402_vm1, %v782_v25 }
 0x19e   : > { %v664_v30 = vpop.permute.xlu1 %663 }
 0x260   : > { %v653_v27 = vpop.f32.mrb[0].mxu0 }
 0x261   : > { %v655_v28 = vpop.f32.mrb[1].mxu0 }
 0x263   : > { %v472_v29 = vpop.f32.mrb[0].mxu1 }
 0x264   : > { %v813_v31 = vadd.f32 %v653_v27, %v472_v29  ;;  %v474_v32 = vpop.f32.mrb[1].mxu1 }
 0x265   : > { %v814_v33 = vadd.f32 %v655_v28, %v474_v32 }
 0x266   : > { %v666_v34 = vadd.f32 %v813_v31, %v664_v30 }
 0x267   : > { %v667_v35 = vadd.f32 %v814_v33, %v664_v30 }
 0x268   : > { %668 = vst [vmem:[%s263_s21] sm:$0xff] %v666_v34 }
 0x269   : > { %669 = vst [vmem:[%s263_s21 + $0x8] sm:$0xff] %v667_v35 }
 0x26a PF: > { %s14_s17 = sadd.s32 1, %s908_s17   ;;  %s1084_s15 = smov %s904_s16 }
 0x26b   : > { %p11_p5 = scmp.ge.s32.totalorder %s14_s17, 4   ;;  %s1085_s16 = smov %s1087_s18 }
 0x26d   :  { %13 = sbr.rel (!%p11_p5) target bundleno = 2 (0x2), region = 71 }

// kernel: tile.23
= control target key start
LH: loop header
LB: loop body
LE: loop exit
PB: predicated region body
PF: predicated region fallthrough
CT: control target
= control target key end

     0   :  { %s22_s0 = inlined_call_operand.vmem [shape: f32[16], index: 0, kind: input, shape index: {}]   ;;  %s23_s1 = inlined_call_operand.vmem [shape: f32[4,16], index: 1, kind: output, shape index: {}]  }
   0x1   :  { %v4_v0 = vld [vmem:[%s22_s0] ss:$0 sm:$0xff] }
   0x2   :  { %5 = vst [vmem:[%s23_s1] sm:$0xf] %v4_v0 }

// kernel: tile.0
= control target key start
LH: loop header
LB: loop body
LE: loop exit
PB: predicated region body
PF: predicated region fallthrough
CT: control target
= control target key end

     0   :  { %s176_s8 = smov 125   ;;  %s177_s9 = smov 126   ;;  %vm7_vm0 = vcmask 7168   ;;  %s331_s0 = inlined_call_operand.vmem [shape: f32[4,16], index: 0, kind: input, shape index: {}]   ;;  %s332_s1 = inlined_call_operand.vmem [shape: f32[64,1], index: 1, kind: output, shape index: {}]  }
   0x1   :  { %v4_v0 = vld [vmem:[%s331_s0] sm:$0xf]  ;;  %s175_s0 = smov 127   ;;  %s178_s10 = smov 124  }
   0x2   :  { %5 = vst [vmem:[#allocation0] sm:$0xf] %v4_v0  ;;  %s179_s11 = smov 123   ;;  %s180_s12 = smov 122  }
   0x3   :  { %s181_s13 = smov 121   ;;  %s182_s14 = smov 120  }
   0x4   :  { %s183_s19 = smov 119   ;;  %s184_s20 = smov 118  }
   0x5   :  { %s185_s21 = smov 117   ;;  %s186_s22 = smov 116  }
   0x6   :  { %s187_s23 = smov 115   ;;  %s188_s24 = smov 114  }
   0x7   :  { %s189_s25 = smov 113  }
   0x9   :  { %v10_v1 = vld [vmem:[#allocation0] sm:$0xf]  }
   0xa   :  { %v26_v2 = vld [vmem:[#allocation0] sm:$0xf]   ;;  %11 = vrot.lane.b32.xlu0 %v10_v1, %s175_s0 }
   0xb   :  { %27 = vrot.lane.b32.xlu1 %v26_v2, %s176_s8  ;;  %v18_v3 = vld [vmem:[#allocation0] sm:$0xf]  }
   0xc   :  { %v34_v4 = vld [vmem:[#allocation0] sm:$0xf]  }
   0xd   :  { %v42_v5 = vld [vmem:[#allocation0] sm:$0xf]  }
   0xe   :  { %19 = vrot.lane.b32.xlu0 %v18_v3, %s177_s9  ;;  %v50_v6 = vld [vmem:[#allocation0] sm:$0xf]  }
   0xf   :  { %35 = vrot.lane.b32.xlu1 %v34_v4, %s178_s10  ;;  %v58_v7 = vld [vmem:[#allocation0] sm:$0xf]  }
  0x10   :  { %v66_v8 = vld [vmem:[#allocation0] sm:$0xf]  }
  0x11   :  { %v74_v9 = vld [vmem:[#allocation0] sm:$0xf]  }
  0x12   :  { %43 = vrot.lane.b32.xlu0 %v42_v5, %s179_s11  ;;  %v82_v10 = vld [vmem:[#allocation0] sm:$0xf]  }
  0x13   :  { %51 = vrot.lane.b32.xlu1 %v50_v6, %s180_s12  ;;  %v6_v11 = vld [vmem:[#allocation0] sm:$0xf]  }
  0x14   :  { %8 = vst.msk [vmem:[%s332_s1] ss:$16 sm:$0x3] %vm7_vm0, %v6_v11   ;;  %9 = vst.msk [vmem:[%s332_s1] ss:$16 sm:$0xc] %vm7_vm0, %v6_v11  }
  0x15   :  { %v90_v12 = vld [vmem:[#allocation0] sm:$0xf]  }
  0x16   :  { %59 = vrot.lane.b32.xlu0 %v58_v7, %s181_s13  ;;  %v98_v13 = vld [vmem:[#allocation0] sm:$0xf]  }
  0x17   :  { %67 = vrot.lane.b32.xlu1 %v66_v8, %s182_s14  ;;  %v106_v14 = vld [vmem:[#allocation0] sm:$0xf]  }
  0x18   :  { %v114_v15 = vld [vmem:[#allocation0] sm:$0xf]  }
  0x19   :  { %v122_v16 = vld [vmem:[#allocation0] sm:$0xf]  }
  0x1a   :  { %75 = vrot.lane.b32.xlu0 %v74_v9, %s183_s19 }
  0x1b   :  { %83 = vrot.lane.b32.xlu1 %v82_v10, %s184_s20 }
  0x1e   :  { %91 = vrot.lane.b32.xlu0 %v90_v12, %s185_s21 }
  0x1f   :  { %99 = vrot.lane.b32.xlu1 %v98_v13, %s186_s22 }
  0x22   :  { %107 = vrot.lane.b32.xlu0 %v106_v14, %s187_s23 }
  0x23   :  { %115 = vrot.lane.b32.xlu1 %v114_v15, %s188_s24 }
  0x26   :  { %123 = vrot.lane.b32.xlu0 %v122_v16, %s189_s25 }
  0x7c   :  { %v12_v17 = vpop.permute.xlu0 %11  }
  0x7d   :  { %v28_v18 = vpop.permute.xlu1 %27   ;;  %130 = vst.msk [vmem:[%s332_s1 + $0x1] ss:$16 sm:$0x3] %vm7_vm0, %v12_v17   ;;  %131 = vst.msk [vmem:[%s332_s1 + $0x1] ss:$16 sm:$0xc] %vm7_vm0, %v12_v17  }
  0x7e   :  { %134 = vst.msk [vmem:[%s332_s1 + $0x3] ss:$16 sm:$0x3] %vm7_vm0, %v28_v18   ;;  %135 = vst.msk [vmem:[%s332_s1 + $0x3] ss:$16 sm:$0xc] %vm7_vm0, %v28_v18  }
  0x80   :  { %v20_v19 = vpop.permute.xlu0 %19  }
  0x81   :  { %v36_v20 = vpop.permute.xlu1 %35   ;;  %132 = vst.msk [vmem:[%s332_s1 + $0x2] ss:$16 sm:$0x3] %vm7_vm0, %v20_v19   ;;  %133 = vst.msk [vmem:[%s332_s1 + $0x2] ss:$16 sm:$0xc] %vm7_vm0, %v20_v19  }
  0x82   :  { %136 = vst.msk [vmem:[%s332_s1 + $0x4] ss:$16 sm:$0x3] %vm7_vm0, %v36_v20   ;;  %137 = vst.msk [vmem:[%s332_s1 + $0x4] ss:$16 sm:$0xc] %vm7_vm0, %v36_v20  }
  0x84   :  { %v44_v21 = vpop.permute.xlu0 %43  }
  0x85   :  { %v52_v22 = vpop.permute.xlu1 %51   ;;  %138 = vst.msk [vmem:[%s332_s1 + $0x5] ss:$16 sm:$0x3] %vm7_vm0, %v44_v21   ;;  %139 = vst.msk [vmem:[%s332_s1 + $0x5] ss:$16 sm:$0xc] %vm7_vm0, %v44_v21  }
  0x86   :  { %140 = vst.msk [vmem:[%s332_s1 + $0x6] ss:$16 sm:$0x3] %vm7_vm0, %v52_v22   ;;  %141 = vst.msk [vmem:[%s332_s1 + $0x6] ss:$16 sm:$0xc] %vm7_vm0, %v52_v22  }
  0x88   :  { %v60_v23 = vpop.permute.xlu0 %59  }
  0x89   :  { %v68_v24 = vpop.permute.xlu1 %67   ;;  %142 = vst.msk [vmem:[%s332_s1 + $0x7] ss:$16 sm:$0x3] %vm7_vm0, %v60_v23   ;;  %143 = vst.msk [vmem:[%s332_s1 + $0x7] ss:$16 sm:$0xc] %vm7_vm0, %v60_v23  }
  0x8a   :  { %144 = vst.msk [vmem:[%s332_s1 + $0x8] ss:$16 sm:$0x3] %vm7_vm0, %v68_v24   ;;  %145 = vst.msk [vmem:[%s332_s1 + $0x8] ss:$16 sm:$0xc] %vm7_vm0, %v68_v24  }
  0x8c   :  { %v76_v25 = vpop.permute.xlu0 %75  }
  0x8d   :  { %v84_v26 = vpop.permute.xlu1 %83   ;;  %146 = vst.msk [vmem:[%s332_s1 + $0x9] ss:$16 sm:$0x3] %vm7_vm0, %v76_v25   ;;  %147 = vst.msk [vmem:[%s332_s1 + $0x9] ss:$16 sm:$0xc] %vm7_vm0, %v76_v25  }
  0x8e   :  { %148 = vst.msk [vmem:[%s332_s1 + $0xa] ss:$16 sm:$0x3] %vm7_vm0, %v84_v26   ;;  %149 = vst.msk [vmem:[%s332_s1 + $0xa] ss:$16 sm:$0xc] %vm7_vm0, %v84_v26  }
  0x90   :  { %v92_v27 = vpop.permute.xlu0 %91  }
  0x91   :  { %v100_v28 = vpop.permute.xlu1 %99   ;;  %150 = vst.msk [vmem:[%s332_s1 + $0xb] ss:$16 sm:$0x3] %vm7_vm0, %v92_v27   ;;  %151 = vst.msk [vmem:[%s332_s1 + $0xb] ss:$16 sm:$0xc] %vm7_vm0, %v92_v27  }
  0x92   :  { %152 = vst.msk [vmem:[%s332_s1 + $0xc] ss:$16 sm:$0x3] %vm7_vm0, %v100_v28   ;;  %153 = vst.msk [vmem:[%s332_s1 + $0xc] ss:$16 sm:$0xc] %vm7_vm0, %v100_v28  }
  0x94   :  { %v108_v29 = vpop.permute.xlu0 %107  }
  0x95   :  { %v116_v30 = vpop.permute.xlu1 %115   ;;  %154 = vst.msk [vmem:[%s332_s1 + $0xd] ss:$16 sm:$0x3] %vm7_vm0, %v108_v29   ;;  %155 = vst.msk [vmem:[%s332_s1 + $0xd] ss:$16 sm:$0xc] %vm7_vm0, %v108_v29  }
  0x96   :  { %156 = vst.msk [vmem:[%s332_s1 + $0xe] ss:$16 sm:$0x3] %vm7_vm0, %v116_v30   ;;  %157 = vst.msk [vmem:[%s332_s1 + $0xe] ss:$16 sm:$0xc] %vm7_vm0, %v116_v30  }
  0x98   :  { %v124_v31 = vpop.permute.xlu0 %123  }
  0x99   :  { %158 = vst.msk [vmem:[%s332_s1 + $0xf] ss:$16 sm:$0x3] %vm7_vm0, %v124_v31   ;;  %159 = vst.msk [vmem:[%s332_s1 + $0xf] ss:$16 sm:$0xc] %vm7_vm0, %v124_v31  }

// kernel: wavemix_forward.10
= control target key start
LH: loop header
LB: loop body
LE: loop exit
PB: predicated region body
PF: predicated region fallthrough
CT: control target
= control target key end

     0   :  { %s873_s18 = smov 0   ;;  %s875_s19 = smov 0   ;;  %s986_s0 = inlined_call_operand.vmem [shape: f32[2,64,64], index: 0, kind: input, shape index: {}]   ;;  %s987_s1 = inlined_call_operand.vmem [shape: f32[32,64], index: 1, kind: input, shape index: {}]   ;;  %s988_s2 = inlined_call_operand.vmem [shape: f32[32,1], index: 2, kind: input, shape index: {}]   ;;  %s989_s3 = inlined_call_operand.vmem [shape: f32[16,32], index: 3, kind: input, shape index: {}]   ;;  %s990_s4 = inlined_call_operand.vmem [shape: f32[16,1], index: 4, kind: input, shape index: {}]   ;;  %s991_s5 = inlined_call_operand.vmem [shape: f32[2,16,64], index: 5, kind: output, shape index: {}]  }
   0x1   :  { %s877_s20 = smov 0  }
   0x2 LB: > { %s27_s21 = sadd.s32 1, %s835_s19  ;;  %p683_p0 = scmp.ge.s32.totalorder %s839_s20, 1  ;;  %s839_s20 = sphi %s877_s20, %s15_s20   ;;  %s835_s19 = sphi %s875_s19, %s993_s19   ;;  %s831_s18 = sphi %s873_s18, %s992_s18  }
   0x3   : > { %p29_p1 = scmp.ge.s32.totalorder %s27_s21, 2  ;;  %p206_p2 = scmp.lt.s32.totalorder %s839_s20, 3 }
   0x5   : > { %s995_s21 = smov (%p29_p1, %s27_s21), 0  ;;  %p207_p3 = pnand %p683_p0, %p206_p2 }
   0x6   : > { %p240_p4 = scmp.lt.s32.totalorder (!%p207_p3), %s831_s18, 1  ;;  %v256_v0 = vld [vmem:[%s987_s1] sm:$0xff] (!%p207_p3)  ;;  %vm292_vm0 = vcmask (!%p207_p3), 523264   ;;  %v841_v1 = vmov (!%p207_p3), 0   ;;  %v270_v3 = vld [vmem:[%s988_s2 + $0x10] sm:$0xff] (!%p207_p3)  ;;  %v269_v4 = vld [vmem:[%s988_s2 + $0x8] sm:$0xff] (!%p207_p3) }
   0x7   : > { %210 = sbr.rel (%p207_p3) target bundleno = 524 (0x20c), region = 40  ;;  %732 = vmatprep.mubr.msk.f32.mxu0 (!%p207_p3), %vm292_vm0, %v256_v0  ;;  %799 = vset.pattern.permute.xlu0 (!%p207_p3), %v841_v1  ;;  %v268_v2 = vld [vmem:[%s988_s2] sm:$0xff] (!%p207_p3)  ;;  %v271_v5 = vld [vmem:[%s988_s2 + $0x18] sm:$0xff] (!%p207_p3)  ;;  %v501_v15 = vld [vmem:[%s990_s4 + $0x8] sm:$0xff] (!%p207_p3)  ;;  %vm512_vm1 = vcmask (!%p207_p3), 261120  }
   0x8   : > { %274 = vperm.xlu0 (!%p207_p3), %799, %v268_v2   ;;  %800 = vset.pattern.permute.xlu1 (!%p207_p3), %v841_v1  ;;  %v500_v11 = vld [vmem:[%s990_s4] sm:$0xff] (!%p207_p3)  ;;  %v257_v20 = vld [vmem:[%s987_s1 + $0x8] sm:$0xff] (!%p207_p3)  ;;  %v258_v21 = vld [vmem:[%s987_s1 + $0x10] sm:$0xff] (!%p207_p3) }
   0x9   : > { %284 = vperm.xlu1 (!%p207_p3), %800, %v270_v3   ;;  %v259_v22 = vld [vmem:[%s987_s1 + $0x18] sm:$0xff] (!%p207_p3)  ;;  %v498_v23 = vld [vmem:[%s989_s3] sm:$0xff] (!%p207_p3) }
   0xa   : > { %746 = vmatprep.mubr.msk.f32.mxu1 (!%p207_p3), %vm512_vm1, %v498_v23 }
   0xc   : > { %279 = vperm.xlu0 (!%p207_p3), %799, %v269_v4  }
   0xd   : > { %289 = vperm.xlu1 (!%p207_p3), %800, %v271_v5  }
   0xe   : > { %s997_s18 = smov (!%p240_p4, %s831_s18), 1 }
   0xf   : > { %s696_s30 = sshll.u32 %s997_s18, 6  ;;  %s697_s29 = sshll.u32 %s997_s18, 4 }
  0x10   : > { %s247_s10 = scalar_lea.vmem %s986_s0, %s696_s30  ;;  %504 = vperm.xlu0 %799, %v500_v11   ;;  %s255_s7 = scalar_lea.vmem %s991_s5, %s697_s29 }
  0x11   : > { %v260_v6 = vld [vmem:[%s247_s10] sm:$0xff]  ;;  %v261_v7 = vld [vmem:[%s247_s10 + $0x8] sm:$0xff]  ;;  %v262_v8 = vld [vmem:[%s247_s10 + $0x10] sm:$0xff]  ;;  %509 = vperm.xlu1 %800, %v501_v15  }
  0x12   : > { %v749_v9 = vpack.c.bf16 %v261_v7, %v260_v6  ;;  %v263_v10 = vld [vmem:[%s247_s10 + $0x18] sm:$0xff]  ;;  %v264_v13 = vld [vmem:[%s247_s10 + $0x20] sm:$0xff]  ;;  %v265_v14 = vld [vmem:[%s247_s10 + $0x28] sm:$0xff] }
  0x13   : > { %v753_v12 = vpack.c.bf16 %v263_v10, %v262_v8  ;;  %v757_v16 = vpack.c.bf16 %v265_v14, %v264_v13  ;;  %v266_v17 = vld [vmem:[%s247_s10 + $0x30] sm:$0xff]  ;;  %v267_v18 = vld [vmem:[%s247_s10 + $0x38] sm:$0xff] }
  0x14   : > { %750 = vmatprep.subr.bf16.mxu0 %v749_v9  ;;  %v761_v19 = vpack.c.bf16 %v267_v18, %v266_v17 }
  0x15   : > { %752 = vmatpush3.bf16.msra.mxu0 %v749_v9 }
  0x16   : > { %754 = vmatprep.subr.bf16.mxu0 %v753_v12 }
  0x19   : > { %756 = vmatpush3.bf16.msra.mxu0 %v753_v12 }
  0x1a   : > { %758 = vmatprep.subr.bf16.mxu0 %v757_v16 }
  0x1d   : > { %760 = vmatpush3.bf16.msra.mxu0 %v757_v16 }
  0x1e   : > { %762 = vmatprep.subr.bf16.mxu0 %v761_v19 }
  0x21   : > { %764 = vmatpush3.bf16.msra.mxu0 %v761_v19 }
  0x24   : > { %733 = vmatmul.mubr.msk.f32.vlgmr.msra.gmra.mrb[0].mxu0 %vm292_vm0, %v257_v20 }
  0x25   : > { %735 = vmatprep.mubr.msk.f32.mxu0 %vm292_vm0, %v258_v21 }
  0x28   : > { %736 = vmatmul.mubr.msk.f32.gmra.mrb[2].mxu0 %vm292_vm0, %v259_v22 }
  0x87   : > { %v275_v24 = vpop.permute.xlu0 %274 }
  0x88   : > { %v285_v25 = vpop.permute.xlu1 %284 }
  0x8b   : > { %v280_v26 = vpop.permute.xlu0 %279 }
  0x8c   : > { %v290_v32 = vpop.permute.xlu1 %289 }
  0xf7   : > { %v734_v27 = vpop.f32.mrb[0].mxu0 }
  0xf8   : > { %v935_v28 = vadd.f32 %v734_v27, %v280_v26  ;;  %v371_v29 = vpop.f32.mrb[1].mxu0 }
  0xf9   : > { %v937_v30 = vadd.f32 %v371_v29, %v275_v24 }
  0xfa   : > { %v940_v31 = vmul.f32 0.70710677, %v935_v28 }
  0xfb   : > { %v943_v33 = vmul.f32 0.70710677, %v937_v30  ;;  %v737_v34 = vpop.f32.mrb[2].mxu0 }
  0xfc   : > { %v407_v35 = vand.u32 2147483647, %v940_v31  ;;  %v946_v36 = vadd.f32 %v737_v34, %v290_v32  ;;  %v381_v37 = vpop.f32.mrb[3].mxu0  ;;  %vm399_vm2 = vcmp.ge.f32.partialorder %v940_v31, 0.0 }
  0xfd   : > { %v406_v38 = vand.u32 2147483647, %v943_v33  ;;  %v949_v39 = vadd.f32 %v381_v37, %v285_v25  ;;  %vm398_vm3 = vcmp.ge.f32.partialorder %v943_v33, 0.0 }
  0xfe   : > { %v411_v40 = vmul.f32 0.3275911, %v407_v35  ;;  %v952_v42 = vmul.f32 0.70710677, %v946_v36  ;;  %v463_v51 = vsub.f32 0.0, %v407_v35 }
  0xff   : > { %v410_v41 = vmul.f32 0.3275911, %v406_v38  ;;  %v955_v44 = vmul.f32 0.70710677, %v949_v39  ;;  %v462_v53 = vsub.f32 0.0, %v406_v38 }
 0x100   : > { %v415_v43 = vadd.f32 1.0, %v411_v40  ;;  %v409_v46 = vand.u32 2147483647, %v952_v42  ;;  %v467_v55 = vmul.f32 %v463_v51, %v407_v35  ;;  %vm401_vm4 = vcmp.ge.f32.partialorder %v952_v42, 0.0 }
 0x101   : > { %v414_v45 = vadd.f32 1.0, %v410_v41  ;;  %v408_v48 = vand.u32 2147483647, %v955_v44  ;;  %v466_v57 = vmul.f32 %v462_v53, %v406_v38  ;;  %vm400_vm5 = vcmp.ge.f32.partialorder %v955_v44, 0.0 }
 0x102   : > { %801 = vrcp.f32 %v415_v43  ;;  %v413_v47 = vmul.f32 0.3275911, %v409_v46  ;;  %v465_v58 = vsub.f32 0.0, %v409_v46  ;;  %v472_v62 = vmul.f32 1.442695, %v467_v55 }
 0x103   : > { %803 = vrcp.f32 %v414_v45  ;;  %v412_v50 = vmul.f32 0.3275911, %v408_v48  ;;  %v464_v63 = vsub.f32 0.0, %v408_v48  ;;  %v470_v2 = vmul.f32 1.442695, %v466_v57 }
 0x104   : > { %v417_v49 = vadd.f32 1.0, %v413_v47  ;;  %v469_v3 = vmul.f32 %v465_v58, %v409_v46 }
 0x105   : > { %v416_v52 = vadd.f32 1.0, %v412_v50  ;;  %v468_v10 = vmul.f32 %v464_v63, %v408_v48  ;;  %v842_v50 = vmov -1.0  }
 0x106   : > { %805 = vrcp.f32 %v417_v49  ;;  %v476_v12 = vmul.f32 1.442695, %v469_v3  ;;  %v403_v51 = vsel %vm399_vm2, 1.0, %v842_v50 }
 0x107   : > { %807 = vrcp.f32 %v416_v52  ;;  %v474_v20 = vmul.f32 1.442695, %v468_v10 }
 0x108   : > { %809 = vpow2.f32 %v472_v62  ;;  %v390_v62 = vmul.f32 0.5, %v937_v30  ;;  %v392_v30 = vmul.f32 0.5, %v949_v39  ;;  %v505_v39 = vpop.permute.xlu0 %504 }
 0x109   : > { %811 = vpow2.f32 %v470_v2  ;;  %v405_v2 = vsel %vm401_vm4, 1.0, %v842_v50 }
 0x10a   : > { %813 = vpow2.f32 %v476_v12 }
 0x10b   : > { %815 = vpow2.f32 %v474_v20 }
 0x10c   : > { %v802_v54 = vpop.eup %801 }
 0x10d   : > { %v804_v56 = vpop.eup %803  ;;  %v427_v59 = vmul.f32 1.0614054, %v802_v54 }
 0x10e   : > { %v426_v60 = vmul.f32 1.0614054, %v804_v56 }
 0x10f   : > { %v431_v61 = vadd.f32 -1.4531521, %v427_v59  ;;  %v391_v59 = vmul.f32 0.5, %v935_v28  ;;  %v393_v28 = vmul.f32 0.5, %v946_v36 }
 0x110   : > { %v430_v0 = vadd.f32 -1.4531521, %v426_v60  ;;  %v806_v1 = vpop.eup %805 }
 0x111   : > { %v435_v4 = vmul.f32 %v802_v54, %v431_v61  ;;  %v429_v5 = vmul.f32 1.0614054, %v806_v1  ;;  %v808_v8 = vpop.eup %807 }
 0x112   : > { %v434_v6 = vmul.f32 %v804_v56, %v430_v0  ;;  %v428_v13 = vmul.f32 1.0614054, %v808_v8  ;;  %v810_v37 = vpop.eup %809 }
 0x113   : > { %v439_v7 = vadd.f32 1.4214138, %v435_v4  ;;  %v433_v9 = vadd.f32 -1.4531521, %v429_v5  ;;  %v812_v41 = vpop.eup %811 }
 0x114   : > { %v438_v11 = vadd.f32 1.4214138, %v434_v6  ;;  %v432_v17 = vadd.f32 -1.4531521, %v428_v13  ;;  %v814_v55 = vpop.eup %813  ;;  %v499_v13 = vld [vmem:[%s989_s3 + $0x8] sm:$0xff] }
 0x115   : > { %v443_v14 = vmul.f32 %v802_v54, %v439_v7  ;;  %v437_v15 = vmul.f32 %v806_v1, %v433_v9  ;;  %v816_v61 = vpop.eup %815  ;;  %v404_v7 = vsel %vm400_vm5, 1.0, %v842_v50 }
 0x116   : > { %v442_v16 = vmul.f32 %v804_v56, %v438_v11  ;;  %v436_v22 = vmul.f32 %v808_v8, %v432_v17 }
 0x117   : > { %v447_v18 = vadd.f32 -0.28449672, %v443_v14  ;;  %v441_v19 = vadd.f32 1.4214138, %v437_v15  ;;  %v510_v14 = vpop.permute.xlu1 %509 }
 0x118   : > { %v446_v21 = vadd.f32 -0.28449672, %v442_v16  ;;  %v440_v26 = vadd.f32 1.4214138, %v436_v22 }
 0x119   : > { %v451_v23 = vmul.f32 %v802_v54, %v447_v18  ;;  %v445_v24 = vmul.f32 %v806_v1, %v441_v19 }
 0x11a   : > { %v450_v25 = vmul.f32 %v804_v56, %v446_v21  ;;  %v444_v34 = vmul.f32 %v808_v8, %v440_v26 }
 0x11b   : > { %v455_v27 = vadd.f32 0.2548296, %v451_v23  ;;  %v449_v29 = vadd.f32 -0.28449672, %v445_v24 }
 0x11c   : > { %v454_v32 = vadd.f32 0.2548296, %v450_v25  ;;  %v448_v43 = vadd.f32 -0.28449672, %v444_v34 }
 0x11d   : > { %v459_v35 = vmul.f32 %v802_v54, %v455_v27  ;;  %v453_v38 = vmul.f32 %v806_v1, %v449_v29  ;;  %v402_v54 = vsel %vm398_vm3, 1.0, %v842_v50 }
 0x11e   : > { %v458_v40 = vmul.f32 %v804_v56, %v454_v32  ;;  %v452_v48 = vmul.f32 %v808_v8, %v448_v43 }
 0x11f   : > { %v479_v45 = vmul.f32 %v810_v37, %v459_v35  ;;  %v457_v46 = vadd.f32 0.2548296, %v453_v38 }
 0x120   : > { %v478_v47 = vmul.f32 %v812_v41, %v458_v40  ;;  %v456_v57 = vadd.f32 0.2548296, %v452_v48 }
 0x121   : > { %v483_v49 = vsub.f32 1.0, %v479_v45  ;;  %v461_v52 = vmul.f32 %v806_v1, %v457_v46 }
 0x122   : > { %v482_v53 = vsub.f32 1.0, %v478_v47  ;;  %v460_v60 = vmul.f32 %v808_v8, %v456_v57 }
 0x123   : > { %v487_v58 = vmul.f32 %v483_v49, %v403_v51  ;;  %v481_v56 = vmul.f32 %v814_v55, %v461_v52 }
 0x124   : > { %v486_v31 = vmul.f32 %v482_v53, %v402_v54  ;;  %v480_v1 = vmul.f32 %v816_v61, %v460_v60 }
 0x125   : > { %v491_v33 = vadd.f32 1.0, %v487_v58  ;;  %v485_v63 = vsub.f32 1.0, %v481_v56 }
 0x126   : > { %v490_v0 = vadd.f32 1.0, %v486_v31  ;;  %v484_v6 = vsub.f32 1.0, %v480_v1 }
 0x127   : > { %v495_v3 = vmul.f32 %v491_v33, %v391_v59  ;;  %v489_v4 = vmul.f32 %v485_v63, %v405_v2 }
 0x128   : > { %v494_v5 = vmul.f32 %v490_v0, %v390_v62  ;;  %v488_v8 = vmul.f32 %v484_v6, %v404_v7 }
 0x129   : > { %v493_v42 = vadd.f32 1.0, %v489_v4 }
 0x12a   : > { %v765_v9 = vpack.c.bf16 %v495_v3, %v494_v5  ;;  %v492_v11 = vadd.f32 1.0, %v488_v8 }
 0x12b   : > { %v497_v10 = vmul.f32 %v493_v42, %v393_v28 }
 0x12c   : > { %766 = vmatprep.subr.bf16.mxu1 %v765_v9  ;;  %v496_v12 = vmul.f32 %v492_v11, %v392_v30 }
 0x12d   : > { %768 = vmatpush3.bf16.msra.mxu1 %v765_v9 }
 0x12e   : > { %v769_v44 = vpack.c.bf16 %v497_v10, %v496_v12 }
 0x130   : > { %770 = vmatprep.subr.bf16.mxu1 %v769_v44 }
 0x131   : > { %772 = vmatpush3.bf16.msra.mxu1 %v769_v44 }
 0x134   : > { %747 = vmatmul.mubr.msk.f32.vlgmr.msra.gmra.mrb[0].mxu1 %vm512_vm1, %v499_v13 }
 0x207   : > { %v748_v36 = vpop.f32.mrb[0].mxu1 }
 0x208   : > { %v591_v15 = vadd.f32 %v748_v36, %v510_v14  ;;  %v585_v16 = vpop.f32.mrb[1].mxu1 }
 0x209   : > { %v586_v17 = vadd.f32 %v585_v16, %v505_v39 }
 0x20a   : > { %595 = vst.msk [vmem:[%s255_s7 + $0x8] sm:$0xff] %vm292_vm0, %v591_v15 }
 0x20b   : > { %594 = vst.msk [vmem:[%s255_s7] sm:$0xff] %vm292_vm0, %v586_v17 }
 0x20c PF: > { %s15_s20 = sadd.s32 1, %s839_s20   ;;  %s992_s18 = smov %s835_s19 }
 0x20d   : > { %p12_p5 = scmp.ge.s32.totalorder %s15_s20, 4   ;;  %s993_s19 = smov %s995_s21 }
 0x20f   :  { %14 = sbr.rel (!%p12_p5) target bundleno = 2 (0x2), region = 70 }

// kernel: wavemix_forward.11
= control target key start
LH: loop header
LB: loop body
LE: loop exit
PB: predicated region body
PF: predicated region fallthrough
CT: control target
= control target key end

     0   :  { %s1523_s18 = smov 0   ;;  %s1525_s19 = smov 0   ;;  %s1775_s0 = inlined_call_operand.vmem [shape: f32[2,16,64], index: 0, kind: input, shape index: {}]   ;;  %s1776_s1 = inlined_call_operand.vmem [shape: f32[2,1,16,16], index: 1, kind: input, shape index: {}]   ;;  %s1777_s2 = inlined_call_operand.vmem [shape: f32[3,64,48], index: 2, kind: input, shape index: {}]   ;;  %s1778_s3 = inlined_call_operand.vmem [shape: f32[64,1], index: 3, kind: input, shape index: {}]   ;;  %s1779_s4 = inlined_call_operand.vmem [shape: f32[2,64,64], index: 4, kind: output, shape index: {0}]   ;;  %s1780_s5 = inlined_call_operand.vmem [shape: f32[2,1,64,2], index: 5, kind: output, shape index: {1}]  }
   0x1   :  { %s1527_s20 = smov 0  }
   0x2 LB: > { %s28_s21 = sadd.s32 1, %s1480_s19  ;;  %p1140_p0 = scmp.ge.s32.totalorder %s1484_s20, 1  ;;  %s1484_s20 = sphi %s1527_s20, %s16_s20   ;;  %s1480_s19 = sphi %s1525_s19, %s1786_s19   ;;  %s1476_s18 = sphi %s1523_s18, %s1785_s18  }
   0x3   : > { %p30_p1 = scmp.ge.s32.totalorder %s28_s21, 2  ;;  %p227_p2 = scmp.lt.s32.totalorder %s1484_s20, 3 }
   0x5   : > { %s1788_s21 = smov (%p30_p1, %s28_s21), 0  ;;  %p228_p3 = pnand %p1140_p0, %p227_p2 }
   0x6   : > { %p279_p4 = scmp.lt.s32.totalorder (!%p228_p3), %s1476_s18, 1  ;;  %s1486_s29 = smov (!%p228_p3), 8   ;;  %vm333_vm0 = vcmask (!%p228_p3), 64512   ;;  %vm336_vm1 = vcmask (!%p228_p3), 588800   ;;  %v339_v18 = vlaneseq (!%p228_p3)  ;;  %v379_v21 = vld [vmem:[%s1777_s2] sm:$0xff] (!%p228_p3)  ;;  %vm418_vm2 = vcmask (!%p228_p3), 392192  }
   0x7   : > { %231 = sbr.rel (%p228_p3) target bundleno = 791 (0x317), region = 36  ;;  %s1487_s30 = smov (!%p228_p3), 64   ;;  %1281 = vmatprep.mubr.msk.f32.mxu0 (!%p228_p3), %vm418_vm2, %v379_v21  ;;  %vm362_vm4 = vcmask (!%p228_p3), 7168   ;;  %vm374_vm6 = vcmask (!%p228_p3), 646144   ;;  %v1149_v41 = vld [vmem:[%s1777_s2 + $0x40] sm:$0xff] (!%p228_p3)  ;;  %v380_v43 = vld [vmem:[%s1777_s2 + $0x8] sm:$0xff] (!%p228_p3) }
   0x8   : > { %s1488_s6 = smov (!%p228_p3), 1   ;;  %s1489_s7 = smov (!%p228_p3), 127   ;;  %v340_v19 = vand.u32 (!%p228_p3), 127, %v339_v18  ;;  %1257 = vmatprep.mubr.msk.f32.mxu1 (!%p228_p3), %vm418_vm2, %v1149_v41  ;;  %v381_v44 = vld [vmem:[%s1777_s2 + $0x10] sm:$0xff] (!%p228_p3)  ;;  %v382_v45 = vld [vmem:[%s1777_s2 + $0x18] sm:$0xff] (!%p228_p3)  ;;  %v383_v46 = vld [vmem:[%s1777_s2 + $0x20] sm:$0xff] (!%p228_p3) }
   0x9   : > { %s1490_s8 = smov (!%p228_p3), 120   ;;  %s1491_s11 = smov (!%p228_p3), 112   ;;  %v384_v47 = vld [vmem:[%s1777_s2 + $0x28] sm:$0xff] (!%p228_p3)  ;;  %v385_v48 = vld [vmem:[%s1777_s2 + $0x30] sm:$0xff] (!%p228_p3)  ;;  %v386_v49 = vld [vmem:[%s1777_s2 + $0x38] sm:$0xff] (!%p228_p3)  ;;  %v1492_v53 = vmov (!%p228_p3), 0  }
   0xa   : > { %v345_v20 = vand.u32 (!%p228_p3), 7, %v340_v19  ;;  %v1181_v50 = vld [vmem:[%s1777_s2 + $0x80] sm:$0xff] (!%p228_p3)  ;;  %v842_v51 = vld [vmem:[%s1778_s3 + $0x8] sm:$0xff] (!%p228_p3)  ;;  %1461 = vset.pattern.permute.xlu1 (!%p228_p3), %v1492_v53  ;;  %1460 = vset.pattern.permute.xlu0 (!%p228_p3), %v1492_v53  ;;  %v843_v54 = vld [vmem:[%s1778_s3 + $0x10] sm:$0xff] (!%p228_p3)  ;;  %vm897_vm11 = vcmask (!%p228_p3), 523264   ;;  %vm970_vm12 = vcmask (!%p228_p3), 15360  }
   0xb   : > { %v841_v52 = vld [vmem:[%s1778_s3] sm:$0xff] (!%p228_p3)  ;;  %v844_v55 = vld [vmem:[%s1778_s3 + $0x18] sm:$0xff] (!%p228_p3)  ;;  %v846_v57 = vld [vmem:[%s1778_s3 + $0x28] sm:$0xff] (!%p228_p3) }
   0xc   : > { %vm1554_vm3 = vcmp.eq.s32.totalorder (!%p228_p3), %v345_v20, 0  ;;  %vm1563_vm8 = vcmp.eq.s32.totalorder (!%p228_p3), %v345_v20, 7  ;;  %v845_v56 = vld [vmem:[%s1778_s3 + $0x20] sm:$0xff] (!%p228_p3)  ;;  %v847_v58 = vld [vmem:[%s1778_s3 + $0x30] sm:$0xff] (!%p228_p3)  ;;  %v848_v59 = vld [vmem:[%s1778_s3 + $0x38] sm:$0xff] (!%p228_p3) }
   0xd   : > { %vm1165_vm5 = vmneg (!%p228_p3), %vm1554_vm3  ;;  %v1150_v20 = vld [vmem:[%s1777_s2 + $0x48] sm:$0xff] (!%p228_p3)  ;;  %v1151_v21 = vld [vmem:[%s1777_s2 + $0x50] sm:$0xff] (!%p228_p3) }
   0xe   : > { %s1790_s18 = smov (!%p279_p4, %s1476_s18), 1  ;;  %vm1330_vm7 = vmpackc.low %vm1165_vm5, %vm1165_vm5  ;;  %v1152_v22 = vld [vmem:[%s1777_s2 + $0x58] sm:$0xff]  ;;  %v1155_v28 = vld [vmem:[%s1777_s2 + $0x70] sm:$0xff] }
   0xf   : > { %s1199_s22 = sshll.u32 %s1790_s18, 4  ;;  %vm1169_vm9 = vmneg %vm1563_vm8 }
  0x10   : > { %s286_s25 = scalar_lea.vmem %s1775_s0, %s1199_s22  ;;  %s295_s28 = scalar_lea.vmem %s1776_s1, %s1199_s22  ;;  %vm1340_vm10 = vmpackc.low %vm1169_vm9, %vm1169_vm9 }
  0x11   : > { %v315_v0 = vld [vmem:[%s286_s25] sm:$0xff]  ;;  %v316_v1 = vld [vmem:[%s286_s25 + $0x8] sm:$0xff] }
  0x12   : > { %v313_v2 = vld [vmem:[%s295_s28] sm:$0xff]  ;;  %v1410_v3 = vpack.i.bf16 %v316_v1, %v315_v0  ;;  %v314_v4 = vld [vmem:[%s295_s28 + $0x8] sm:$0xff] }
  0x13   : > { %v1415_v5 = vpack.i.bf16 %v314_v4, %v313_v2 }
  0x14   : > { %1411 = vrot.lane.b32.xlu0 %v1410_v3, %s1486_s29 }
  0x18   : > { %1416 = vrot.lane.b32.xlu0 %v1415_v5, %s1487_s30 }
  0x86   : > { %v1412_v6 = vpop.permute.xlu0 %1411 }
  0x87   : > { %v1414_v7 = vunpack.i.h.bf16 %v1412_v6  ;;  %v1413_v8 = vunpack.i.l.bf16 %v1412_v6 }
  0x89   : > { %v335_v12 = vsel %vm333_vm0, %v314_v4, %v1414_v7  ;;  %v334_v13 = vsel %vm333_vm0, %v313_v2, %v1413_v8 }
  0x8a   : > { %v1417_v9 = vpop.permute.xlu0 %1416 }
  0x8b   : > { %v1419_v10 = vunpack.i.h.bf16 %v1417_v9  ;;  %v1418_v11 = vunpack.i.l.bf16 %v1417_v9 }
  0x8d   : > { %v337_v14 = vsel %vm336_vm1, %v334_v13, %v1418_v11  ;;  %v338_v15 = vsel %vm336_vm1, %v335_v12, %v1419_v10 }
  0x8e   : > { %v1420_v16 = vpack.i.bf16 %v338_v15, %v337_v14  ;;  %v1335_v17 = vpack.c.bf16 %v338_v15, %v337_v14 }
  0x90   : > { %1421 = vrot.lane.b32.xlu1 %v1420_v16, %s1488_s6 }
  0x94   : > { %1426 = vrot.lane.b32.xlu1 %v1420_v16, %s1489_s7 }
  0x98   : > { %1436 = vrot.lane.b32.xlu1 %v1420_v16, %s1490_s8 }
 0x102   : > { %v1422_v23 = vpop.permute.xlu1 %1421 }
 0x103   : > { %v1424_v24 = vunpack.i.h.bf16 %v1422_v23  ;;  %v1423_v25 = vunpack.i.l.bf16 %v1422_v23  ;;  %v1182_v23 = vld [vmem:[%s1777_s2 + $0x88] sm:$0xff] }
 0x105   : > { %v363_v26 = vsel %vm362_vm4, 0.0, %v1423_v25  ;;  %v364_v27 = vsel %vm362_vm4, 0.0, %v1424_v24  ;;  %v1153_v24 = vld [vmem:[%s1777_s2 + $0x60] sm:$0xff]  ;;  %v1183_v25 = vld [vmem:[%s1777_s2 + $0x90] sm:$0xff] }
 0x106   : > { %v1427_v29 = vpop.permute.xlu1 %1426  ;;  %v365_v30 = vsel %vm1554_vm3, 0.0, %v363_v26  ;;  %v366_v31 = vsel %vm1554_vm3, 0.0, %v364_v27  ;;  %v1329_v32 = vpack.c.bf16 %v364_v27, %v363_v26  ;;  %v1154_v26 = vld [vmem:[%s1777_s2 + $0x68] sm:$0xff]  ;;  %v1184_v27 = vld [vmem:[%s1777_s2 + $0x98] sm:$0xff] }
 0x107   : > { %v1429_v33 = vunpack.i.h.bf16 %v1427_v29  ;;  %v1428_v34 = vunpack.i.l.bf16 %v1427_v29  ;;  %v1445_v35 = vpack.i.bf16 %v366_v31, %v365_v30  ;;  %v1156_v29 = vld [vmem:[%s1777_s2 + $0x78] sm:$0xff]  ;;  %v1185_v30 = vld [vmem:[%s1777_s2 + $0xa0] sm:$0xff]  ;;  %v1186_v31 = vld [vmem:[%s1777_s2 + $0xa8] sm:$0xff] }
 0x108   : > { %1331 = vmatprep.subr.msk.bf16.mxu0 %vm1330_vm7, %v1329_v32 }
 0x109   : > { %v376_v36 = vsel %vm374_vm6, %v1429_v33, 0.0  ;;  %v375_v37 = vsel %vm374_vm6, %v1428_v34, 0.0  ;;  %1334 = vmatpush3.bf16.msk.msra.mxu0 %vm1330_vm7, %v1329_v32  ;;  %1446 = vrot.lane.b32.xlu1 %v1445_v35, %s1491_s11  ;;  %v1187_v32 = vld [vmem:[%s1777_s2 + $0xb0] sm:$0xff]  ;;  %v1188_v33 = vld [vmem:[%s1777_s2 + $0xb8] sm:$0xff] }
 0x10a   : > { %v378_v38 = vsel %vm1563_vm8, 0.0, %v376_v36  ;;  %v377_v39 = vsel %vm1563_vm8, 0.0, %v375_v37  ;;  %1431 = vrot.lane.b32.xlu0 %v1445_v35, %s1490_s8  ;;  %1336 = vmatprep.subr.bf16.mxu0 %v1335_v17  ;;  %v1339_v42 = vpack.c.bf16 %v376_v36, %v375_v37  ;;  %v1437_v60 = vpop.permute.xlu1 %1436 }
 0x10b   : > { %v1455_v40 = vpack.i.bf16 %v378_v38, %v377_v39  ;;  %v1439_v1 = vunpack.i.h.bf16 %v1437_v60  ;;  %v1438_v2 = vunpack.i.l.bf16 %v1437_v60 }
 0x10d   : > { %1456 = vrot.lane.b32.xlu1 %v1455_v40, %s1491_s11  ;;  %1338 = vmatpush3.bf16.msra.mxu0 %v1335_v17  ;;  %v1321_v8 = vpack.c.bf16 %v1439_v1, %v1438_v2 }
 0x10e   : > { %1441 = vrot.lane.b32.xlu0 %v1455_v40, %s1490_s8  ;;  %1341 = vmatprep.subr.msk.bf16.mxu0 %vm1340_vm10, %v1339_v42 }
 0x111   : > { %1344 = vmatpush3.bf16.msk.msra.mxu0 %vm1340_vm10, %v1339_v42  ;;  %856 = vperm.xlu1 %1461, %v842_v51  }
 0x112   : > { %1451 = vrot.lane.b32.xlu0 %v1420_v16, %s1491_s11  ;;  %s1201_s11 = sshll.u32 %s1790_s18, 6 }
 0x113   : > { %s1701_s14 = scalar_lea.vmem %s1779_s4, %s1201_s11  ;;  %s1740_s17 = scalar_lea.vmem %s1780_s5, %s1201_s11 }
 0x114   : > { %1282 = vmatmul.mubr.msk.f32.vlgmr.msra.gmra.mrb[0].mxu0 %vm418_vm2, %v380_v43 }
 0x115   : > { %1284 = vmatprep.mubr.msk.f32.mxu0 %vm418_vm2, %v381_v44  ;;  %861 = vperm.xlu1 %1461, %v843_v54  }
 0x116   : > { %851 = vperm.xlu0 %1460, %v841_v52  }
 0x118   : > { %1285 = vmatmul.mubr.msk.f32.gmra.mrb[2].mxu0 %vm418_vm2, %v382_v45 }
 0x119   : > { %1287 = vmatprep.mubr.msk.f32.mxu0 %vm418_vm2, %v383_v46  ;;  %871 = vperm.xlu1 %1461, %v845_v56  }
 0x11a   : > { %866 = vperm.xlu0 %1460, %v844_v55  }
 0x11c   : > { %1288 = vmatmul.mubr.msk.f32.gmra.mrb[4].mxu0 %vm418_vm2, %v384_v47 }
 0x11d   : > { %1290 = vmatprep.mubr.msk.f32.mxu0 %vm418_vm2, %v385_v48  ;;  %881 = vperm.xlu1 %1461, %v847_v58  }
 0x11e   : > { %876 = vperm.xlu0 %1460, %v846_v57  }
 0x120   : > { %1291 = vmatmul.mubr.msk.f32.gmra.mrb[6].mxu0 %vm418_vm2, %v386_v49 }
 0x121   : > { %1305 = vmatprep.mubr.msk.f32.mxu0 %vm418_vm2, %v1181_v50 }
 0x122   : > { %886 = vperm.xlu0 %1460, %v848_v59  }
 0x17b   : > { %v1447_v61 = vpop.permute.xlu1 %1446 }
 0x17c   : > { %v1449_v62 = vunpack.i.h.bf16 %v1447_v61  ;;  %v1448_v63 = vunpack.i.l.bf16 %v1447_v61  ;;  %v1432_v0 = vpop.permute.xlu0 %1431 }
 0x17d   : > { %v1434_v3 = vunpack.i.h.bf16 %v1432_v0  ;;  %v1433_v4 = vunpack.i.l.bf16 %v1432_v0 }
 0x17e   : > { %v1345_v5 = vpack.c.bf16 %v1449_v62, %v1448_v63 }
 0x17f   : > { %v1317_v6 = vpack.c.bf16 %v1434_v3, %v1433_v4  ;;  %v1457_v9 = vpop.permute.xlu1 %1456 }
 0x180   : > { %v1442_v7 = vpop.permute.xlu0 %1441  ;;  %1346 = vmatprep.subr.bf16.mxu0 %v1345_v5  ;;  %v1459_v12 = vunpack.i.h.bf16 %v1457_v9  ;;  %v1458_v14 = vunpack.i.l.bf16 %v1457_v9 }
 0x181   : > { %v1444_v10 = vunpack.i.h.bf16 %v1442_v7  ;;  %v1443_v11 = vunpack.i.l.bf16 %v1442_v7  ;;  %1318 = vmatprep.subr.bf16.mxu1 %v1317_v6  ;;  %1348 = vmatpush3.bf16.msra.mxu0 %v1345_v5 }
 0x182   : > { %1320 = vmatpush3.bf16.msra.mxu1 %v1317_v6  ;;  %v1353_v19 = vpack.c.bf16 %v1459_v12, %v1458_v14 }
 0x183   : > { %1322 = vmatprep.subr.bf16.mxu1 %v1321_v8  ;;  %v1325_v15 = vpack.c.bf16 %v1444_v10, %v1443_v11 }
 0x184   : > { %v1452_v13 = vpop.permute.xlu0 %1451 }
 0x185   : > { %v1454_v16 = vunpack.i.h.bf16 %v1452_v13  ;;  %v1453_v17 = vunpack.i.l.bf16 %v1452_v13 }
 0x186   : > { %1324 = vmatpush3.bf16.msra.mxu1 %v1321_v8 }
 0x187   : > { %v1349_v18 = vpack.c.bf16 %v1454_v16, %v1453_v17  ;;  %1326 = vmatprep.subr.bf16.mxu1 %v1325_v15 }
 0x189   : > { %1350 = vmatprep.subr.bf16.mxu0 %v1349_v18 }
 0x18a   : > { %1328 = vmatpush3.bf16.msra.mxu1 %v1325_v15  ;;  %1352 = vmatpush3.bf16.msra.mxu0 %v1349_v18 }
 0x18b   : > { %1357 = vmatprep.subr.bf16.mxu1 %v1345_v5  ;;  %1354 = vmatprep.subr.bf16.mxu0 %v1353_v19 }
 0x18d   : > { %1258 = vmatmul.mubr.msk.f32.vlgmr.msra.gmra.mrb[0].mxu1 %vm418_vm2, %v1150_v20 }
 0x18e   : > { %1360 = vmatpush3.bf16.msra.mxu1 %v1345_v5  ;;  %1356 = vmatpush3.bf16.msra.mxu0 %v1353_v19 }
 0x18f   : > { %1358 = vmatprep.subr.bf16.mxu1 %v1349_v18  ;;  %1260 = vmatprep.mubr.msk.f32.mxu1 %vm418_vm2, %v1151_v21 }
 0x190   : > { %v857_v40 = vpop.permute.xlu1 %856 }
 0x191   : > { %1261 = vmatmul.mubr.msk.f32.gmra.mrb[2].mxu1 %vm418_vm2, %v1152_v22  ;;  %1306 = vmatmul.mubr.msk.f32.vlgmr.msra.gmra.mrb[0].mxu0 %vm418_vm2, %v1182_v23 }
 0x192   : > { %1361 = vmatpush3.bf16.msra.mxu1 %v1349_v18  ;;  %1263 = vmatprep.mubr.msk.f32.mxu1 %vm418_vm2, %v1153_v24 }
 0x193   : > { %1359 = vmatprep.subr.bf16.mxu1 %v1353_v19  ;;  %1308 = vmatprep.mubr.msk.f32.mxu0 %vm418_vm2, %v1183_v25 }
 0x194   : > { %v862_v63 = vpop.permute.xlu1 %861 }
 0x195   : > { %1264 = vmatmul.mubr.msk.f32.gmra.mrb[4].mxu1 %vm418_vm2, %v1154_v26  ;;  %1309 = vmatmul.mubr.msk.f32.gmra.mrb[2].mxu0 %vm418_vm2, %v1184_v27  ;;  %v852_v41 = vpop.permute.xlu0 %851 }
 0x196   : > { %1362 = vmatpush3.bf16.msra.mxu1 %v1353_v19  ;;  %1266 = vmatprep.mubr.msk.f32.mxu1 %vm418_vm2, %v1155_v28 }
 0x198   : > { %v872_v10 = vpop.permute.xlu1 %871 }
 0x199   : > { %1267 = vmatmul.mubr.msk.f32.gmra.mrb[6].mxu1 %vm418_vm2, %v1156_v29  ;;  %v867_v58 = vpop.permute.xlu0 %866 }
 0x19a   : > { %1311 = vmatprep.mubr.msk.f32.mxu1 %vm418_vm2, %v1185_v30 }
 0x19c   : > { %v882_v27 = vpop.permute.xlu1 %881 }
 0x19d   : > { %1312 = vmatmul.mubr.msk.f32.vlgmr.msra.gmra.mrb[8].mxu1 %vm418_vm2, %v1186_v31  ;;  %v877_v8 = vpop.permute.xlu0 %876 }
 0x19e   : > { %1314 = vmatprep.mubr.msk.f32.mxu1 %vm418_vm2, %v1187_v32 }
 0x1a1   : > { %1315 = vmatmul.mubr.msk.f32.gmra.mrb[10].mxu1 %vm418_vm2, %v1188_v33  ;;  %v887_v24 = vpop.permute.xlu0 %886 }
 0x1ef   : > { %v1289_v34 = vpop.f32.mrb[4].mxu0 }
 0x1f0   : > { %v658_v35 = vpop.f32.mrb[5].mxu0 }
 0x1f3   : > { %v1292_v36 = vpop.f32.mrb[6].mxu0 }
 0x1f4   : > { %v668_v37 = vpop.f32.mrb[7].mxu0 }
 0x260   : > { %v1259_v38 = vpop.f32.mrb[0].mxu1 }
 0x261   : > { %v509_v39 = vpop.f32.mrb[1].mxu1 }
 0x264   : > { %v1307_v42 = vpop.f32.mrb[0].mxu0  ;;  %v1262_v43 = vpop.f32.mrb[2].mxu1 }
 0x265   : > { %v1363_v44 = vadd.f32 %v1307_v42, %v1259_v38  ;;  %v794_v45 = vpop.f32.mrb[1].mxu0  ;;  %v519_v46 = vpop.f32.mrb[3].mxu1 }
 0x266   : > { %v1364_v47 = vadd.f32 %v794_v45, %v509_v39 }
 0x267   : > { %v890_v48 = vadd.f32 %v1363_v44, %v857_v40 }
 0x268   : > { %v889_v49 = vadd.f32 %v1364_v47, %v852_v41  ;;  %v1265_v50 = vpop.f32.mrb[4].mxu1  ;;  %v1310_v51 = vpop.f32.mrb[2].mxu0 }
 0x269   : > { %899 = vst.msk [vmem:[%s1701_s14 + $0x8] sm:$0xff] %vm897_vm11, %v890_v48  ;;  %v664_v52 = vadd.f32 %v1289_v34, %v1265_v50  ;;  %v1365_v53 = vadd.f32 %v1310_v51, %v1262_v43  ;;  %v529_v54 = vpop.f32.mrb[5].mxu1  ;;  %v804_v55 = vpop.f32.mrb[3].mxu0  ;;  %v909_v56 = vsel %vm897_vm11, %v890_v48, 0.0  ;;  %v931_v57 = vmul.f32 %v890_v48, %v890_v48 }
 0x26a   : > { %898 = vst.msk [vmem:[%s1701_s14] sm:$0xff] %vm897_vm11, %v889_v49  ;;  %v659_v59 = vadd.f32 %v658_v35, %v529_v54  ;;  %v1366_v60 = vadd.f32 %v804_v55, %v519_v46  ;;  %910 = vadd.xlane.f32.xlu0 %v909_v56  ;;  %v906_v61 = vsel %vm897_vm11, %v889_v49, 0.0  ;;  %v930_v62 = vmul.f32 %v889_v49, %v889_v49 }
 0x26b   : > { %v892_v0 = vadd.f32 %v1365_v53, %v867_v58  ;;  %907 = vadd.xlane.f32.xlu1 %v906_v61  ;;  %v941_v7 = vsel %vm897_vm11, %v931_v57, 0.0 }
 0x26c   : > { %v891_v1 = vadd.f32 %v1366_v60, %v862_v63  ;;  %v1268_v2 = vpop.f32.mrb[6].mxu1  ;;  %v938_v3 = vsel %vm897_vm11, %v930_v62, 0.0 }
 0x26d   : > { %901 = vst.msk [vmem:[%s1701_s14 + $0x18] sm:$0xff] %vm897_vm11, %v892_v0  ;;  %v674_v4 = vadd.f32 %v1292_v36, %v1268_v2  ;;  %v539_v5 = vpop.f32.mrb[7].mxu1  ;;  %v915_v16 = vsel %vm897_vm11, %v892_v0, 0.0  ;;  %v933_v17 = vmul.f32 %v892_v0, %v892_v0 }
 0x26e   : > { %900 = vst.msk [vmem:[%s1701_s14 + $0x10] sm:$0xff] %vm897_vm11, %v891_v1  ;;  %v669_v6 = vadd.f32 %v668_v37, %v539_v5  ;;  %939 = vadd.xlane.f32.xlu0 %v938_v3  ;;  %v912_v13 = vsel %vm897_vm11, %v891_v1, 0.0  ;;  %v932_v14 = vmul.f32 %v891_v1, %v891_v1 }
 0x26f   : > { %942 = vadd.xlane.f32.xlu1 %v941_v7  ;;  %v947_v26 = vsel %vm897_vm11, %v933_v17, 0.0 }
 0x270   : > { %v1313_v9 = vpop.f32.mrb[8].mxu1  ;;  %v944_v23 = vsel %vm897_vm11, %v932_v14, 0.0 }
 0x271   : > { %v838_v11 = vadd.f32 %v1313_v9, %v664_v52  ;;  %v814_v12 = vpop.f32.mrb[9].mxu1 }
 0x272   : > { %v837_v15 = vadd.f32 %v814_v12, %v659_v59  ;;  %913 = vadd.xlane.f32.xlu0 %v912_v13 }
 0x273   : > { %v894_v18 = vadd.f32 %v877_v8, %v838_v11  ;;  %916 = vadd.xlane.f32.xlu1 %v915_v16 }
 0x274   : > { %v893_v19 = vadd.f32 %v872_v10, %v837_v15  ;;  %v1316_v20 = vpop.f32.mrb[10].mxu1 }
 0x275   : > { %903 = vst.msk [vmem:[%s1701_s14 + $0x28] sm:$0xff] %vm897_vm11, %v894_v18  ;;  %v840_v21 = vadd.f32 %v1316_v20, %v674_v4  ;;  %v824_v22 = vpop.f32.mrb[11].mxu1  ;;  %v921_v32 = vsel %vm897_vm11, %v894_v18, 0.0  ;;  %v935_v33 = vmul.f32 %v894_v18, %v894_v18 }
 0x276   : > { %902 = vst.msk [vmem:[%s1701_s14 + $0x20] sm:$0xff] %vm897_vm11, %v893_v19  ;;  %v839_v25 = vadd.f32 %v824_v22, %v669_v6  ;;  %945 = vadd.xlane.f32.xlu0 %v944_v23  ;;  %v918_v30 = vsel %vm897_vm11, %v893_v19, 0.0  ;;  %v934_v31 = vmul.f32 %v893_v19, %v893_v19 }
 0x277   : > { %v896_v28 = vadd.f32 %v887_v24, %v840_v21  ;;  %948 = vadd.xlane.f32.xlu1 %v947_v26  ;;  %v953_v35 = vsel %vm897_vm11, %v935_v33, 0.0 }
 0x278   : > { %v895_v29 = vadd.f32 %v882_v27, %v839_v25  ;;  %v950_v34 = vsel %vm897_vm11, %v934_v31, 0.0 }
 0x279   : > { %905 = vst.msk [vmem:[%s1701_s14 + $0x38] sm:$0xff] %vm897_vm11, %v896_v28  ;;  %v927_v38 = vsel %vm897_vm11, %v896_v28, 0.0  ;;  %v937_v39 = vmul.f32 %v896_v28, %v896_v28 }
 0x27a   : > { %904 = vst.msk [vmem:[%s1701_s14 + $0x30] sm:$0xff] %vm897_vm11, %v895_v29  ;;  %919 = vadd.xlane.f32.xlu0 %v918_v30  ;;  %v924_v36 = vsel %vm897_vm11, %v895_v29, 0.0  ;;  %v936_v37 = vmul.f32 %v895_v29, %v895_v29 }
 0x27b   : > { %922 = vadd.xlane.f32.xlu1 %v921_v32  ;;  %v959_v41 = vsel %vm897_vm11, %v937_v39, 0.0 }
 0x27c   : > { %v956_v40 = vsel %vm897_vm11, %v936_v37, 0.0 }
 0x27e   : > { %951 = vadd.xlane.f32.xlu0 %v950_v34 }
 0x27f   : > { %954 = vadd.xlane.f32.xlu1 %v953_v35 }
 0x282   : > { %925 = vadd.xlane.f32.xlu0 %v924_v36 }
 0x283   : > { %928 = vadd.xlane.f32.xlu1 %v927_v38 }
 0x286   : > { %957 = vadd.xlane.f32.xlu0 %v956_v40 }
 0x287   : > { %960 = vadd.xlane.f32.xlu1 %v959_v41 }
 0x2f7   : > { %v911_v42 = vpop.xlane.xlu0 %910 }
 0x2f8   : > { %v908_v43 = vpop.xlane.xlu1 %907 }
 0x2fb   : > { %v940_v44 = vpop.xlane.xlu0 %939 }
 0x2fc   : > { %v962_v45 = vsel %vm362_vm4, %v908_v43, %v940_v44  ;;  %v943_v46 = vpop.xlane.xlu1 %942 }
 0x2fd   : > { %971 = vst.msk [vmem:[%s1740_s17] sm:$0xff] %vm970_vm12, %v962_v45  ;;  %v963_v47 = vsel %vm362_vm4, %v911_v42, %v943_v46 }
 0x2fe   : > { %972 = vst.msk [vmem:[%s1740_s17 + $0x8] sm:$0xff] %vm970_vm12, %v963_v47 }
 0x2ff   : > { %v914_v48 = vpop.xlane.xlu0 %913 }
 0x300   : > { %v917_v49 = vpop.xlane.xlu1 %916 }
 0x303   : > { %v946_v50 = vpop.xlane.xlu0 %945 }
 0x304   : > { %v964_v51 = vsel %vm362_vm4, %v914_v48, %v946_v50  ;;  %v949_v52 = vpop.xlane.xlu1 %948 }
 0x305   : > { %973 = vst.msk [vmem:[%s1740_s17 + $0x10] sm:$0xff] %vm970_vm12, %v964_v51  ;;  %v965_v53 = vsel %vm362_vm4, %v917_v49, %v949_v52 }
 0x306   : > { %974 = vst.msk [vmem:[%s1740_s17 + $0x18] sm:$0xff] %vm970_vm12, %v965_v53 }
 0x307   : > { %v920_v54 = vpop.xlane.xlu0 %919 }
 0x308   : > { %v923_v55 = vpop.xlane.xlu1 %922 }
 0x30b   : > { %v952_v56 = vpop.xlane.xlu0 %951 }
 0x30c   : > { %v966_v57 = vsel %vm362_vm4, %v920_v54, %v952_v56  ;;  %v955_v58 = vpop.xlane.xlu1 %954 }
 0x30d   : > { %975 = vst.msk [vmem:[%s1740_s17 + $0x20] sm:$0xff] %vm970_vm12, %v966_v57  ;;  %v967_v59 = vsel %vm362_vm4, %v923_v55, %v955_v58 }
 0x30e   : > { %976 = vst.msk [vmem:[%s1740_s17 + $0x28] sm:$0xff] %vm970_vm12, %v967_v59 }
 0x30f   : > { %v926_v60 = vpop.xlane.xlu0 %925 }
 0x310   : > { %v929_v61 = vpop.xlane.xlu1 %928 }
 0x313   : > { %v958_v62 = vpop.xlane.xlu0 %957 }
 0x314   : > { %v968_v63 = vsel %vm362_vm4, %v926_v60, %v958_v62  ;;  %v961_v0 = vpop.xlane.xlu1 %960 }
 0x315   : > { %977 = vst.msk [vmem:[%s1740_s17 + $0x30] sm:$0xff] %vm970_vm12, %v968_v63  ;;  %v969_v1 = vsel %vm362_vm4, %v929_v61, %v961_v0 }
 0x316   : > { %978 = vst.msk [vmem:[%s1740_s17 + $0x38] sm:$0xff] %vm970_vm12, %v969_v1 }
 0x317 PF: > { %s16_s20 = sadd.s32 1, %s1484_s20   ;;  %s1785_s18 = smov %s1480_s19 }
 0x318   : > { %p13_p5 = scmp.ge.s32.totalorder %s16_s20, 4   ;;  %s1786_s19 = smov %s1788_s21 }
 0x31a   :  { %15 = sbr.rel (!%p13_p5) target bundleno = 2 (0x2), region = 83 }

// kernel: wavemix_forward.12
= control target key start
LH: loop header
LB: loop body
LE: loop exit
PB: predicated region body
PF: predicated region fallthrough
CT: control target
= control target key end

     0   :  { %s599_s15 = smov 0   ;;  %s601_s16 = smov 0   ;;  %s715_s0 = inlined_call_operand.vmem [shape: f32[2,64,64], index: 0, kind: input, shape index: {}, may-alias: {0,4}]   ;;  %s716_s1 = inlined_call_operand.vmem [shape: f32[2,64,64], index: 1, kind: input, shape index: {}]   ;;  %s717_s2 = inlined_call_operand.vmem [shape: f32[64,1], index: 2, kind: input, shape index: {}]   ;;  %s718_s3 = inlined_call_operand.vmem [shape: f32[64,1], index: 3, kind: input, shape index: {}]   ;;  %s719_s4 = inlined_call_operand.vmem [shape: f32[2,64,64], index: 4, kind: output, shape index: {}, may-alias: {0,4}]  }
   0x1   :  { %s603_s17 = smov 0  }
   0x2 LB: > { %s26_s18 = sadd.s32 1, %s567_s16  ;;  %p510_p0 = scmp.ge.s32.totalorder %s571_s17, 1  ;;  %s571_s17 = sphi %s603_s17, %s14_s17   ;;  %s567_s16 = sphi %s601_s16, %s721_s16   ;;  %s563_s15 = sphi %s599_s15, %s720_s15  }
   0x3   : > { %p28_p1 = scmp.ge.s32.totalorder %s26_s18, 2  ;;  %p196_p2 = scmp.lt.s32.totalorder %s571_s17, 3 }
   0x5   : > { %s723_s18 = smov (%p28_p1, %s26_s18), 0  ;;  %p197_p3 = pnand %p510_p0, %p196_p2 }
   0x6   : > { %v270_v0 = vld [vmem:[%s717_s2 + $0x10] sm:$0xff] (!%p197_p3)  ;;  %v268_v1 = vld [vmem:[%s717_s2] sm:$0xff] (!%p197_p3)  ;;  %v573_v2 = vmov (!%p197_p3), 0   ;;  %v271_v3 = vld [vmem:[%s717_s2 + $0x18] sm:$0xff] (!%p197_p3)  ;;  %p236_p4 = scmp.lt.s32.totalorder (!%p197_p3), %s563_s15, 1  ;;  %vm396_vm0 = vcmask (!%p197_p3), 523264  }
   0x7   : > { %200 = sbr.rel (%p197_p3) target bundleno = 169 (0xa9), region = 36  ;;  %548 = vset.pattern.permute.xlu1 (!%p197_p3), %v573_v2  ;;  %547 = vset.pattern.permute.xlu0 (!%p197_p3), %v573_v2  ;;  %v269_v4 = vld [vmem:[%s717_s2 + $0x8] sm:$0xff] (!%p197_p3)  ;;  %v272_v6 = vld [vmem:[%s717_s2 + $0x20] sm:$0xff] (!%p197_p3)  ;;  %v275_v7 = vld [vmem:[%s717_s2 + $0x38] sm:$0xff] (!%p197_p3) }
   0x8   : > { %288 = vperm.xlu1 (!%p197_p3), %548, %v270_v0   ;;  %278 = vperm.xlu0 (!%p197_p3), %547, %v268_v1   ;;  %v273_v5 = vld [vmem:[%s717_s2 + $0x28] sm:$0xff] (!%p197_p3)  ;;  %v274_v8 = vld [vmem:[%s717_s2 + $0x30] sm:$0xff] (!%p197_p3)  ;;  %v324_v10 = vld [vmem:[%s718_s3] sm:$0xff] (!%p197_p3) }
   0x9   : > { %v325_v9 = vld [vmem:[%s718_s3 + $0x8] sm:$0xff] (!%p197_p3)  ;;  %v327_v11 = vld [vmem:[%s718_s3 + $0x18] sm:$0xff] (!%p197_p3)  ;;  %v326_v12 = vld [vmem:[%s718_s3 + $0x10] sm:$0xff] (!%p197_p3) }
   0xa   : > { %v329_v13 = vld [vmem:[%s718_s3 + $0x28] sm:$0xff] (!%p197_p3)  ;;  %v328_v14 = vld [vmem:[%s718_s3 + $0x20] sm:$0xff] (!%p197_p3)  ;;  %v331_v15 = vld [vmem:[%s718_s3 + $0x38] sm:$0xff] (!%p197_p3) }
   0xb   : > { %v330_v16 = vld [vmem:[%s718_s3 + $0x30] sm:$0xff] (!%p197_p3) }
   0xc   : > { %293 = vperm.xlu1 (!%p197_p3), %548, %v271_v3   ;;  %283 = vperm.xlu0 (!%p197_p3), %547, %v269_v4  }
   0xe   : > { %s725_s15 = smov (!%p236_p4, %s563_s15), 1 }
   0xf   : > { %s519_s29 = sshll.u32 %s725_s15, 6 }
  0x10   : > { %303 = vperm.xlu1 %548, %v273_v5   ;;  %298 = vperm.xlu0 %547, %v272_v6   ;;  %s243_s6 = scalar_lea.vmem %s715_s0, %s519_s29  ;;  %s675_s9 = scalar_lea.vmem %s716_s1, %s519_s29 }
  0x11   : > { %v260_v23 = vld [vmem:[%s243_s6] sm:$0xff]  ;;  %v261_v24 = vld [vmem:[%s243_s6 + $0x8] sm:$0xff]  ;;  %v262_v27 = vld [vmem:[%s243_s6 + $0x10] sm:$0xff]  ;;  %s682_s11 = scalar_lea.vmem %s719_s4, %s519_s29 }
  0x12   : > { %v263_v30 = vld [vmem:[%s243_s6 + $0x18] sm:$0xff]  ;;  %v381_v32 = vld [vmem:[%s675_s9 + $0x8] sm:$0xff]  ;;  %v380_v34 = vld [vmem:[%s675_s9] sm:$0xff] }
  0x13   : > { %v265_v39 = vld [vmem:[%s243_s6 + $0x28] sm:$0xff]  ;;  %v264_v40 = vld [vmem:[%s243_s6 + $0x20] sm:$0xff]  ;;  %v267_v41 = vld [vmem:[%s243_s6 + $0x38] sm:$0xff] }
  0x14   : > { %313 = vperm.xlu1 %548, %v275_v7   ;;  %308 = vperm.xlu0 %547, %v274_v8   ;;  %v266_v44 = vld [vmem:[%s243_s6 + $0x30] sm:$0xff]  ;;  %v383_v46 = vld [vmem:[%s675_s9 + $0x18] sm:$0xff]  ;;  %v385_v56 = vld [vmem:[%s675_s9 + $0x28] sm:$0xff] }
  0x15   : > { %v382_v48 = vld [vmem:[%s675_s9 + $0x10] sm:$0xff]  ;;  %v384_v58 = vld [vmem:[%s675_s9 + $0x20] sm:$0xff]  ;;  %v387_v2 = vld [vmem:[%s675_s9 + $0x38] sm:$0xff] }
  0x16   : > { %v386_v4 = vld [vmem:[%s675_s9 + $0x30] sm:$0xff] }
  0x18   : > { %339 = vperm.xlu1 %548, %v325_v9   ;;  %334 = vperm.xlu0 %547, %v324_v10  }
  0x1c   : > { %349 = vperm.xlu1 %548, %v327_v11   ;;  %344 = vperm.xlu0 %547, %v326_v12  }
  0x20   : > { %359 = vperm.xlu1 %548, %v329_v13   ;;  %354 = vperm.xlu0 %547, %v328_v14  }
  0x24   : > { %369 = vperm.xlu1 %548, %v331_v15   ;;  %364 = vperm.xlu0 %547, %v330_v16  }
  0x87   : > { %v289_v17 = vpop.permute.xlu1 %288  ;;  %v279_v18 = vpop.permute.xlu0 %278 }
  0x88   : > { %v316_v28 = vmul.f32 %v279_v18, %v260_v23  ;;  %v318_v37 = vmul.f32 %v289_v17, %v262_v27 }
  0x8b   : > { %v294_v19 = vpop.permute.xlu1 %293  ;;  %v284_v20 = vpop.permute.xlu0 %283 }
  0x8c   : > { %v317_v29 = vmul.f32 %v284_v20, %v261_v24  ;;  %v319_v38 = vmul.f32 %v294_v19, %v263_v30 }
  0x8f   : > { %v304_v21 = vpop.permute.xlu1 %303  ;;  %v299_v22 = vpop.permute.xlu0 %298 }
  0x90   : > { %v321_v51 = vmul.f32 %v304_v21, %v265_v39  ;;  %v320_v52 = vmul.f32 %v299_v22, %v264_v40 }
  0x93   : > { %v314_v25 = vpop.permute.xlu1 %313  ;;  %v309_v26 = vpop.permute.xlu0 %308 }
  0x94   : > { %v323_v61 = vmul.f32 %v314_v25, %v267_v41  ;;  %v322_v62 = vmul.f32 %v309_v26, %v266_v44 }
  0x97   : > { %v340_v31 = vpop.permute.xlu1 %339  ;;  %v335_v33 = vpop.permute.xlu0 %334 }
  0x98   : > { %v373_v35 = vadd.f32 %v340_v31, %v317_v29  ;;  %v372_v36 = vadd.f32 %v335_v33, %v316_v28 }
  0x9a   : > { %v389_v42 = vadd.f32 %v381_v32, %v373_v35  ;;  %v388_v43 = vadd.f32 %v380_v34, %v372_v36 }
  0x9b   : > { %v350_v45 = vpop.permute.xlu1 %349  ;;  %v345_v47 = vpop.permute.xlu0 %344 }
  0x9c   : > { %398 = vst.msk [vmem:[%s682_s11 + $0x8] sm:$0xff] %vm396_vm0, %v389_v42  ;;  %397 = vst.msk [vmem:[%s682_s11] sm:$0xff] %vm396_vm0, %v388_v43  ;;  %v375_v49 = vadd.f32 %v350_v45, %v319_v38  ;;  %v374_v50 = vadd.f32 %v345_v47, %v318_v37 }
  0x9e   : > { %v391_v53 = vadd.f32 %v383_v46, %v375_v49  ;;  %v390_v54 = vadd.f32 %v382_v48, %v374_v50 }
  0x9f   : > { %v360_v55 = vpop.permute.xlu1 %359  ;;  %v355_v57 = vpop.permute.xlu0 %354 }
  0xa0   : > { %400 = vst.msk [vmem:[%s682_s11 + $0x18] sm:$0xff] %vm396_vm0, %v391_v53  ;;  %399 = vst.msk [vmem:[%s682_s11 + $0x10] sm:$0xff] %vm396_vm0, %v390_v54  ;;  %v377_v59 = vadd.f32 %v360_v55, %v321_v51  ;;  %v376_v60 = vadd.f32 %v355_v57, %v320_v52 }
  0xa2   : > { %v393_v63 = vadd.f32 %v385_v56, %v377_v59  ;;  %v392_v0 = vadd.f32 %v384_v58, %v376_v60 }
  0xa3   : > { %v370_v1 = vpop.permute.xlu1 %369  ;;  %v365_v3 = vpop.permute.xlu0 %364 }
  0xa4   : > { %402 = vst.msk [vmem:[%s682_s11 + $0x28] sm:$0xff] %vm396_vm0, %v393_v63  ;;  %401 = vst.msk [vmem:[%s682_s11 + $0x20] sm:$0xff] %vm396_vm0, %v392_v0  ;;  %v379_v5 = vadd.f32 %v370_v1, %v323_v61  ;;  %v378_v6 = vadd.f32 %v365_v3, %v322_v62 }
  0xa6   : > { %v395_v7 = vadd.f32 %v387_v2, %v379_v5  ;;  %v394_v8 = vadd.f32 %v386_v4, %v378_v6 }
  0xa8   : > { %404 = vst.msk [vmem:[%s682_s11 + $0x38] sm:$0xff] %vm396_vm0, %v395_v7  ;;  %403 = vst.msk [vmem:[%s682_s11 + $0x30] sm:$0xff] %vm396_vm0, %v394_v8 }
  0xa9 PF: > { %s14_s17 = sadd.s32 1, %s571_s17   ;;  %s720_s15 = smov %s567_s16 }
  0xaa   : > { %p11_p5 = scmp.ge.s32.totalorder %s14_s17, 4   ;;  %s721_s16 = smov %s723_s18 }
  0xac   :  { %13 = sbr.rel (!%p11_p5) target bundleno = 2 (0x2), region = 69 }

// kernel: wavemix_forward.15
= control target key start
LH: loop header
LB: loop body
LE: loop exit
PB: predicated region body
PF: predicated region fallthrough
CT: control target
= control target key end

     0   :  { %s800_s21 = smov 0   ;;  %s802_s22 = smov 0   ;;  %s927_s0 = inlined_call_operand.vmem [shape: f32[2,64,64], index: 0, kind: input, shape index: {}]   ;;  %s928_s1 = inlined_call_operand.vmem [shape: f32[2,64,64], index: 1, kind: input, shape index: {}]   ;;  %s929_s2 = inlined_call_operand.vmem [shape: f32[64,1], index: 2, kind: input, shape index: {}]   ;;  %s930_s3 = inlined_call_operand.vmem [shape: f32[64,1], index: 3, kind: input, shape index: {}]   ;;  %s931_s4 = inlined_call_operand.vmem [shape: f32[12,64], index: 4, kind: input, shape index: {}]   ;;  %s932_s5 = inlined_call_operand.vmem [shape: f32[12,1], index: 5, kind: input, shape index: {}]   ;;  %s933_s6 = inlined_call_operand.vmem [shape: f32[2,12,64], index: 6, kind: output, shape index: {}]  }
   0x1   :  { %s804_s23 = smov 0  }
   0x2 LB: > { %s28_s24 = sadd.s32 1, %s758_s22  ;;  %p654_p0 = scmp.ge.s32.totalorder %s762_s23, 1  ;;  %s762_s23 = sphi %s804_s23, %s16_s23   ;;  %s758_s22 = sphi %s802_s22, %s935_s22   ;;  %s754_s21 = sphi %s800_s21, %s934_s21  }
   0x3   : > { %p30_p1 = scmp.ge.s32.totalorder %s28_s24, 2  ;;  %p246_p2 = scmp.lt.s32.totalorder %s762_s23, 3 }
   0x5   : > { %s937_s24 = smov (%p30_p1, %s28_s24), 0  ;;  %p247_p3 = pnand %p654_p0, %p246_p2 }
   0x6   : > { %v378_v0 = vld [vmem:[%s930_s3] sm:$0xff] (!%p247_p3)  ;;  %v764_v2 = vmov (!%p247_p3), 0   ;;  %v379_v3 = vld [vmem:[%s930_s3 + $0x8] sm:$0xff] (!%p247_p3)  ;;  %v325_v5 = vld [vmem:[%s929_s2 + $0x18] sm:$0xff] (!%p247_p3)  ;;  %vm464_vm0 = vcmask (!%p247_p3), 523264   ;;  %p290_p4 = scmp.lt.s32.totalorder (!%p247_p3), %s754_s21, 1 }
   0x7   : > { %250 = sbr.rel (%p247_p3) target bundleno = 390 (0x186), region = 44  ;;  %v322_v1 = vld [vmem:[%s929_s2] sm:$0xff] (!%p247_p3)  ;;  %739 = vset.pattern.permute.xlu1 (!%p247_p3), %v764_v2  ;;  %738 = vset.pattern.permute.xlu0 (!%p247_p3), %v764_v2  ;;  %v323_v4 = vld [vmem:[%s929_s2 + $0x8] sm:$0xff] (!%p247_p3)  ;;  %v324_v6 = vld [vmem:[%s929_s2 + $0x10] sm:$0xff] (!%p247_p3)  ;;  %vm547_vm1 = vcmask (!%p247_p3), 519168  }
   0x8   : > { %388 = vperm.xlu1 (!%p247_p3), %739, %v378_v0   ;;  %332 = vperm.xlu0 (!%p247_p3), %738, %v322_v1   ;;  %v381_v7 = vld [vmem:[%s930_s3 + $0x18] sm:$0xff] (!%p247_p3)  ;;  %v380_v8 = vld [vmem:[%s930_s3 + $0x10] sm:$0xff] (!%p247_p3)  ;;  %v327_v9 = vld [vmem:[%s929_s2 + $0x28] sm:$0xff] (!%p247_p3) }
   0x9   : > { %v326_v10 = vld [vmem:[%s929_s2 + $0x20] sm:$0xff] (!%p247_p3)  ;;  %v383_v11 = vld [vmem:[%s930_s3 + $0x28] sm:$0xff] (!%p247_p3)  ;;  %v329_v13 = vld [vmem:[%s929_s2 + $0x38] sm:$0xff] (!%p247_p3) }
   0xa   : > { %v382_v12 = vld [vmem:[%s930_s3 + $0x20] sm:$0xff] (!%p247_p3)  ;;  %v328_v14 = vld [vmem:[%s929_s2 + $0x30] sm:$0xff] (!%p247_p3)  ;;  %v385_v15 = vld [vmem:[%s930_s3 + $0x38] sm:$0xff] (!%p247_p3) }
   0xb   : > { %v384_v16 = vld [vmem:[%s930_s3 + $0x30] sm:$0xff] (!%p247_p3)  ;;  %v453_v17 = vld [vmem:[%s932_s5 + $0x8] sm:$0xf] (!%p247_p3)  ;;  %v452_v18 = vld [vmem:[%s932_s5] sm:$0xff] (!%p247_p3) }
   0xc   : > { %393 = vperm.xlu1 (!%p247_p3), %739, %v379_v3   ;;  %337 = vperm.xlu0 (!%p247_p3), %738, %v323_v4   ;;  %v450_v19 = vld [vmem:[%s931_s4] sm:$0xff] (!%p247_p3) }
   0xd   : > { %694 = vmatprep.mubr.msk.f32.mxu0 (!%p247_p3), %vm464_vm0, %v450_v19 }
   0xe   : > { %s939_s21 = smov (!%p290_p4, %s754_s21), 1 }
   0xf   : > { %s665_s19 = sshll.u32 %s939_s21, 6  ;;  %s667_s8 = sshll.u32 %s939_s21, 4 }
  0x10   : > { %347 = vperm.xlu1 %739, %v325_v5   ;;  %342 = vperm.xlu0 %738, %v324_v6   ;;  %s886_s26 = scalar_lea.vmem %s927_s0, %s665_s19  ;;  %s893_s29 = scalar_lea.vmem %s928_s1, %s665_s19 }
  0x11   : > { %v314_v20 = vld [vmem:[%s886_s26] sm:$0xff]  ;;  %v315_v24 = vld [vmem:[%s886_s26 + $0x8] sm:$0xff]  ;;  %v317_v33 = vld [vmem:[%s886_s26 + $0x18] sm:$0xff]  ;;  %s313_s11 = scalar_lea.vmem %s933_s6, %s667_s8 }
  0x12   : > { %v434_v29 = vld [vmem:[%s893_s29] sm:$0xff]  ;;  %v435_v30 = vld [vmem:[%s893_s29 + $0x8] sm:$0xff]  ;;  %v316_v35 = vld [vmem:[%s886_s26 + $0x10] sm:$0xff] }
  0x13   : > { %v437_v42 = vld [vmem:[%s893_s29 + $0x18] sm:$0xff]  ;;  %v436_v44 = vld [vmem:[%s893_s29 + $0x10] sm:$0xff]  ;;  %v319_v50 = vld [vmem:[%s886_s26 + $0x28] sm:$0xff] }
  0x14   : > { %403 = vperm.xlu1 %739, %v381_v7   ;;  %398 = vperm.xlu0 %738, %v380_v8   ;;  %v318_v52 = vld [vmem:[%s886_s26 + $0x20] sm:$0xff]  ;;  %v439_v57 = vld [vmem:[%s893_s29 + $0x28] sm:$0xff]  ;;  %v321_v1 = vld [vmem:[%s886_s26 + $0x38] sm:$0xff] }
  0x15   : > { %v438_v59 = vld [vmem:[%s893_s29 + $0x20] sm:$0xff]  ;;  %v320_v3 = vld [vmem:[%s886_s26 + $0x30] sm:$0xff]  ;;  %v441_v8 = vld [vmem:[%s893_s29 + $0x38] sm:$0xff] }
  0x18   : > { %357 = vperm.xlu1 %739, %v327_v9   ;;  %352 = vperm.xlu0 %738, %v326_v10   ;;  %v440_v10 = vld [vmem:[%s893_s29 + $0x30] sm:$0xff] }
  0x1c   : > { %413 = vperm.xlu1 %739, %v383_v11   ;;  %408 = vperm.xlu0 %738, %v382_v12  }
  0x20   : > { %367 = vperm.xlu1 %739, %v329_v13   ;;  %362 = vperm.xlu0 %738, %v328_v14  }
  0x24   : > { %423 = vperm.xlu1 %739, %v385_v15   ;;  %418 = vperm.xlu0 %738, %v384_v16   ;;  %v451_v16 = vld [vmem:[%s931_s4 + $0x8] sm:$0xf] }
  0x28   : > { %461 = vperm.xlu1 %739, %v453_v17   ;;  %456 = vperm.xlu0 %738, %v452_v18  }
  0x87   : > { %v389_v21 = vpop.permute.xlu1 %388  ;;  %v333_v22 = vpop.permute.xlu0 %332 }
  0x88   : > { %v370_v23 = vmul.f32 %v333_v22, %v314_v20 }
  0x8a   : > { %v426_v27 = vadd.f32 %v389_v21, %v370_v23 }
  0x8b   : > { %v394_v25 = vpop.permute.xlu1 %393  ;;  %v338_v26 = vpop.permute.xlu0 %337 }
  0x8c   : > { %v371_v28 = vmul.f32 %v338_v26, %v315_v24  ;;  %v442_v36 = vadd.f32 %v434_v29, %v426_v27 }
  0x8e   : > { %v427_v31 = vadd.f32 %v394_v25, %v371_v28 }
  0x8f   : > { %v348_v32 = vpop.permute.xlu1 %347  ;;  %v343_v34 = vpop.permute.xlu0 %342 }
  0x90   : > { %v443_v37 = vadd.f32 %v435_v30, %v427_v31  ;;  %v373_v38 = vmul.f32 %v348_v32, %v317_v33  ;;  %v372_v39 = vmul.f32 %v343_v34, %v316_v35 }
  0x92   : > { %v697_v40 = vpack.c.bf16 %v443_v37, %v442_v36 }
  0x93   : > { %v404_v41 = vpop.permute.xlu1 %403  ;;  %v399_v43 = vpop.permute.xlu0 %398 }
  0x94   : > { %v429_v45 = vadd.f32 %v404_v41, %v373_v38  ;;  %v428_v46 = vadd.f32 %v399_v43, %v372_v39  ;;  %698 = vmatprep.subr.bf16.mxu0 %v697_v40 }
  0x95   : > { %700 = vmatpush3.bf16.msra.mxu0 %v697_v40 }
  0x96   : > { %v445_v47 = vadd.f32 %v437_v42, %v429_v45  ;;  %v444_v48 = vadd.f32 %v436_v44, %v428_v46 }
  0x97   : > { %v358_v49 = vpop.permute.xlu1 %357  ;;  %v353_v51 = vpop.permute.xlu0 %352 }
  0x98   : > { %v701_v53 = vpack.c.bf16 %v445_v47, %v444_v48  ;;  %v375_v54 = vmul.f32 %v358_v49, %v319_v50  ;;  %v374_v55 = vmul.f32 %v353_v51, %v318_v52 }
  0x9a   : > { %702 = vmatprep.subr.bf16.mxu0 %v701_v53 }
  0x9b   : > { %v414_v56 = vpop.permute.xlu1 %413  ;;  %v409_v58 = vpop.permute.xlu0 %408  ;;  %704 = vmatpush3.bf16.msra.mxu0 %v701_v53 }
  0x9c   : > { %v431_v60 = vadd.f32 %v414_v56, %v375_v54  ;;  %v430_v61 = vadd.f32 %v409_v58, %v374_v55 }
  0x9e   : > { %v447_v62 = vadd.f32 %v439_v57, %v431_v60  ;;  %v446_v63 = vadd.f32 %v438_v59, %v430_v61 }
  0x9f   : > { %v368_v0 = vpop.permute.xlu1 %367  ;;  %v363_v2 = vpop.permute.xlu0 %362 }
  0xa0   : > { %v705_v4 = vpack.c.bf16 %v447_v62, %v446_v63  ;;  %v377_v5 = vmul.f32 %v368_v0, %v321_v1  ;;  %v376_v6 = vmul.f32 %v363_v2, %v320_v3 }
  0xa2   : > { %706 = vmatprep.subr.bf16.mxu0 %v705_v4 }
  0xa3   : > { %v424_v7 = vpop.permute.xlu1 %423  ;;  %v419_v9 = vpop.permute.xlu0 %418  ;;  %708 = vmatpush3.bf16.msra.mxu0 %v705_v4 }
  0xa4   : > { %v433_v11 = vadd.f32 %v424_v7, %v377_v5  ;;  %v432_v12 = vadd.f32 %v419_v9, %v376_v6 }
  0xa6   : > { %v449_v13 = vadd.f32 %v441_v8, %v433_v11  ;;  %v448_v14 = vadd.f32 %v440_v10, %v432_v12 }
  0xa7   : > { %v462_v17 = vpop.permute.xlu1 %461  ;;  %v457_v19 = vpop.permute.xlu0 %456 }
  0xa8   : > { %v709_v15 = vpack.c.bf16 %v449_v13, %v448_v14 }
  0xaa   : > { %710 = vmatprep.subr.bf16.mxu0 %v709_v15 }
  0xab   : > { %712 = vmatpush3.bf16.msra.mxu0 %v709_v15 }
  0xae   : > { %695 = vmatmul.mubr.msk.f32.vlgmr.msra.gmra.mrb[0].mxu0 %vm464_vm0, %v451_v16 }
 0x181   : > { %v696_v18 = vpop.f32.mrb[0].mxu0 }
 0x182   : > { %v543_v20 = vadd.f32 %v696_v18, %v462_v17  ;;  %v537_v21 = vpop.f32.mrb[1].mxu0 }
 0x183   : > { %v538_v22 = vadd.f32 %v537_v21, %v457_v19 }
 0x184   : > { %548 = vst.msk [vmem:[%s313_s11 + $0x8] sm:$0xf] %vm547_vm1, %v543_v20 }
 0x185   : > { %546 = vst.msk [vmem:[%s313_s11] sm:$0xff] %vm464_vm0, %v538_v22 }
 0x186 PF: > { %s16_s23 = sadd.s32 1, %s762_s23   ;;  %s934_s21 = smov %s758_s22 }
 0x187   : > { %p13_p5 = scmp.ge.s32.totalorder %s16_s23, 4   ;;  %s935_s22 = smov %s937_s24 }
 0x189   :  { %15 = sbr.rel (!%p13_p5) target bundleno = 2 (0x2), region = 77 }

</bundles_post_ra>
